<compile_context>
chip_gen: v7x
topology: tpu7x:2x2x1
jax: 0.10.0
libtpu: 0.0.40
codegen_flags: <defaults>
</compile_context>

<pallas_src>
import numpy as np
import jax
import jax.numpy as jnp
from jax.experimental import pallas as pl
from jax.experimental.pallas import tpu as pltpu

INPUT_DIM = 369
OUTPUT_DIM = 128          # hidden size H
MAX_EDGE_TYPES = 13
NUM_STEPS = 8
NUM_CLASSES = 2

IN_PAD = 384              # INPUT_DIM padded to a lane multiple (zero padding, exact)
G_PAD = 8                 # graphs padded to a sublane multiple
C_PAD = 128               # classes padded to a lane multiple (lane-dense output stores)


# ----------------------------------------------------------------------------
# Fused kernel.  Grid axis = present edge type (compacted).  Per grid step t:
#   t == 0      : h0 = x @ Wlin^T + b   (dropout == identity / eval mode), msgs = 0
#   every step  : 8 unrolled GRU iterations for edge type ids[t]; msgs += h
#   t == last   : out = (pool @ msgs) @ Wc^T + bc
# ----------------------------------------------------------------------------
def _fused_ggnn_kernel(ids_ref,                       # scalar prefetch: [P] int32 present ids
                       x_ref, wlin_ref, blin_ref,     # node linear (resident)
                       adj_ref,                       # [N, N] bf16 (compacted per present type)
                       wgg_ref, wih_ref, whh_ref,     # per-type weights (bf16)
                       bih_ref, bhh_ref,              # per-type GRU biases (f32)
                       pool_ref, wc_ref, bc_ref,      # pool + classifier (resident)
                       out_ref,
                       h0_ref, msg_ref):              # VMEM scratch, persist across grid
    t = pl.program_id(0)
    H = OUTPUT_DIM
    n_nodes = msg_ref.shape[0]

    @pl.when(t == 0)
    def _():
        # TODO(synk): nn.Dropout(0.5) treated as identity (eval mode).
        h0_ref[...] = (
            jnp.dot(x_ref[...], wlin_ref[...], preferred_element_type=jnp.float32)
            + blin_ref[...]
        )
        msg_ref[...] = jnp.zeros_like(msg_ref)

    adj = adj_ref[...]            # [N, N]   bf16
    w_ih_t = wih_ref[...]         # [H, 3H]  bf16 (pre-transposed weight_ih)
    w_hh_t = whh_ref[...]         # [H, 3H]  bf16 (pre-transposed weight_hh)
    # hoist the bias broadcasts out of the unrolled step loop
    b_i = jnp.broadcast_to(bih_ref[...], (n_nodes, 3 * H))
    b_h = jnp.broadcast_to(bhh_ref[...], (n_nodes, 3 * H))

    h = h0_ref[...]               # f32 carried state
    for s in range(NUM_STEPS):    # fully unrolled; wgg slice index is static
        hb = h.astype(jnp.bfloat16)
        m = jnp.dot(hb, wgg_ref[s], preferred_element_type=jnp.float32)        # [N, H]
        agg = jnp.dot(adj, m.astype(jnp.bfloat16),
                      preferred_element_type=jnp.float32)                      # [N, H]
        gi = jnp.dot(agg.astype(jnp.bfloat16), w_ih_t,
                     preferred_element_type=jnp.float32) + b_i                 # [N, 3H]
        gh = jnp.dot(hb, w_hh_t, preferred_element_type=jnp.float32) + b_h     # [N, 3H]
        r = jax.nn.sigmoid(gi[:, :H] + gh[:, :H])
        z = jax.nn.sigmoid(gi[:, H:2 * H] + gh[:, H:2 * H])
        n = jnp.tanh(gi[:, 2 * H:] + r * gh[:, 2 * H:])
        h = (1.0 - z) * n + z * h

    msg_ref[...] += h

    @pl.when(t == pl.num_programs(0) - 1)
    def _():
        pooled = jnp.dot(pool_ref[...], msg_ref[...], preferred_element_type=jnp.float32)
        out_ref[...] = (
            jnp.dot(pooled, wc_ref[...], preferred_element_type=jnp.float32) + bc_ref[...]
        )


# ----------------------------------------------------------------------------
# Host-side glue: edge filtering, dense adjacency & pooling matrices, params.
# (Host-side numpy makes N / num_graphs trace-time constants -> recompiles per shape.)
# ----------------------------------------------------------------------------
def _build_adjacency(edge_index, edge_attr, num_nodes):
    edge_index = np.asarray(edge_index)
    edge_attr = np.asarray(edge_attr)
    valid = (edge_index[0] < num_nodes) & (edge_index[1] < num_nodes)
    edge_index = edge_index[:, valid]
    if edge_index.size == 0:
        return None, None, True
    adj = np.zeros((MAX_EDGE_TYPES, num_nodes, num_nodes), np.float32)
    has_edge = np.zeros((MAX_EDGE_TYPES,), np.int32)
    for t in range(MAX_EDGE_TYPES):
        mask = np.nonzero(edge_attr == t)[0]
        # faithfully replays the reference's `mask.max() < edge_index.size(1)` guard
        if len(mask) > 0 and mask.max() < edge_index.shape[1]:
            ei_t = edge_index[:, mask]
            np.add.at(adj[t], (ei_t[1], ei_t[0]), 1.0)   # adj[dst, src] += 1
            has_edge[t] = 1
    return adj, has_edge, False


def _pool_matrix(batch, num_graphs):
    batch = np.asarray(batch)
    n = batch.shape[0]
    pool = np.zeros((num_graphs, n), np.float32)
    pool[batch, np.arange(n)] = 1.0
    counts = np.maximum(pool.sum(axis=1, keepdims=True), 1.0)
    return pool / counts


def init_params(key):
    H = OUTPUT_DIM
    ks = jax.random.split(key, 9)
    return {
        "lin_w": jax.random.normal(ks[0], (H, INPUT_DIM), jnp.float32) / np.sqrt(INPUT_DIM),
        "lin_b": jax.random.normal(ks[1], (H,), jnp.float32) * 0.01,
        "wgg":   jax.random.normal(ks[2], (MAX_EDGE_TYPES, NUM_STEPS, H, H), jnp.float32) / np.sqrt(H),
        "w_ih":  jax.random.normal(ks[3], (MAX_EDGE_TYPES, 3 * H, H), jnp.float32) / np.sqrt(H),
        "w_hh":  jax.random.normal(ks[4], (MAX_EDGE_TYPES, 3 * H, H), jnp.float32) / np.sqrt(H),
        "b_ih":  jax.random.normal(ks[5], (MAX_EDGE_TYPES, 3 * H), jnp.float32) * 0.01,
        "b_hh":  jax.random.normal(ks[6], (MAX_EDGE_TYPES, 3 * H), jnp.float32) * 0.01,
        "clf_w": jax.random.normal(ks[7], (NUM_CLASSES, H), jnp.float32) / np.sqrt(H),
        "clf_b": jax.random.normal(ks[8], (NUM_CLASSES,), jnp.float32) * 0.01,
    }


def ggnn_forward(x, edge_index, edge_attr, batch, params):
    N = x.shape[0]
    H = OUTPUT_DIM

    adj_np, has_edge_np, empty = _build_adjacency(edge_index, edge_attr, N)
    if empty:
        # reference returns zeros((num_nodes, 2)) on empty edge set
        return jnp.zeros((N, NUM_CLASSES), jnp.float32)

    num_graphs = int(np.asarray(batch).max()) + 1
    present = np.nonzero(has_edge_np)[0].astype(np.int32)
    num_present = int(present.shape[0])
    if num_present == 0:
        # no edge type passes the guard -> messages stay zero -> classifier(0) = bias
        return jnp.broadcast_to(params["clf_b"][None, :], (num_graphs, NUM_CLASSES))

    N_pad = ((N + 7) // 8) * 8   # sublane alignment for node axis

    # resident node-linear operands (f32; this matmul is tiny vs. the GGNN chain)
    x_pad = jnp.pad(x, ((0, N_pad - N), (0, IN_PAD - INPUT_DIM)))
    w_lin = jnp.pad(params["lin_w"].T, ((0, IN_PAD - INPUT_DIM), (0, 0)))   # [IN_PAD, H]
    b_lin = params["lin_b"].reshape(1, H)

    # adjacency compacted to the present types only -> never DMA absent types.
    # counts are small integer multiplicities, exact in bf16 (guard if they could exceed 256).
    adj_c = np.zeros((num_present, N_pad, N_pad), np.float32)
    adj_c[:, :N, :N] = adj_np[present]
    adj_c = jnp.asarray(adj_c, dtype=jnp.bfloat16)

    # GGNN / GRU weights in bf16 (indexed inside the kernel via the prefetched ids)
    wgg = params["wgg"].astype(jnp.bfloat16)                                # [T, S, H, H]
    wihT = jnp.transpose(params["w_ih"], (0, 2, 1)).astype(jnp.bfloat16)    # [T, H, 3H]
    whhT = jnp.transpose(params["w_hh"], (0, 2, 1)).astype(jnp.bfloat16)    # [T, H, 3H]
    bih = params["b_ih"].reshape(MAX_EDGE_TYPES, 1, 3 * H)
    bhh = params["b_hh"].reshape(MAX_EDGE_TYPES, 1, 3 * H)

    # resident pool + classifier operands
    pool = np.zeros((G_PAD, N_pad), np.float32)
    pool[:num_graphs, :N] = _pool_matrix(batch, num_graphs)
    wc = np.zeros((H, C_PAD), np.float32)
    wc[:, :NUM_CLASSES] = np.asarray(params["clf_w"]).T
    bc = np.zeros((1, C_PAD), np.float32)
    bc[0, :NUM_CLASSES] = np.asarray(params["clf_b"])

    grid_spec = pltpu.PrefetchScalarGridSpec(
        num_scalar_prefetch=1,
        grid=(num_present,),
        in_specs=[
            pl.BlockSpec((N_pad, IN_PAD), lambda t, ids: (0, 0)),                     # x_pad
            pl.BlockSpec((IN_PAD, H), lambda t, ids: (0, 0)),                         # w_lin
            pl.BlockSpec((1, H), lambda t, ids: (0, 0)),                              # b_lin
            pl.BlockSpec((None, N_pad, N_pad), lambda t, ids: (t, 0, 0)),             # adj (compacted)
            pl.BlockSpec((None, NUM_STEPS, H, H), lambda t, ids: (ids[t], 0, 0, 0)),  # wgg
            pl.BlockSpec((None, H, 3 * H), lambda t, ids: (ids[t], 0, 0)),            # w_ih^T
            pl.BlockSpec((None, H, 3 * H), lambda t, ids: (ids[t], 0, 0)),            # w_hh^T
            pl.BlockSpec((None, 1, 3 * H), lambda t, ids: (ids[t], 0, 0)),            # b_ih
            pl.BlockSpec((None, 1, 3 * H), lambda t, ids: (ids[t], 0, 0)),            # b_hh
            pl.BlockSpec((G_PAD, N_pad), lambda t, ids: (0, 0)),                      # pool
            pl.BlockSpec((H, C_PAD), lambda t, ids: (0, 0)),                          # wc
            pl.BlockSpec((1, C_PAD), lambda t, ids: (0, 0)),                          # bc
        ],
        out_specs=pl.BlockSpec((G_PAD, C_PAD), lambda t, ids: (0, 0)),
        scratch_shapes=[
            pltpu.VMEM((N_pad, H), jnp.float32),   # h0 (computed once, reused per type)
            pltpu.VMEM((N_pad, H), jnp.float32),   # messages accumulator
        ],
    )

    out_pad = pl.pallas_call(
        _fused_ggnn_kernel,
        out_shape=jax.ShapeDtypeStruct((G_PAD, C_PAD), jnp.float32),
        grid_spec=grid_spec,
        compiler_params=pltpu.CompilerParams(
            dimension_semantics=("arbitrary",),      # serial reduction over present types
            vmem_limit_bytes=64 * 1024 * 1024,       # raise scoped VMEM; tile adj for very large N
        ),
    )(jnp.asarray(present), x_pad, w_lin, b_lin,
      adj_c, wgg, wihT, whhT, bih, bhh,
      jnp.asarray(pool), jnp.asarray(wc), jnp.asarray(bc))

    return out_pad[:num_graphs, :NUM_CLASSES]


# ----------------------------------------------------------------------------
# Pure-JAX references for numerical verification.
#   mixed=True mirrors the kernel's bf16-operand / f32-accumulate matmul recipe.
#   mixed=False is the full-f32 spec.
# ----------------------------------------------------------------------------
def reference_forward(x, edge_index, edge_attr, batch, params, mixed=False):
    H = OUTPUT_DIM
    N = x.shape[0]
    adj, has_edge, empty = _build_adjacency(edge_index, edge_attr, N)
    if empty:
        return jnp.zeros((N, NUM_CLASSES), jnp.float32)

    def mm(a, b):
        if mixed:
            a = a.astype(jnp.bfloat16)
            b = b.astype(jnp.bfloat16)
        return jnp.dot(a, b, preferred_element_type=jnp.float32)

    h0 = x @ params["lin_w"].T + params["lin_b"]
    msgs = jnp.zeros_like(h0)
    for t in range(MAX_EDGE_TYPES):
        if not has_edge[t]:
            continue
        h = h0
        a = jnp.asarray(adj[t])
        wihT = params["w_ih"][t].T
        whhT = params["w_hh"][t].T
        for s in range(NUM_STEPS):
            m = mm(h, params["wgg"][t, s])
            agg = mm(a, m)
            gi = mm(agg, wihT) + params["b_ih"][t]
            gh = mm(h, whhT) + params["b_hh"][t]
            r = jax.nn.sigmoid(gi[:, :H] + gh[:, :H])
            z = jax.nn.sigmoid(gi[:, H:2 * H] + gh[:, H:2 * H])
            n = jnp.tanh(gi[:, 2 * H:] + r * gh[:, 2 * H:])
            h = (1.0 - z) * n + z * h
        msgs = msgs + h
    num_graphs = int(np.asarray(batch).max()) + 1
    pooled = jnp.asarray(_pool_matrix(batch, num_graphs)) @ msgs
    return pooled @ params["clf_w"].T + params["clf_b"]


if __name__ == "__main__":
    key = jax.random.PRNGKey(0)
    keys = jax.random.split(key, 8)

    N, E = 16, 48                       # small graph: 16 nodes, 48 edges, 2 graphs
    x = jax.random.normal(keys[0], (N, INPUT_DIM), jnp.float32)
    src = jax.random.randint(keys[1], (E,), 0, N)
    dst = jax.random.randint(keys[2], (E,), 0, N)
    edge_index = jnp.stack([src, dst]).astype(jnp.int32)
    edge_attr = jax.random.randint(keys[3], (E,), 0, MAX_EDGE_TYPES).astype(jnp.int32)
    batch = jnp.concatenate(
        [jnp.zeros(N // 2, jnp.int32), jnp.ones(N // 2, jnp.int32)]
    )

    params = init_params(keys[4])

    out = ggnn_forward(x, edge_index, edge_attr, batch, params)
    out = jax.block_until_ready(out)

    ref_mixed = reference_forward(x, edge_index, edge_attr, batch, params, mixed=True)
    ref_f32 = reference_forward(x, edge_index, edge_attr, batch, params, mixed=False)
    assert out.shape == ref_f32.shape == (2, NUM_CLASSES), (out.shape, ref_f32.shape)
    # exact algorithmic parity against the same mixed-precision recipe
    np.testing.assert_allclose(np.asarray(out), np.asarray(ref_mixed), atol=2e-2, rtol=2e-2)
    # sanity proximity to the full-f32 spec (bf16 MXU operands, f32 accumulation)
    np.testing.assert_allclose(np.asarray(out), np.asarray(ref_f32), atol=3e-1, rtol=1e-1)
    print("KERNEL_OK")
</pallas_src>

<mosaic_0001>
module attributes {stable_mosaic.version = 11 : i64} {
  func.func @_fused_ggnn_kernel(%arg0: i32, %arg1: memref<12xi32, #tpu.memory_space<smem>>, %arg2: memref<16x384xf32, #tpu.memory_space<vmem>>, %arg3: memref<384x128xf32, #tpu.memory_space<vmem>>, %arg4: memref<1x128xf32, #tpu.memory_space<vmem>>, %arg5: memref<1x16x16xbf16, #tpu.memory_space<vmem>>, %arg6: memref<1x8x128x128xbf16, #tpu.memory_space<vmem>>, %arg7: memref<1x128x384xbf16, #tpu.memory_space<vmem>>, %arg8: memref<1x128x384xbf16, #tpu.memory_space<vmem>>, %arg9: memref<1x1x384xf32, #tpu.memory_space<vmem>>, %arg10: memref<1x1x384xf32, #tpu.memory_space<vmem>>, %arg11: memref<8x16xf32, #tpu.memory_space<vmem>>, %arg12: memref<128x128xf32, #tpu.memory_space<vmem>>, %arg13: memref<1x128xf32, #tpu.memory_space<vmem>>, %arg14: memref<8x128xf32, #tpu.memory_space<vmem>>, %arg15: memref<16x128xf32, #tpu.memory_space<vmem>>, %arg16: memref<16x128xf32, #tpu.memory_space<vmem>>) attributes {dimension_semantics = [#tpu.dimension_semantics<arbitrary>], iteration_bounds = array<i64: 12>, scalar_prefetch = 1 : i64, scratch_operands = 2 : i64, tpu.core_type = #tpu.core_type<tc>, window_params = [{pipeline_mode = #tpu.pipeline_mode<synchronous>, transform_indices = @transform_0, window_bounds = array<i64: 16, 384>}, {pipeline_mode = #tpu.pipeline_mode<synchronous>, transform_indices = @transform_1, window_bounds = array<i64: 384, 128>}, {pipeline_mode = #tpu.pipeline_mode<synchronous>, transform_indices = @transform_2, window_bounds = array<i64: 1, 128>}, {transform_indices = @transform_3, window_bounds = array<i64: 1, 16, 16>}, {transform_indices = @transform_4, window_bounds = array<i64: 1, 8, 128, 128>}, {transform_indices = @transform_5, window_bounds = array<i64: 1, 128, 384>}, {transform_indices = @transform_6, window_bounds = array<i64: 1, 128, 384>}, {transform_indices = @transform_7, window_bounds = array<i64: 1, 1, 384>}, {transform_indices = @transform_8, window_bounds = array<i64: 1, 1, 384>}, {pipeline_mode = #tpu.pipeline_mode<synchronous>, transform_indices = @transform_9, window_bounds = array<i64: 8, 16>}, {pipeline_mode = #tpu.pipeline_mode<synchronous>, transform_indices = @transform_10, window_bounds = array<i64: 128, 128>}, {pipeline_mode = #tpu.pipeline_mode<synchronous>, transform_indices = @transform_11, window_bounds = array<i64: 1, 128>}, {pipeline_mode = #tpu.pipeline_mode<synchronous>, transform_indices = @transform_12, window_bounds = array<i64: 8, 128>}]} {
    %c0_i32 = arith.constant 0 : i32
    %0 = arith.cmpi eq, %arg0, %c0_i32 : i32
    %1 = arith.extui %0 : i1 to i32
    %c0_i32_0 = arith.constant 0 : i32
    %2 = arith.cmpi ne, %1, %c0_i32_0 : i32
    scf.if %2 {
      %c0_102 = arith.constant 0 : index
      %c0_103 = arith.constant 0 : index
      %320 = vector.load %arg2[%c0_102, %c0_103] : memref<16x384xf32, #tpu.memory_space<vmem>>, vector<16x384xf32>
      %c0_104 = arith.constant 0 : index
      %c0_105 = arith.constant 0 : index
      %321 = vector.load %arg3[%c0_104, %c0_105] : memref<384x128xf32, #tpu.memory_space<vmem>>, vector<384x128xf32>
      %cst_106 = arith.constant dense<0.000000e+00> : vector<16x128xf32>
      %322 = tpu.matmul %320, %321, %cst_106 {dimension_numbers = #tpu.dot_dimension_numbers<[1], [0], [0], [1], [0, 0, 1, 1], [], []>} : vector<16x384xf32>, vector<384x128xf32>, vector<16x128xf32> -> vector<16x128xf32>
      %c0_107 = arith.constant 0 : index
      %c0_108 = arith.constant 0 : index
      %323 = vector.load %arg4[%c0_107, %c0_108] : memref<1x128xf32, #tpu.memory_space<vmem>>, vector<1x128xf32>
      %324 = vector.broadcast %323 : vector<1x128xf32> to vector<16x128xf32>
      %325 = arith.addf %322, %324 : vector<16x128xf32>
      %c0_109 = arith.constant 0 : index
      %c0_110 = arith.constant 0 : index
      %326 = vector.load %arg15[%c0_109, %c0_110] : memref<16x128xf32, #tpu.memory_space<vmem>>, vector<16x128xf32>
      tpu.vector_store %arg15[%c0_109, %c0_110], %325 {strides = array<i32>} : memref<16x128xf32, #tpu.memory_space<vmem>>, vector<16x128xf32>,
      %cst_111 = arith.constant 0.000000e+00 : f32
      %327 = vector.broadcast %cst_111 : f32 to vector<16x128xf32>
      %c0_112 = arith.constant 0 : index
      %c0_113 = arith.constant 0 : index
      %328 = vector.load %arg16[%c0_112, %c0_113] : memref<16x128xf32, #tpu.memory_space<vmem>>, vector<16x128xf32>
      tpu.vector_store %arg16[%c0_112, %c0_113], %327 {strides = array<i32>} : memref<16x128xf32, #tpu.memory_space<vmem>>, vector<16x128xf32>,
    } else {
    }
    %c0 = arith.constant 0 : index
    %c0_1 = arith.constant 0 : index
    %c0_2 = arith.constant 0 : index
    %3 = vector.load %arg5[%c0, %c0_1, %c0_2] : memref<1x16x16xbf16, #tpu.memory_space<vmem>>, vector<1x16x16xbf16>
    %4 = vector.shape_cast %3 : vector<1x16x16xbf16> to vector<16x16xbf16>
    %c0_3 = arith.constant 0 : index
    %c0_4 = arith.constant 0 : index
    %c0_5 = arith.constant 0 : index
    %5 = vector.load %arg7[%c0_3, %c0_4, %c0_5] : memref<1x128x384xbf16, #tpu.memory_space<vmem>>, vector<1x128x384xbf16>
    %6 = vector.shape_cast %5 : vector<1x128x384xbf16> to vector<128x384xbf16>
    %c0_6 = arith.constant 0 : index
    %c0_7 = arith.constant 0 : index
    %c0_8 = arith.constant 0 : index
    %7 = vector.load %arg8[%c0_6, %c0_7, %c0_8] : memref<1x128x384xbf16, #tpu.memory_space<vmem>>, vector<1x128x384xbf16>
    %8 = vector.shape_cast %7 : vector<1x128x384xbf16> to vector<128x384xbf16>
    %c0_9 = arith.constant 0 : index
    %c0_10 = arith.constant 0 : index
    %c0_11 = arith.constant 0 : index
    %9 = vector.load %arg9[%c0_9, %c0_10, %c0_11] : memref<1x1x384xf32, #tpu.memory_space<vmem>>, vector<1x1x384xf32>
    %10 = vector.shape_cast %9 : vector<1x1x384xf32> to vector<1x384xf32>
    %11 = vector.shape_cast %10 : vector<1x384xf32> to vector<1x384xf32>
    %12 = vector.broadcast %11 : vector<1x384xf32> to vector<16x384xf32>
    %c0_12 = arith.constant 0 : index
    %c0_13 = arith.constant 0 : index
    %c0_14 = arith.constant 0 : index
    %13 = vector.load %arg10[%c0_12, %c0_13, %c0_14] : memref<1x1x384xf32, #tpu.memory_space<vmem>>, vector<1x1x384xf32>
    %14 = vector.shape_cast %13 : vector<1x1x384xf32> to vector<1x384xf32>
    %15 = vector.shape_cast %14 : vector<1x384xf32> to vector<1x384xf32>
    %16 = vector.broadcast %15 : vector<1x384xf32> to vector<16x384xf32>
    %c0_15 = arith.constant 0 : index
    %c0_16 = arith.constant 0 : index
    %17 = vector.load %arg15[%c0_15, %c0_16] : memref<16x128xf32, #tpu.memory_space<vmem>>, vector<16x128xf32>
    %18 = arith.truncf %17 : vector<16x128xf32> to vector<16x128xbf16>
    %c0_17 = arith.constant 0 : index
    %c0_18 = arith.constant 0 : index
    %c0_19 = arith.constant 0 : index
    %c0_20 = arith.constant 0 : index
    %19 = vector.load %arg6[%c0_17, %c0_18, %c0_19, %c0_20] : memref<1x8x128x128xbf16, #tpu.memory_space<vmem>>, vector<1x1x128x128xbf16>
    %20 = vector.shape_cast %19 : vector<1x1x128x128xbf16> to vector<128x128xbf16>
    %cst = arith.constant dense<0.000000e+00> : vector<16x128xf32>
    %21 = tpu.matmul %18, %20, %cst {dimension_numbers = #tpu.dot_dimension_numbers<[1], [0], [0], [1], [0, 0, 1, 1], [], []>} : vector<16x128xbf16>, vector<128x128xbf16>, vector<16x128xf32> -> vector<16x128xf32>
    %22 = arith.truncf %21 : vector<16x128xf32> to vector<16x128xbf16>
    %cst_21 = arith.constant dense<0.000000e+00> : vector<16x128xf32>
    %23 = tpu.matmul %4, %22, %cst_21 {dimension_numbers = #tpu.dot_dimension_numbers<[1], [0], [0], [1], [0, 0, 1, 1], [], []>} : vector<16x16xbf16>, vector<16x128xbf16>, vector<16x128xf32> -> vector<16x128xf32>
    %24 = arith.truncf %23 : vector<16x128xf32> to vector<16x128xbf16>
    %cst_22 = arith.constant dense<0.000000e+00> : vector<16x384xf32>
    %25 = tpu.matmul %24, %6, %cst_22 {dimension_numbers = #tpu.dot_dimension_numbers<[1], [0], [0], [1], [0, 0, 1, 1], [], []>} : vector<16x128xbf16>, vector<128x384xbf16>, vector<16x384xf32> -> vector<16x384xf32>
    %26 = arith.addf %25, %12 : vector<16x384xf32>
    %cst_23 = arith.constant dense<0.000000e+00> : vector<16x384xf32>
    %27 = tpu.matmul %18, %8, %cst_23 {dimension_numbers = #tpu.dot_dimension_numbers<[1], [0], [0], [1], [0, 0, 1, 1], [], []>} : vector<16x128xbf16>, vector<128x384xbf16>, vector<16x384xf32> -> vector<16x384xf32>
    %28 = arith.addf %27, %16 : vector<16x384xf32>
    %29 = vector.extract_strided_slice %26 {offsets = [0, 0], sizes = [16, 128], strides = [1, 1]} : vector<16x384xf32> to vector<16x128xf32>
    %30 = vector.extract_strided_slice %28 {offsets = [0, 0], sizes = [16, 128], strides = [1, 1]} : vector<16x384xf32> to vector<16x128xf32>
    %31 = arith.addf %29, %30 : vector<16x128xf32>
    %32 = arith.negf %31 : vector<16x128xf32>
    %33 = math.exp %32 : vector<16x128xf32>
    %cst_24 = arith.constant 1.000000e+00 : f32
    %34 = vector.broadcast %cst_24 : f32 to vector<16x128xf32>
    %35 = arith.addf %34, %33 : vector<16x128xf32>
    %36 = arith.divf %34, %35 : vector<16x128xf32>
    %37 = vector.extract_strided_slice %26 {offsets = [0, 128], sizes = [16, 128], strides = [1, 1]} : vector<16x384xf32> to vector<16x128xf32>
    %38 = vector.extract_strided_slice %28 {offsets = [0, 128], sizes = [16, 128], strides = [1, 1]} : vector<16x384xf32> to vector<16x128xf32>
    %39 = arith.addf %37, %38 : vector<16x128xf32>
    %40 = arith.negf %39 : vector<16x128xf32>
    %41 = math.exp %40 : vector<16x128xf32>
    %cst_25 = arith.constant 1.000000e+00 : f32
    %42 = vector.broadcast %cst_25 : f32 to vector<16x128xf32>
    %43 = arith.addf %42, %41 : vector<16x128xf32>
    %44 = arith.divf %42, %43 : vector<16x128xf32>
    %45 = vector.extract_strided_slice %26 {offsets = [0, 256], sizes = [16, 128], strides = [1, 1]} : vector<16x384xf32> to vector<16x128xf32>
    %46 = vector.extract_strided_slice %28 {offsets = [0, 256], sizes = [16, 128], strides = [1, 1]} : vector<16x384xf32> to vector<16x128xf32>
    %47 = arith.mulf %36, %46 : vector<16x128xf32>
    %48 = arith.addf %45, %47 : vector<16x128xf32>
    %49 = math.tanh %48 : vector<16x128xf32>
    %cst_26 = arith.constant 1.000000e+00 : f32
    %50 = vector.broadcast %cst_26 : f32 to vector<16x128xf32>
    %51 = arith.subf %50, %44 : vector<16x128xf32>
    %52 = arith.mulf %51, %49 : vector<16x128xf32>
    %53 = arith.mulf %44, %17 : vector<16x128xf32>
    %54 = arith.addf %52, %53 : vector<16x128xf32>
    %55 = arith.truncf %54 : vector<16x128xf32> to vector<16x128xbf16>
    %c0_27 = arith.constant 0 : index
    %c1 = arith.constant 1 : index
    %c0_28 = arith.constant 0 : index
    %c0_29 = arith.constant 0 : index
    %56 = vector.load %arg6[%c0_27, %c1, %c0_28, %c0_29] : memref<1x8x128x128xbf16, #tpu.memory_space<vmem>>, vector<1x1x128x128xbf16>
    %57 = vector.shape_cast %56 : vector<1x1x128x128xbf16> to vector<128x128xbf16>
    %cst_30 = arith.constant dense<0.000000e+00> : vector<16x128xf32>
    %58 = tpu.matmul %55, %57, %cst_30 {dimension_numbers = #tpu.dot_dimension_numbers<[1], [0], [0], [1], [0, 0, 1, 1], [], []>} : vector<16x128xbf16>, vector<128x128xbf16>, vector<16x128xf32> -> vector<16x128xf32>
    %59 = arith.truncf %58 : vector<16x128xf32> to vector<16x128xbf16>
    %cst_31 = arith.constant dense<0.000000e+00> : vector<16x128xf32>
    %60 = tpu.matmul %4, %59, %cst_31 {dimension_numbers = #tpu.dot_dimension_numbers<[1], [0], [0], [1], [0, 0, 1, 1], [], []>} : vector<16x16xbf16>, vector<16x128xbf16>, vector<16x128xf32> -> vector<16x128xf32>
    %61 = arith.truncf %60 : vector<16x128xf32> to vector<16x128xbf16>
    %cst_32 = arith.constant dense<0.000000e+00> : vector<16x384xf32>
    %62 = tpu.matmul %61, %6, %cst_32 {dimension_numbers = #tpu.dot_dimension_numbers<[1], [0], [0], [1], [0, 0, 1, 1], [], []>} : vector<16x128xbf16>, vector<128x384xbf16>, vector<16x384xf32> -> vector<16x384xf32>
    %63 = arith.addf %62, %12 : vector<16x384xf32>
    %cst_33 = arith.constant dense<0.000000e+00> : vector<16x384xf32>
    %64 = tpu.matmul %55, %8, %cst_33 {dimension_numbers = #tpu.dot_dimension_numbers<[1], [0], [0], [1], [0, 0, 1, 1], [], []>} : vector<16x128xbf16>, vector<128x384xbf16>, vector<16x384xf32> -> vector<16x384xf32>
    %65 = arith.addf %64, %16 : vector<16x384xf32>
    %66 = vector.extract_strided_slice %63 {offsets = [0, 0], sizes = [16, 128], strides = [1, 1]} : vector<16x384xf32> to vector<16x128xf32>
    %67 = vector.extract_strided_slice %65 {offsets = [0, 0], sizes = [16, 128], strides = [1, 1]} : vector<16x384xf32> to vector<16x128xf32>
    %68 = arith.addf %66, %67 : vector<16x128xf32>
    %69 = arith.negf %68 : vector<16x128xf32>
    %70 = math.exp %69 : vector<16x128xf32>
    %cst_34 = arith.constant 1.000000e+00 : f32
    %71 = vector.broadcast %cst_34 : f32 to vector<16x128xf32>
    %72 = arith.addf %71, %70 : vector<16x128xf32>
    %73 = arith.divf %71, %72 : vector<16x128xf32>
    %74 = vector.extract_strided_slice %63 {offsets = [0, 128], sizes = [16, 128], strides = [1, 1]} : vector<16x384xf32> to vector<16x128xf32>
    %75 = vector.extract_strided_slice %65 {offsets = [0, 128], sizes = [16, 128], strides = [1, 1]} : vector<16x384xf32> to vector<16x128xf32>
    %76 = arith.addf %74, %75 : vector<16x128xf32>
    %77 = arith.negf %76 : vector<16x128xf32>
    %78 = math.exp %77 : vector<16x128xf32>
    %cst_35 = arith.constant 1.000000e+00 : f32
    %79 = vector.broadcast %cst_35 : f32 to vector<16x128xf32>
    %80 = arith.addf %79, %78 : vector<16x128xf32>
    %81 = arith.divf %79, %80 : vector<16x128xf32>
    %82 = vector.extract_strided_slice %63 {offsets = [0, 256], sizes = [16, 128], strides = [1, 1]} : vector<16x384xf32> to vector<16x128xf32>
    %83 = vector.extract_strided_slice %65 {offsets = [0, 256], sizes = [16, 128], strides = [1, 1]} : vector<16x384xf32> to vector<16x128xf32>
    %84 = arith.mulf %73, %83 : vector<16x128xf32>
    %85 = arith.addf %82, %84 : vector<16x128xf32>
    %86 = math.tanh %85 : vector<16x128xf32>
    %cst_36 = arith.constant 1.000000e+00 : f32
    %87 = vector.broadcast %cst_36 : f32 to vector<16x128xf32>
    %88 = arith.subf %87, %81 : vector<16x128xf32>
    %89 = arith.mulf %88, %86 : vector<16x128xf32>
    %90 = arith.mulf %81, %54 : vector<16x128xf32>
    %91 = arith.addf %89, %90 : vector<16x128xf32>
    %92 = arith.truncf %91 : vector<16x128xf32> to vector<16x128xbf16>
    %c0_37 = arith.constant 0 : index
    %c2 = arith.constant 2 : index
    %c0_38 = arith.constant 0 : index
    %c0_39 = arith.constant 0 : index
    %93 = vector.load %arg6[%c0_37, %c2, %c0_38, %c0_39] : memref<1x8x128x128xbf16, #tpu.memory_space<vmem>>, vector<1x1x128x128xbf16>
    %94 = vector.shape_cast %93 : vector<1x1x128x128xbf16> to vector<128x128xbf16>
    %cst_40 = arith.constant dense<0.000000e+00> : vector<16x128xf32>
    %95 = tpu.matmul %92, %94, %cst_40 {dimension_numbers = #tpu.dot_dimension_numbers<[1], [0], [0], [1], [0, 0, 1, 1], [], []>} : vector<16x128xbf16>, vector<128x128xbf16>, vector<16x128xf32> -> vector<16x128xf32>
    %96 = arith.truncf %95 : vector<16x128xf32> to vector<16x128xbf16>
    %cst_41 = arith.constant dense<0.000000e+00> : vector<16x128xf32>
    %97 = tpu.matmul %4, %96, %cst_41 {dimension_numbers = #tpu.dot_dimension_numbers<[1], [0], [0], [1], [0, 0, 1, 1], [], []>} : vector<16x16xbf16>, vector<16x128xbf16>, vector<16x128xf32> -> vector<16x128xf32>
    %98 = arith.truncf %97 : vector<16x128xf32> to vector<16x128xbf16>
    %cst_42 = arith.constant dense<0.000000e+00> : vector<16x384xf32>
    %99 = tpu.matmul %98, %6, %cst_42 {dimension_numbers = #tpu.dot_dimension_numbers<[1], [0], [0], [1], [0, 0, 1, 1], [], []>} : vector<16x128xbf16>, vector<128x384xbf16>, vector<16x384xf32> -> vector<16x384xf32>
    %100 = arith.addf %99, %12 : vector<16x384xf32>
    %cst_43 = arith.constant dense<0.000000e+00> : vector<16x384xf32>
    %101 = tpu.matmul %92, %8, %cst_43 {dimension_numbers = #tpu.dot_dimension_numbers<[1], [0], [0], [1], [0, 0, 1, 1], [], []>} : vector<16x128xbf16>, vector<128x384xbf16>, vector<16x384xf32> -> vector<16x384xf32>
    %102 = arith.addf %101, %16 : vector<16x384xf32>
    %103 = vector.extract_strided_slice %100 {offsets = [0, 0], sizes = [16, 128], strides = [1, 1]} : vector<16x384xf32> to vector<16x128xf32>
    %104 = vector.extract_strided_slice %102 {offsets = [0, 0], sizes = [16, 128], strides = [1, 1]} : vector<16x384xf32> to vector<16x128xf32>
    %105 = arith.addf %103, %104 : vector<16x128xf32>
    %106 = arith.negf %105 : vector<16x128xf32>
    %107 = math.exp %106 : vector<16x128xf32>
    %cst_44 = arith.constant 1.000000e+00 : f32
    %108 = vector.broadcast %cst_44 : f32 to vector<16x128xf32>
    %109 = arith.addf %108, %107 : vector<16x128xf32>
    %110 = arith.divf %108, %109 : vector<16x128xf32>
    %111 = vector.extract_strided_slice %100 {offsets = [0, 128], sizes = [16, 128], strides = [1, 1]} : vector<16x384xf32> to vector<16x128xf32>
    %112 = vector.extract_strided_slice %102 {offsets = [0, 128], sizes = [16, 128], strides = [1, 1]} : vector<16x384xf32> to vector<16x128xf32>
    %113 = arith.addf %111, %112 : vector<16x128xf32>
    %114 = arith.negf %113 : vector<16x128xf32>
    %115 = math.exp %114 : vector<16x128xf32>
    %cst_45 = arith.constant 1.000000e+00 : f32
    %116 = vector.broadcast %cst_45 : f32 to vector<16x128xf32>
    %117 = arith.addf %116, %115 : vector<16x128xf32>
    %118 = arith.divf %116, %117 : vector<16x128xf32>
    %119 = vector.extract_strided_slice %100 {offsets = [0, 256], sizes = [16, 128], strides = [1, 1]} : vector<16x384xf32> to vector<16x128xf32>
    %120 = vector.extract_strided_slice %102 {offsets = [0, 256], sizes = [16, 128], strides = [1, 1]} : vector<16x384xf32> to vector<16x128xf32>
    %121 = arith.mulf %110, %120 : vector<16x128xf32>
    %122 = arith.addf %119, %121 : vector<16x128xf32>
    %123 = math.tanh %122 : vector<16x128xf32>
    %cst_46 = arith.constant 1.000000e+00 : f32
    %124 = vector.broadcast %cst_46 : f32 to vector<16x128xf32>
    %125 = arith.subf %124, %118 : vector<16x128xf32>
    %126 = arith.mulf %125, %123 : vector<16x128xf32>
    %127 = arith.mulf %118, %91 : vector<16x128xf32>
    %128 = arith.addf %126, %127 : vector<16x128xf32>
    %129 = arith.truncf %128 : vector<16x128xf32> to vector<16x128xbf16>
    %c0_47 = arith.constant 0 : index
    %c3 = arith.constant 3 : index
    %c0_48 = arith.constant 0 : index
    %c0_49 = arith.constant 0 : index
    %130 = vector.load %arg6[%c0_47, %c3, %c0_48, %c0_49] : memref<1x8x128x128xbf16, #tpu.memory_space<vmem>>, vector<1x1x128x128xbf16>
    %131 = vector.shape_cast %130 : vector<1x1x128x128xbf16> to vector<128x128xbf16>
    %cst_50 = arith.constant dense<0.000000e+00> : vector<16x128xf32>
    %132 = tpu.matmul %129, %131, %cst_50 {dimension_numbers = #tpu.dot_dimension_numbers<[1], [0], [0], [1], [0, 0, 1, 1], [], []>} : vector<16x128xbf16>, vector<128x128xbf16>, vector<16x128xf32> -> vector<16x128xf32>
    %133 = arith.truncf %132 : vector<16x128xf32> to vector<16x128xbf16>
    %cst_51 = arith.constant dense<0.000000e+00> : vector<16x128xf32>
    %134 = tpu.matmul %4, %133, %cst_51 {dimension_numbers = #tpu.dot_dimension_numbers<[1], [0], [0], [1], [0, 0, 1, 1], [], []>} : vector<16x16xbf16>, vector<16x128xbf16>, vector<16x128xf32> -> vector<16x128xf32>
    %135 = arith.truncf %134 : vector<16x128xf32> to vector<16x128xbf16>
    %cst_52 = arith.constant dense<0.000000e+00> : vector<16x384xf32>
    %136 = tpu.matmul %135, %6, %cst_52 {dimension_numbers = #tpu.dot_dimension_numbers<[1], [0], [0], [1], [0, 0, 1, 1], [], []>} : vector<16x128xbf16>, vector<128x384xbf16>, vector<16x384xf32> -> vector<16x384xf32>
    %137 = arith.addf %136, %12 : vector<16x384xf32>
    %cst_53 = arith.constant dense<0.000000e+00> : vector<16x384xf32>
    %138 = tpu.matmul %129, %8, %cst_53 {dimension_numbers = #tpu.dot_dimension_numbers<[1], [0], [0], [1], [0, 0, 1, 1], [], []>} : vector<16x128xbf16>, vector<128x384xbf16>, vector<16x384xf32> -> vector<16x384xf32>
    %139 = arith.addf %138, %16 : vector<16x384xf32>
    %140 = vector.extract_strided_slice %137 {offsets = [0, 0], sizes = [16, 128], strides = [1, 1]} : vector<16x384xf32> to vector<16x128xf32>
    %141 = vector.extract_strided_slice %139 {offsets = [0, 0], sizes = [16, 128], strides = [1, 1]} : vector<16x384xf32> to vector<16x128xf32>
    %142 = arith.addf %140, %141 : vector<16x128xf32>
    %143 = arith.negf %142 : vector<16x128xf32>
    %144 = math.exp %143 : vector<16x128xf32>
    %cst_54 = arith.constant 1.000000e+00 : f32
    %145 = vector.broadcast %cst_54 : f32 to vector<16x128xf32>
    %146 = arith.addf %145, %144 : vector<16x128xf32>
    %147 = arith.divf %145, %146 : vector<16x128xf32>
    %148 = vector.extract_strided_slice %137 {offsets = [0, 128], sizes = [16, 128], strides = [1, 1]} : vector<16x384xf32> to vector<16x128xf32>
    %149 = vector.extract_strided_slice %139 {offsets = [0, 128], sizes = [16, 128], strides = [1, 1]} : vector<16x384xf32> to vector<16x128xf32>
    %150 = arith.addf %148, %149 : vector<16x128xf32>
    %151 = arith.negf %150 : vector<16x128xf32>
    %152 = math.exp %151 : vector<16x128xf32>
    %cst_55 = arith.constant 1.000000e+00 : f32
    %153 = vector.broadcast %cst_55 : f32 to vector<16x128xf32>
    %154 = arith.addf %153, %152 : vector<16x128xf32>
    %155 = arith.divf %153, %154 : vector<16x128xf32>
    %156 = vector.extract_strided_slice %137 {offsets = [0, 256], sizes = [16, 128], strides = [1, 1]} : vector<16x384xf32> to vector<16x128xf32>
    %157 = vector.extract_strided_slice %139 {offsets = [0, 256], sizes = [16, 128], strides = [1, 1]} : vector<16x384xf32> to vector<16x128xf32>
    %158 = arith.mulf %147, %157 : vector<16x128xf32>
    %159 = arith.addf %156, %158 : vector<16x128xf32>
    %160 = math.tanh %159 : vector<16x128xf32>
    %cst_56 = arith.constant 1.000000e+00 : f32
    %161 = vector.broadcast %cst_56 : f32 to vector<16x128xf32>
    %162 = arith.subf %161, %155 : vector<16x128xf32>
    %163 = arith.mulf %162, %160 : vector<16x128xf32>
    %164 = arith.mulf %155, %128 : vector<16x128xf32>
    %165 = arith.addf %163, %164 : vector<16x128xf32>
    %166 = arith.truncf %165 : vector<16x128xf32> to vector<16x128xbf16>
    %c0_57 = arith.constant 0 : index
    %c4 = arith.constant 4 : index
    %c0_58 = arith.constant 0 : index
    %c0_59 = arith.constant 0 : index
    %167 = vector.load %arg6[%c0_57, %c4, %c0_58, %c0_59] : memref<1x8x128x128xbf16, #tpu.memory_space<vmem>>, vector<1x1x128x128xbf16>
    %168 = vector.shape_cast %167 : vector<1x1x128x128xbf16> to vector<128x128xbf16>
    %cst_60 = arith.constant dense<0.000000e+00> : vector<16x128xf32>
    %169 = tpu.matmul %166, %168, %cst_60 {dimension_numbers = #tpu.dot_dimension_numbers<[1], [0], [0], [1], [0, 0, 1, 1], [], []>} : vector<16x128xbf16>, vector<128x128xbf16>, vector<16x128xf32> -> vector<16x128xf32>
    %170 = arith.truncf %169 : vector<16x128xf32> to vector<16x128xbf16>
    %cst_61 = arith.constant dense<0.000000e+00> : vector<16x128xf32>
    %171 = tpu.matmul %4, %170, %cst_61 {dimension_numbers = #tpu.dot_dimension_numbers<[1], [0], [0], [1], [0, 0, 1, 1], [], []>} : vector<16x16xbf16>, vector<16x128xbf16>, vector<16x128xf32> -> vector<16x128xf32>
    %172 = arith.truncf %171 : vector<16x128xf32> to vector<16x128xbf16>
    %cst_62 = arith.constant dense<0.000000e+00> : vector<16x384xf32>
    %173 = tpu.matmul %172, %6, %cst_62 {dimension_numbers = #tpu.dot_dimension_numbers<[1], [0], [0], [1], [0, 0, 1, 1], [], []>} : vector<16x128xbf16>, vector<128x384xbf16>, vector<16x384xf32> -> vector<16x384xf32>
    %174 = arith.addf %173, %12 : vector<16x384xf32>
    %cst_63 = arith.constant dense<0.000000e+00> : vector<16x384xf32>
    %175 = tpu.matmul %166, %8, %cst_63 {dimension_numbers = #tpu.dot_dimension_numbers<[1], [0], [0], [1], [0, 0, 1, 1], [], []>} : vector<16x128xbf16>, vector<128x384xbf16>, vector<16x384xf32> -> vector<16x384xf32>
    %176 = arith.addf %175, %16 : vector<16x384xf32>
    %177 = vector.extract_strided_slice %174 {offsets = [0, 0], sizes = [16, 128], strides = [1, 1]} : vector<16x384xf32> to vector<16x128xf32>
    %178 = vector.extract_strided_slice %176 {offsets = [0, 0], sizes = [16, 128], strides = [1, 1]} : vector<16x384xf32> to vector<16x128xf32>
    %179 = arith.addf %177, %178 : vector<16x128xf32>
    %180 = arith.negf %179 : vector<16x128xf32>
    %181 = math.exp %180 : vector<16x128xf32>
    %cst_64 = arith.constant 1.000000e+00 : f32
    %182 = vector.broadcast %cst_64 : f32 to vector<16x128xf32>
    %183 = arith.addf %182, %181 : vector<16x128xf32>
    %184 = arith.divf %182, %183 : vector<16x128xf32>
    %185 = vector.extract_strided_slice %174 {offsets = [0, 128], sizes = [16, 128], strides = [1, 1]} : vector<16x384xf32> to vector<16x128xf32>
    %186 = vector.extract_strided_slice %176 {offsets = [0, 128], sizes = [16, 128], strides = [1, 1]} : vector<16x384xf32> to vector<16x128xf32>
    %187 = arith.addf %185, %186 : vector<16x128xf32>
    %188 = arith.negf %187 : vector<16x128xf32>
    %189 = math.exp %188 : vector<16x128xf32>
    %cst_65 = arith.constant 1.000000e+00 : f32
    %190 = vector.broadcast %cst_65 : f32 to vector<16x128xf32>
    %191 = arith.addf %190, %189 : vector<16x128xf32>
    %192 = arith.divf %190, %191 : vector<16x128xf32>
    %193 = vector.extract_strided_slice %174 {offsets = [0, 256], sizes = [16, 128], strides = [1, 1]} : vector<16x384xf32> to vector<16x128xf32>
    %194 = vector.extract_strided_slice %176 {offsets = [0, 256], sizes = [16, 128], strides = [1, 1]} : vector<16x384xf32> to vector<16x128xf32>
    %195 = arith.mulf %184, %194 : vector<16x128xf32>
    %196 = arith.addf %193, %195 : vector<16x128xf32>
    %197 = math.tanh %196 : vector<16x128xf32>
    %cst_66 = arith.constant 1.000000e+00 : f32
    %198 = vector.broadcast %cst_66 : f32 to vector<16x128xf32>
    %199 = arith.subf %198, %192 : vector<16x128xf32>
    %200 = arith.mulf %199, %197 : vector<16x128xf32>
    %201 = arith.mulf %192, %165 : vector<16x128xf32>
    %202 = arith.addf %200, %201 : vector<16x128xf32>
    %203 = arith.truncf %202 : vector<16x128xf32> to vector<16x128xbf16>
    %c0_67 = arith.constant 0 : index
    %c5 = arith.constant 5 : index
    %c0_68 = arith.constant 0 : index
    %c0_69 = arith.constant 0 : index
    %204 = vector.load %arg6[%c0_67, %c5, %c0_68, %c0_69] : memref<1x8x128x128xbf16, #tpu.memory_space<vmem>>, vector<1x1x128x128xbf16>
    %205 = vector.shape_cast %204 : vector<1x1x128x128xbf16> to vector<128x128xbf16>
    %cst_70 = arith.constant dense<0.000000e+00> : vector<16x128xf32>
    %206 = tpu.matmul %203, %205, %cst_70 {dimension_numbers = #tpu.dot_dimension_numbers<[1], [0], [0], [1], [0, 0, 1, 1], [], []>} : vector<16x128xbf16>, vector<128x128xbf16>, vector<16x128xf32> -> vector<16x128xf32>
    %207 = arith.truncf %206 : vector<16x128xf32> to vector<16x128xbf16>
    %cst_71 = arith.constant dense<0.000000e+00> : vector<16x128xf32>
    %208 = tpu.matmul %4, %207, %cst_71 {dimension_numbers = #tpu.dot_dimension_numbers<[1], [0], [0], [1], [0, 0, 1, 1], [], []>} : vector<16x16xbf16>, vector<16x128xbf16>, vector<16x128xf32> -> vector<16x128xf32>
    %209 = arith.truncf %208 : vector<16x128xf32> to vector<16x128xbf16>
    %cst_72 = arith.constant dense<0.000000e+00> : vector<16x384xf32>
    %210 = tpu.matmul %209, %6, %cst_72 {dimension_numbers = #tpu.dot_dimension_numbers<[1], [0], [0], [1], [0, 0, 1, 1], [], []>} : vector<16x128xbf16>, vector<128x384xbf16>, vector<16x384xf32> -> vector<16x384xf32>
    %211 = arith.addf %210, %12 : vector<16x384xf32>
    %cst_73 = arith.constant dense<0.000000e+00> : vector<16x384xf32>
    %212 = tpu.matmul %203, %8, %cst_73 {dimension_numbers = #tpu.dot_dimension_numbers<[1], [0], [0], [1], [0, 0, 1, 1], [], []>} : vector<16x128xbf16>, vector<128x384xbf16>, vector<16x384xf32> -> vector<16x384xf32>
    %213 = arith.addf %212, %16 : vector<16x384xf32>
    %214 = vector.extract_strided_slice %211 {offsets = [0, 0], sizes = [16, 128], strides = [1, 1]} : vector<16x384xf32> to vector<16x128xf32>
    %215 = vector.extract_strided_slice %213 {offsets = [0, 0], sizes = [16, 128], strides = [1, 1]} : vector<16x384xf32> to vector<16x128xf32>
    %216 = arith.addf %214, %215 : vector<16x128xf32>
    %217 = arith.negf %216 : vector<16x128xf32>
    %218 = math.exp %217 : vector<16x128xf32>
    %cst_74 = arith.constant 1.000000e+00 : f32
    %219 = vector.broadcast %cst_74 : f32 to vector<16x128xf32>
    %220 = arith.addf %219, %218 : vector<16x128xf32>
    %221 = arith.divf %219, %220 : vector<16x128xf32>
    %222 = vector.extract_strided_slice %211 {offsets = [0, 128], sizes = [16, 128], strides = [1, 1]} : vector<16x384xf32> to vector<16x128xf32>
    %223 = vector.extract_strided_slice %213 {offsets = [0, 128], sizes = [16, 128], strides = [1, 1]} : vector<16x384xf32> to vector<16x128xf32>
    %224 = arith.addf %222, %223 : vector<16x128xf32>
    %225 = arith.negf %224 : vector<16x128xf32>
    %226 = math.exp %225 : vector<16x128xf32>
    %cst_75 = arith.constant 1.000000e+00 : f32
    %227 = vector.broadcast %cst_75 : f32 to vector<16x128xf32>
    %228 = arith.addf %227, %226 : vector<16x128xf32>
    %229 = arith.divf %227, %228 : vector<16x128xf32>
    %230 = vector.extract_strided_slice %211 {offsets = [0, 256], sizes = [16, 128], strides = [1, 1]} : vector<16x384xf32> to vector<16x128xf32>
    %231 = vector.extract_strided_slice %213 {offsets = [0, 256], sizes = [16, 128], strides = [1, 1]} : vector<16x384xf32> to vector<16x128xf32>
    %232 = arith.mulf %221, %231 : vector<16x128xf32>
    %233 = arith.addf %230, %232 : vector<16x128xf32>
    %234 = math.tanh %233 : vector<16x128xf32>
    %cst_76 = arith.constant 1.000000e+00 : f32
    %235 = vector.broadcast %cst_76 : f32 to vector<16x128xf32>
    %236 = arith.subf %235, %229 : vector<16x128xf32>
    %237 = arith.mulf %236, %234 : vector<16x128xf32>
    %238 = arith.mulf %229, %202 : vector<16x128xf32>
    %239 = arith.addf %237, %238 : vector<16x128xf32>
    %240 = arith.truncf %239 : vector<16x128xf32> to vector<16x128xbf16>
    %c0_77 = arith.constant 0 : index
    %c6 = arith.constant 6 : index
    %c0_78 = arith.constant 0 : index
    %c0_79 = arith.constant 0 : index
    %241 = vector.load %arg6[%c0_77, %c6, %c0_78, %c0_79] : memref<1x8x128x128xbf16, #tpu.memory_space<vmem>>, vector<1x1x128x128xbf16>
    %242 = vector.shape_cast %241 : vector<1x1x128x128xbf16> to vector<128x128xbf16>
    %cst_80 = arith.constant dense<0.000000e+00> : vector<16x128xf32>
    %243 = tpu.matmul %240, %242, %cst_80 {dimension_numbers = #tpu.dot_dimension_numbers<[1], [0], [0], [1], [0, 0, 1, 1], [], []>} : vector<16x128xbf16>, vector<128x128xbf16>, vector<16x128xf32> -> vector<16x128xf32>
    %244 = arith.truncf %243 : vector<16x128xf32> to vector<16x128xbf16>
    %cst_81 = arith.constant dense<0.000000e+00> : vector<16x128xf32>
    %245 = tpu.matmul %4, %244, %cst_81 {dimension_numbers = #tpu.dot_dimension_numbers<[1], [0], [0], [1], [0, 0, 1, 1], [], []>} : vector<16x16xbf16>, vector<16x128xbf16>, vector<16x128xf32> -> vector<16x128xf32>
    %246 = arith.truncf %245 : vector<16x128xf32> to vector<16x128xbf16>
    %cst_82 = arith.constant dense<0.000000e+00> : vector<16x384xf32>
    %247 = tpu.matmul %246, %6, %cst_82 {dimension_numbers = #tpu.dot_dimension_numbers<[1], [0], [0], [1], [0, 0, 1, 1], [], []>} : vector<16x128xbf16>, vector<128x384xbf16>, vector<16x384xf32> -> vector<16x384xf32>
    %248 = arith.addf %247, %12 : vector<16x384xf32>
    %cst_83 = arith.constant dense<0.000000e+00> : vector<16x384xf32>
    %249 = tpu.matmul %240, %8, %cst_83 {dimension_numbers = #tpu.dot_dimension_numbers<[1], [0], [0], [1], [0, 0, 1, 1], [], []>} : vector<16x128xbf16>, vector<128x384xbf16>, vector<16x384xf32> -> vector<16x384xf32>
    %250 = arith.addf %249, %16 : vector<16x384xf32>
    %251 = vector.extract_strided_slice %248 {offsets = [0, 0], sizes = [16, 128], strides = [1, 1]} : vector<16x384xf32> to vector<16x128xf32>
    %252 = vector.extract_strided_slice %250 {offsets = [0, 0], sizes = [16, 128], strides = [1, 1]} : vector<16x384xf32> to vector<16x128xf32>
    %253 = arith.addf %251, %252 : vector<16x128xf32>
    %254 = arith.negf %253 : vector<16x128xf32>
    %255 = math.exp %254 : vector<16x128xf32>
    %cst_84 = arith.constant 1.000000e+00 : f32
    %256 = vector.broadcast %cst_84 : f32 to vector<16x128xf32>
    %257 = arith.addf %256, %255 : vector<16x128xf32>
    %258 = arith.divf %256, %257 : vector<16x128xf32>
    %259 = vector.extract_strided_slice %248 {offsets = [0, 128], sizes = [16, 128], strides = [1, 1]} : vector<16x384xf32> to vector<16x128xf32>
    %260 = vector.extract_strided_slice %250 {offsets = [0, 128], sizes = [16, 128], strides = [1, 1]} : vector<16x384xf32> to vector<16x128xf32>
    %261 = arith.addf %259, %260 : vector<16x128xf32>
    %262 = arith.negf %261 : vector<16x128xf32>
    %263 = math.exp %262 : vector<16x128xf32>
    %cst_85 = arith.constant 1.000000e+00 : f32
    %264 = vector.broadcast %cst_85 : f32 to vector<16x128xf32>
    %265 = arith.addf %264, %263 : vector<16x128xf32>
    %266 = arith.divf %264, %265 : vector<16x128xf32>
    %267 = vector.extract_strided_slice %248 {offsets = [0, 256], sizes = [16, 128], strides = [1, 1]} : vector<16x384xf32> to vector<16x128xf32>
    %268 = vector.extract_strided_slice %250 {offsets = [0, 256], sizes = [16, 128], strides = [1, 1]} : vector<16x384xf32> to vector<16x128xf32>
    %269 = arith.mulf %258, %268 : vector<16x128xf32>
    %270 = arith.addf %267, %269 : vector<16x128xf32>
    %271 = math.tanh %270 : vector<16x128xf32>
    %cst_86 = arith.constant 1.000000e+00 : f32
    %272 = vector.broadcast %cst_86 : f32 to vector<16x128xf32>
    %273 = arith.subf %272, %266 : vector<16x128xf32>
    %274 = arith.mulf %273, %271 : vector<16x128xf32>
    %275 = arith.mulf %266, %239 : vector<16x128xf32>
    %276 = arith.addf %274, %275 : vector<16x128xf32>
    %277 = arith.truncf %276 : vector<16x128xf32> to vector<16x128xbf16>
    %c0_87 = arith.constant 0 : index
    %c7 = arith.constant 7 : index
    %c0_88 = arith.constant 0 : index
    %c0_89 = arith.constant 0 : index
    %278 = vector.load %arg6[%c0_87, %c7, %c0_88, %c0_89] : memref<1x8x128x128xbf16, #tpu.memory_space<vmem>>, vector<1x1x128x128xbf16>
    %279 = vector.shape_cast %278 : vector<1x1x128x128xbf16> to vector<128x128xbf16>
    %cst_90 = arith.constant dense<0.000000e+00> : vector<16x128xf32>
    %280 = tpu.matmul %277, %279, %cst_90 {dimension_numbers = #tpu.dot_dimension_numbers<[1], [0], [0], [1], [0, 0, 1, 1], [], []>} : vector<16x128xbf16>, vector<128x128xbf16>, vector<16x128xf32> -> vector<16x128xf32>
    %281 = arith.truncf %280 : vector<16x128xf32> to vector<16x128xbf16>
    %cst_91 = arith.constant dense<0.000000e+00> : vector<16x128xf32>
    %282 = tpu.matmul %4, %281, %cst_91 {dimension_numbers = #tpu.dot_dimension_numbers<[1], [0], [0], [1], [0, 0, 1, 1], [], []>} : vector<16x16xbf16>, vector<16x128xbf16>, vector<16x128xf32> -> vector<16x128xf32>
    %283 = arith.truncf %282 : vector<16x128xf32> to vector<16x128xbf16>
    %cst_92 = arith.constant dense<0.000000e+00> : vector<16x384xf32>
    %284 = tpu.matmul %283, %6, %cst_92 {dimension_numbers = #tpu.dot_dimension_numbers<[1], [0], [0], [1], [0, 0, 1, 1], [], []>} : vector<16x128xbf16>, vector<128x384xbf16>, vector<16x384xf32> -> vector<16x384xf32>
    %285 = arith.addf %284, %12 : vector<16x384xf32>
    %cst_93 = arith.constant dense<0.000000e+00> : vector<16x384xf32>
    %286 = tpu.matmul %277, %8, %cst_93 {dimension_numbers = #tpu.dot_dimension_numbers<[1], [0], [0], [1], [0, 0, 1, 1], [], []>} : vector<16x128xbf16>, vector<128x384xbf16>, vector<16x384xf32> -> vector<16x384xf32>
    %287 = arith.addf %286, %16 : vector<16x384xf32>
    %288 = vector.extract_strided_slice %285 {offsets = [0, 0], sizes = [16, 128], strides = [1, 1]} : vector<16x384xf32> to vector<16x128xf32>
    %289 = vector.extract_strided_slice %287 {offsets = [0, 0], sizes = [16, 128], strides = [1, 1]} : vector<16x384xf32> to vector<16x128xf32>
    %290 = arith.addf %288, %289 : vector<16x128xf32>
    %291 = arith.negf %290 : vector<16x128xf32>
    %292 = math.exp %291 : vector<16x128xf32>
    %cst_94 = arith.constant 1.000000e+00 : f32
    %293 = vector.broadcast %cst_94 : f32 to vector<16x128xf32>
    %294 = arith.addf %293, %292 : vector<16x128xf32>
    %295 = arith.divf %293, %294 : vector<16x128xf32>
    %296 = vector.extract_strided_slice %285 {offsets = [0, 128], sizes = [16, 128], strides = [1, 1]} : vector<16x384xf32> to vector<16x128xf32>
    %297 = vector.extract_strided_slice %287 {offsets = [0, 128], sizes = [16, 128], strides = [1, 1]} : vector<16x384xf32> to vector<16x128xf32>
    %298 = arith.addf %296, %297 : vector<16x128xf32>
    %299 = arith.negf %298 : vector<16x128xf32>
    %300 = math.exp %299 : vector<16x128xf32>
    %cst_95 = arith.constant 1.000000e+00 : f32
    %301 = vector.broadcast %cst_95 : f32 to vector<16x128xf32>
    %302 = arith.addf %301, %300 : vector<16x128xf32>
    %303 = arith.divf %301, %302 : vector<16x128xf32>
    %304 = vector.extract_strided_slice %285 {offsets = [0, 256], sizes = [16, 128], strides = [1, 1]} : vector<16x384xf32> to vector<16x128xf32>
    %305 = vector.extract_strided_slice %287 {offsets = [0, 256], sizes = [16, 128], strides = [1, 1]} : vector<16x384xf32> to vector<16x128xf32>
    %306 = arith.mulf %295, %305 : vector<16x128xf32>
    %307 = arith.addf %304, %306 : vector<16x128xf32>
    %308 = math.tanh %307 : vector<16x128xf32>
    %cst_96 = arith.constant 1.000000e+00 : f32
    %309 = vector.broadcast %cst_96 : f32 to vector<16x128xf32>
    %310 = arith.subf %309, %303 : vector<16x128xf32>
    %311 = arith.mulf %310, %308 : vector<16x128xf32>
    %312 = arith.mulf %303, %276 : vector<16x128xf32>
    %313 = arith.addf %311, %312 : vector<16x128xf32>
    %c0_97 = arith.constant 0 : index
    %c0_98 = arith.constant 0 : index
    %314 = vector.load %arg16[%c0_97, %c0_98] : memref<16x128xf32, #tpu.memory_space<vmem>>, vector<16x128xf32>
    %315 = arith.addf %314, %313 : vector<16x128xf32>
    %c0_99 = arith.constant 0 : index
    %c0_100 = arith.constant 0 : index
    %316 = vector.load %arg16[%c0_99, %c0_100] : memref<16x128xf32, #tpu.memory_space<vmem>>, vector<16x128xf32>
    tpu.vector_store %arg16[%c0_99, %c0_100], %315 {strides = array<i32>} : memref<16x128xf32, #tpu.memory_space<vmem>>, vector<16x128xf32>,
    %c11_i32 = arith.constant 11 : i32
    %317 = arith.cmpi eq, %arg0, %c11_i32 : i32
    %318 = arith.extui %317 : i1 to i32
    %c0_i32_101 = arith.constant 0 : i32
    %319 = arith.cmpi ne, %318, %c0_i32_101 : i32
    scf.if %319 {
      %c0_102 = arith.constant 0 : index
      %c0_103 = arith.constant 0 : index
      %320 = vector.load %arg11[%c0_102, %c0_103] : memref<8x16xf32, #tpu.memory_space<vmem>>, vector<8x16xf32>
      %c0_104 = arith.constant 0 : index
      %c0_105 = arith.constant 0 : index
      %321 = vector.load %arg16[%c0_104, %c0_105] : memref<16x128xf32, #tpu.memory_space<vmem>>, vector<16x128xf32>
      %cst_106 = arith.constant dense<0.000000e+00> : vector<8x128xf32>
      %322 = tpu.matmul %320, %321, %cst_106 {dimension_numbers = #tpu.dot_dimension_numbers<[1], [0], [0], [1], [0, 0, 1, 1], [], []>} : vector<8x16xf32>, vector<16x128xf32>, vector<8x128xf32> -> vector<8x128xf32>
      %c0_107 = arith.constant 0 : index
      %c0_108 = arith.constant 0 : index
      %323 = vector.load %arg12[%c0_107, %c0_108] : memref<128x128xf32, #tpu.memory_space<vmem>>, vector<128x128xf32>
      %cst_109 = arith.constant dense<0.000000e+00> : vector<8x128xf32>
      %324 = tpu.matmul %322, %323, %cst_109 {dimension_numbers = #tpu.dot_dimension_numbers<[1], [0], [0], [1], [0, 0, 1, 1], [], []>} : vector<8x128xf32>, vector<128x128xf32>, vector<8x128xf32> -> vector<8x128xf32>
      %c0_110 = arith.constant 0 : index
      %c0_111 = arith.constant 0 : index
      %325 = vector.load %arg13[%c0_110, %c0_111] : memref<1x128xf32, #tpu.memory_space<vmem>>, vector<1x128xf32>
      %326 = vector.broadcast %325 : vector<1x128xf32> to vector<8x128xf32>
      %327 = arith.addf %324, %326 : vector<8x128xf32>
      %c0_112 = arith.constant 0 : index
      %c0_113 = arith.constant 0 : index
      %328 = vector.load %arg14[%c0_112, %c0_113] : memref<8x128xf32, #tpu.memory_space<vmem>>, vector<8x128xf32>
      tpu.vector_store %arg14[%c0_112, %c0_113], %327 {strides = array<i32>} : memref<8x128xf32, #tpu.memory_space<vmem>>, vector<8x128xf32>,
    } else {
    }
    return
  }
  func.func @transform_0(%arg0: i32, %arg1: memref<12xi32, #tpu.memory_space<smem>>) -> (i32, i32) {
    %c0_i32 = arith.constant 0 : i32
    %c0_i32_0 = arith.constant 0 : i32
    %c0_i32_1 = arith.constant 0 : i32
    return %c0_i32, %c0_i32_0 : i32, i32
  }
  func.func @transform_1(%arg0: i32, %arg1: memref<12xi32, #tpu.memory_space<smem>>) -> (i32, i32) {
    %c0_i32 = arith.constant 0 : i32
    %c0_i32_0 = arith.constant 0 : i32
    %c0_i32_1 = arith.constant 0 : i32
    return %c0_i32, %c0_i32_0 : i32, i32
  }
  func.func @transform_2(%arg0: i32, %arg1: memref<12xi32, #tpu.memory_space<smem>>) -> (i32, i32) {
    %c0_i32 = arith.constant 0 : i32
    %c0_i32_0 = arith.constant 0 : i32
    %c0_i32_1 = arith.constant 0 : i32
    return %c0_i32, %c0_i32_0 : i32, i32
  }
  func.func @transform_3(%arg0: i32, %arg1: memref<12xi32, #tpu.memory_space<smem>>) -> (i32, i32, i32) {
    %c0_i32 = arith.constant 0 : i32
    %c0_i32_0 = arith.constant 0 : i32
    %c0_i32_1 = arith.constant 0 : i32
    return %arg0, %c0_i32, %c0_i32_0 : i32, i32, i32
  }
  func.func @transform_4(%arg0: i32, %arg1: memref<12xi32, #tpu.memory_space<smem>>) -> (i32, i32, i32, i32) {
    %0 = arith.index_cast %arg0 : i32 to index
    %1 = memref.load %arg1[%0] : memref<12xi32, #tpu.memory_space<smem>>
    %c0_i32 = arith.constant 0 : i32
    %c0_i32_0 = arith.constant 0 : i32
    %c0_i32_1 = arith.constant 0 : i32
    %c0_i32_2 = arith.constant 0 : i32
    return %1, %c0_i32, %c0_i32_0, %c0_i32_1 : i32, i32, i32, i32
  }
  func.func @transform_5(%arg0: i32, %arg1: memref<12xi32, #tpu.memory_space<smem>>) -> (i32, i32, i32) {
    %0 = arith.index_cast %arg0 : i32 to index
    %1 = memref.load %arg1[%0] : memref<12xi32, #tpu.memory_space<smem>>
    %c0_i32 = arith.constant 0 : i32
    %c0_i32_0 = arith.constant 0 : i32
    %c0_i32_1 = arith.constant 0 : i32
    return %1, %c0_i32, %c0_i32_0 : i32, i32, i32
  }
  func.func @transform_6(%arg0: i32, %arg1: memref<12xi32, #tpu.memory_space<smem>>) -> (i32, i32, i32) {
    %0 = arith.index_cast %arg0 : i32 to index
    %1 = memref.load %arg1[%0] : memref<12xi32, #tpu.memory_space<smem>>
    %c0_i32 = arith.constant 0 : i32
    %c0_i32_0 = arith.constant 0 : i32
    %c0_i32_1 = arith.constant 0 : i32
    return %1, %c0_i32, %c0_i32_0 : i32, i32, i32
  }
  func.func @transform_7(%arg0: i32, %arg1: memref<12xi32, #tpu.memory_space<smem>>) -> (i32, i32, i32) {
    %0 = arith.index_cast %arg0 : i32 to index
    %1 = memref.load %arg1[%0] : memref<12xi32, #tpu.memory_space<smem>>
    %c0_i32 = arith.constant 0 : i32
    %c0_i32_0 = arith.constant 0 : i32
    %c0_i32_1 = arith.constant 0 : i32
    return %1, %c0_i32, %c0_i32_0 : i32, i32, i32
  }
  func.func @transform_8(%arg0: i32, %arg1: memref<12xi32, #tpu.memory_space<smem>>) -> (i32, i32, i32) {
    %0 = arith.index_cast %arg0 : i32 to index
    %1 = memref.load %arg1[%0] : memref<12xi32, #tpu.memory_space<smem>>
    %c0_i32 = arith.constant 0 : i32
    %c0_i32_0 = arith.constant 0 : i32
    %c0_i32_1 = arith.constant 0 : i32
    return %1, %c0_i32, %c0_i32_0 : i32, i32, i32
  }
  func.func @transform_9(%arg0: i32, %arg1: memref<12xi32, #tpu.memory_space<smem>>) -> (i32, i32) {
    %c0_i32 = arith.constant 0 : i32
    %c0_i32_0 = arith.constant 0 : i32
    %c0_i32_1 = arith.constant 0 : i32
    return %c0_i32, %c0_i32_0 : i32, i32
  }
  func.func @transform_10(%arg0: i32, %arg1: memref<12xi32, #tpu.memory_space<smem>>) -> (i32, i32) {
    %c0_i32 = arith.constant 0 : i32
    %c0_i32_0 = arith.constant 0 : i32
    %c0_i32_1 = arith.constant 0 : i32
    return %c0_i32, %c0_i32_0 : i32, i32
  }
  func.func @transform_11(%arg0: i32, %arg1: memref<12xi32, #tpu.memory_space<smem>>) -> (i32, i32) {
    %c0_i32 = arith.constant 0 : i32
    %c0_i32_0 = arith.constant 0 : i32
    %c0_i32_1 = arith.constant 0 : i32
    return %c0_i32, %c0_i32_0 : i32, i32
  }
  func.func @transform_12(%arg0: i32, %arg1: memref<12xi32, #tpu.memory_space<smem>>) -> (i32, i32) {
    %c0_i32 = arith.constant 0 : i32
    %c0_i32_0 = arith.constant 0 : i32
    %c0_i32_1 = arith.constant 0 : i32
    return %c0_i32, %c0_i32_0 : i32, i32
  }
}

</mosaic_0001>

<bundles_post_ra>
// kernel: tpu_custom_call.1
= control target key start
LH: loop header
LB: loop body
LE: loop exit
PB: predicated region body
PF: predicated region fallthrough
CT: control target
= control target key end

     0   :  { %s9604_s0 = inlined_call_operand.hbm [shape: s32[12], index: 0, kind: input, shape index: {}]   ;;  %s9605_s1 = inlined_call_operand.hbm [shape: f32[16,384], index: 1, kind: input, shape index: {}]   ;;  %s9606_s2 = inlined_call_operand.hbm [shape: f32[384,128], index: 2, kind: input, shape index: {}]   ;;  %s9607_s3 = inlined_call_operand.hbm [shape: f32[1,128], index: 3, kind: input, shape index: {}]   ;;  %s9608_s4 = inlined_call_operand.hbm [shape: bf16[12,16,16], index: 4, kind: input, shape index: {}]   ;;  %s9609_s5 = inlined_call_operand.hbm [shape: bf16[13,8,128,128], index: 5, kind: input, shape index: {}]   ;;  %s9610_s6 = inlined_call_operand.hbm [shape: bf16[13,128,384], index: 6, kind: input, shape index: {}]   ;;  %s9611_s7 = inlined_call_operand.hbm [shape: bf16[13,128,384], index: 7, kind: input, shape index: {}]   ;;  %s9612_s8 = inlined_call_operand.hbm [shape: f32[13,1,384], index: 8, kind: input, shape index: {}]   ;;  %s9613_s9 = inlined_call_operand.hbm [shape: f32[13,1,384], index: 9, kind: input, shape index: {}]   ;;  %s9614_s10 = inlined_call_operand.hbm [shape: f32[8,16], index: 10, kind: input, shape index: {}]   ;;  %s9615_s11 = inlined_call_operand.hbm [shape: f32[128,128], index: 11, kind: input, shape index: {}]   ;;  %s9616_s12 = inlined_call_operand.hbm [shape: f32[1,128], index: 12, kind: input, shape index: {}]   ;;  %s9617_s13 = inlined_call_operand.hbm [shape: f32[8,128], index: 13, kind: output, shape index: {}]  }
   0x1   :  { %9743 = sst [smem:[#allocation82_spill]] %s9605_s1  ;;  %s6674_s27 = scalar_lea.hbm %s9604_s0, 16 }
   0x2   :  { %9744 = sst [smem:[#allocation83_spill]] %s9606_s2  ;;  %p6675_p0 = scmp.ne.s32.totalorder %s9604_s0, %s6674_s27 }
   0x3   :  { %9745 = sst [smem:[#allocation84_spill]] %s9607_s3  ;;  %p6678_p1 = scmp.lt.u32.totalorder %s6674_s27, %s9604_s0 }
   0x4   :  { %9746 = sst [smem:[#allocation85_spill]] %s9608_s4 }
   0x5   :  { %9747 = sst [smem:[#allocation86_spill]] %s9609_s5  ;;  %p6680_p2 = pnand %p6678_p1, %p6675_p0 }
   0x6   :  { %9748 = sst [smem:[#allocation87_spill]] %s9610_s6 }
   0x7   :  { %9749 = sst [smem:[#allocation88_spill]] %s9611_s7 }
   0x8   :  { %9750 = sst [smem:[#allocation89_spill]] %s9612_s8 }
   0x9   :  { %9751 = sst [smem:[#allocation90_spill]] %s9613_s9 }
   0xa   :  { %9752 = sst [smem:[#allocation91_spill]] %s9614_s10 }
   0xb   :  { %9753 = sst [smem:[#allocation92_spill]] %s9615_s11 }
   0xc   :  { %9754 = sst [smem:[#allocation93_spill]] %s9616_s12 }
   0xd   :  { %9755 = sst [smem:[#allocation94_spill]] %s9617_s13 }
   0xe   :  { %6683 = shalt.err (!%p6680_p2)  }
   0xf   :  { %s7256_s15 = smov [#allocation5]  }
  0x10   :  { %19 = dma.hbm_to_smem %s9604_s0, 16, %s7256_s15, [#allocation4] }
  0x11   :  { %7134 = dma.done.wait [#allocation4], 16 }
  0x12   :  { %7135 = vsyncadd [#allocation4], 4294967280 }
  0x13   :  { %21 = sfence }
  0x14   :  { %22 = vsyncpa [#allocation7], 0 }
  0x15   :  { %23 = vsyncpa [#allocation10], 0 }
  0x16   :  { %24 = vsyncpa [#allocation13], 0 }
  0x17   :  { %26 = vsyncpa [#allocation13 + $0x1], 0 }
  0x18   :  { %27 = vsyncpa [#allocation16], 0 }
  0x19   :  { %29 = vsyncpa [#allocation16 + $0x1], 0 }
  0x1a   :  { %30 = vsyncpa [#allocation19], 0 }
  0x1b   :  { %32 = vsyncpa [#allocation19 + $0x1], 0 }
  0x1c   :  { %33 = vsyncpa [#allocation22], 0 }
  0x1d   :  { %34 = vsyncpa [#allocation25], 0 }
  0x1e   :  { %35 = vsyncpa [#allocation8], 0  ;;  %s7367_s18 = smov 0   ;;  %s7369_s19 = smov 0  }
  0x1f   :  { %s7371_s20 = smov 0   ;;  %s7373_s0 = smov 0  }
  0x20   :  { %s7375_s21 = smov 0   ;;  %s7377_s22 = smov 0  }
  0x21   :  { %s7379_s23 = smov 0   ;;  %s7381_s24 = smov 0  }
  0x22   :  { %s7383_s25 = smov 0   ;;  %s7385_s26 = smov 0  }
  0x23   :  { %s7387_s27 = smov 0   ;;  %s7389_s28 = smov 0  }
  0x24   :  { %s7391_s29 = smov 0   ;;  %s7393_s30 = smov 0  }
  0x25   :  { %s7395_s14 = smov 0   ;;  %s7397_s15 = smov 0  }
  0x26   :  { %s7399_s16 = smov 0   ;;  %s7401_s17 = smov 0  }
  0x27   :  { %s7403_s13 = smov 0  }
  0x28 LB: > { %9756 = sst [smem:[#allocation49_spill]] %s7182_s18  ;;  %s7257_s9 = smov [#allocation9]   ;;  %s7254_s13 = sphi %s7403_s13, %s9995_s13   ;;  %s7250_s17 = sphi %s7401_s17, %s10010_s17   ;;  %s7246_s16 = sphi %s7399_s16, %s10020_s16   ;;  %s7242_s15 = sphi %s7397_s15, %s10019_s15   ;;  %s7238_s14 = sphi %s7395_s14, %s10018_s14   ;;  %s7234_s30 = sphi %s7393_s30, %s10007_s30   ;;  %s7230_s29 = sphi %s7391_s29, %s10006_s29   ;;  %s7226_s28 = sphi %s7389_s28, %s10017_s28   ;;  %s7222_s27 = sphi %s7387_s27, %s10016_s27   ;;  %s7218_s26 = sphi %s7385_s26, %s10015_s26   ;;  %s7214_s25 = sphi %s7383_s25, %s10014_s25   ;;  %s7210_s24 = sphi %s7381_s24, %s10002_s24   ;;  %s7206_s23 = sphi %s7379_s23, %s10001_s23   ;;  %s7202_s22 = sphi %s7377_s22, %s10000_s22   ;;  %s7198_s21 = sphi %s7375_s21, %s10013_s21   ;;  %s7194_s0 = sphi %s7373_s0, %s9998_s0   ;;  %s7190_s20 = sphi %s7371_s20, %s10011_s20   ;;  %s7186_s19 = sphi %s7369_s19, %s10009_s19   ;;  %s7182_s18 = sphi %s7367_s18, %s9996_s18  }
  0x29   : > { %9757 = sst [smem:[#allocation50_spill]] %s7186_s19  ;;  %s384_s7 = sshll.u32 %s7257_s9, 4  ;;  %s7469_s7 = int_to_ptr.vmem [resolvable:$true] %s384_s7 }
  0x2a   : > { %9758 = sst [smem:[#allocation51_spill]] %s7190_s20  ;;  %s7463_s18 = sadd.s32 4294967295, %s7254_s13  }
  0x2b   : > { %9759 = sst [smem:[#allocation52_spill]] %s7198_s21  ;;  %p4584_p3 = scmp.ge.s32.totalorder %s7254_s13, 1 }
  0x2c   : > { %9760 = sst [smem:[#allocation53_spill]] %s7202_s22  ;;  %p9636_p4 = scmp.eq.s32.totalorder %s7463_s18, 0 }
  0x2d   : > { %9761 = sst [smem:[#allocation54_spill]] %s7206_s23  ;;  %p359_p5 = scmp.lt.s32.totalorder %s7254_s13, 13 }
  0x2e   : > { %9762 = sst [smem:[#allocation55_spill]] %s7210_s24  ;;  %s7258_s19 = smov [#allocation21]  }
  0x2f   : > { %9763 = sst [smem:[#allocation56_spill]] %s7214_s25  ;;  %p7471_p7 = pnand %p4584_p3, %p359_p5 }
  0x30   : > { %9764 = sst [smem:[#allocation57_spill]] %s7226_s28  ;;  %s409_s9 = sshll.u32 %s7258_s19, 4  ;;  %s7483_s9 = int_to_ptr.vmem [resolvable:$true] %s409_s9 }
  0x31   : > { %9765 = sst [smem:[#allocation58_spill]] %s7230_s29  ;;  %p6049_p8 = pneg %p7471_p7 }
  0x32   : > { %9766 = sst [smem:[#allocation59_spill]] %s7234_s30  ;;  %s9772_s2 = sld [smem:[#allocation83_spill]] }
  0x33   : > { %9767 = sst [smem:[#allocation60_spill]] %s7238_s14  ;;  %p7479_p9 = pnand %p6049_p8, %p9636_p4 }
  0x34   : > { %9768 = sst [smem:[#allocation61_spill]] %s7250_s17 }
  0x35   : > { %s9769_s20 = scalar_select %p7471_p7, 1, 0 }
  0x36   : > { %s9771_s5 = scalar_select %p7479_p9, 1, 0 }
  0x37   : > { %9770 = sst [smem:[#allocation62_spill]] %s9769_s20  ;;  %p7493_p11 = pneg %p7479_p9 }
  0x38   : > { %s6684_s24 = scalar_lea.hbm %s9772_s2, 6144 }
  0x39   : > { %p6685_p10 = scmp.ne.s32.totalorder %s9772_s2, %s6684_s24  ;;  %p6691_p0 = scmp.lt.u32.totalorder %s6684_s24, %s9772_s2 }
  0x3a   : > { %s9773_s20 = scalar_select %p7493_p11, 1, 0 }
  0x3b   : > { %p6687_p12 = pnand %p7493_p11, %p6685_p10 }
  0x3d   : > { %p6688_p13 = pneg %p6687_p12 }
  0x3f   : > { %p6693_p1 = pnand %p6691_p0, %p6688_p13 }
  0x41   : > { %6696 = shalt.err (!%p6693_p1)
}
  0x42   : > { %s6697_s23 = scalar_lea.vmem %s7469_s7, 6144  ;;  %p6705_p8 = scmp.lt.s32.totalorder %s7469_s7, %s7469_s7 }
  0x43   : > { %p6698_p2 = scmp.ne.s32.totalorder %s7469_s7, %s6697_s23  ;;  %p6706_p6 = scmp.lt.s32.totalorder %s6697_s23, %s6697_s23 }
  0x45   : > { %p6700_p3 = pnand %p6698_p2, %p7493_p11  ;;  %p6707_p10 = por %p6706_p6, %p6705_p8 }
  0x47   : > { %p6701_p5 = pneg %p6700_p3 }
  0x49   : > { %p6708_p12 = pnand %p6707_p10, %p6701_p5 }
  0x4b   : > { %6711 = shalt.err (!%p6708_p12)
}
  0x4c   : > { %s9633_s25 = smov 128   ;;  %s9634_s24 = smov 8  }
  0x4d   : > { %6055 = dma.hbm_to_vmem [thread:$0]  (!%p7479_p9), %s9772_s2, 6144, %s7469_s7, [#allocation10], %s9633_s25, %s9633_s25, %s9634_s24  }
  0x4e   : > { %s9774_s10 = sld [smem:[#allocation91_spill]] }
  0x54   : > { %s6712_s23 = scalar_lea.hbm %s9774_s10, 128 }
  0x55   : > { %p6713_p6 = scmp.ne.s32.totalorder %s9774_s10, %s6712_s23  ;;  %p6719_p1 = scmp.lt.u32.totalorder %s6712_s23, %s9774_s10 }
  0x57   : > { %p6715_p13 = pnand %p6713_p6, %p7493_p11 }
  0x59   : > { %p6716_p0 = pneg %p6715_p13 }
  0x5b   : > { %p6721_p2 = pnand %p6719_p1, %p6716_p0 }
  0x5d   : > { %6724 = shalt.err (!%p6721_p2)
}
  0x5e   : > { %s6725_s7 = scalar_lea.vmem %s7483_s9, 128  ;;  %p6733_p10 = scmp.lt.s32.totalorder %s7483_s9, %s7483_s9 }
  0x5f   : > { %p6726_p3 = scmp.ne.s32.totalorder %s7483_s9, %s6725_s7  ;;  %p6734_p12 = scmp.lt.s32.totalorder %s6725_s7, %s6725_s7 }
  0x61   : > { %p6728_p5 = pnand %p6726_p3, %p7493_p11  ;;  %p6735_p6 = por %p6734_p12, %p6733_p10 }
  0x63   : > { %p6729_p8 = pneg %p6728_p5 }
  0x65   : > { %p6736_p13 = pnand %p6735_p6, %p6729_p8 }
  0x67   : > { %6739 = shalt.err (!%p6736_p13)
}
  0x68   : > { %6061 = dma.hbm_to_vmem [thread:$0]  (!%p7479_p9), %s9774_s10, 128, %s7483_s9, [#allocation22]  }
  0x69   : > { %s7541_s11 = sadd.s32 1, %s7254_s13   ;;  %s111_s12 = sadd.s32 1, %s7250_s17 }
  0x6a   : > { %9775 = sst [smem:[#allocation63_spill]] %s7541_s11  ;;  %s108_s29 = ssub.s32 %s7254_s13, %s7541_s11 }
  0x6b   : > { %p118_p0 = scmp.ne.s32.totalorder %s7250_s17, %s7246_s16  ;;  %p109_p1 = scmp.eq.s32.totalorder %s108_s29, 0 }
  0x6c   : > { %p9637_p2 = scmp.eq.s32.totalorder %s7254_s13, 0  ;;  %p124_p3 = scmp.ne.s32.totalorder %s7246_s16, %s7242_s15 }
  0x6d   : > { %p9635_p5 = scmp.lt.s32.totalorder %s7254_s13, 12  ;;  %s7564_s9 = sand.u32 1, %s7254_s13  }
  0x6e   : > { %s7553_s30 = scalar_select %p109_p1, %s7250_s17, %s111_s12  }
  0x6f   : > { %p120_p8 = por %p9637_p2, %p118_p0  ;;  %p7559_p10 = por %p9636_p4, %p124_p3 }
  0x70   : > { %9776 = sst [smem:[#allocation64_spill]] %s7553_s30  ;;  %s446_s19 = sand.u32 1, %s7250_s17  }
  0x71   : > { %s9777_s14 = scalar_select %p7559_p10, 1, 0 }
  0x72   : > { %s4592_s23 = sshll.u32 %s446_s19, 3  ;;  %s4885_s7 = sshll.u32 %s7254_s13, 7 }
  0x73   : > { %s9778_s4 = sld [smem:[#allocation85_spill]]  ;;  %s448_s12 = scalar_lea.vmem [#allocation12], %s4592_s23 }
  0x74   : > { %s455_s29 = sshll.u32 %s448_s12, 4  ;;  %p7577_p12 = pnand %p9635_p5, %p120_p8  ;;  %s7573_s29 = int_to_ptr.vmem [resolvable:$true] %s455_s29 }
  0x76   : > { %p6742_p13 = pneg %p7577_p12 }
  0x79   : > { %s7571_s15 = scalar_lea.hbm %s9778_s4, %s4885_s7  ;;  %s6745_s3 = scalar_lea.hbm %s9778_s4, 1536 }
  0x7a   : > { %s6740_s24 = scalar_lea.hbm %s7571_s15, 128  ;;  %p6746_p3 = scmp.lt.u32.totalorder %s7571_s15, %s9778_s4 }
  0x7b   : > { %p6741_p6 = scmp.ne.s32.totalorder %s7571_s15, %s6740_s24  ;;  %p6747_p8 = scmp.lt.u32.totalorder %s6745_s3, %s6740_s24 }
  0x7c   : > { %p6749_p4 = scmp.lt.u32.totalorder %s6740_s24, %s7571_s15 }
  0x7d   : > { %p6743_p0 = pnand %p6742_p13, %p6741_p6  ;;  %p6748_p5 = por %p6747_p8, %p6746_p3 }
  0x7f   : > { %p6744_p1 = pneg %p6743_p0  ;;  %p6750_p2 = por %p6749_p4, %p6748_p5 }
  0x81   : > { %p6751_p10 = pnand %p6750_p2, %p6744_p1 }
  0x83   : > { %6754 = shalt.err (!%p6751_p10)
}
  0x84   : > { %s6755_s19 = scalar_lea.vmem %s7573_s29, 128  ;;  %s7261_s23 = smov [#allocation12]  }
  0x85   : > { %p6756_p6 = scmp.ne.s32.totalorder %s7573_s29, %s6755_s19  ;;  %s6760_s7 = sshll.u32 %s7261_s23, 4  ;;  %s6761_s7 = int_to_ptr.vmem [resolvable:$false] %s6760_s7 }
  0x86   : > { %s6762_s8 = scalar_lea.vmem %s6761_s7, 256  ;;  %p6763_p9 = scmp.lt.s32.totalorder %s7573_s29, %s6761_s7 }
  0x87   : > { %p6758_p0 = pnand %p6756_p6, %p6742_p13  ;;  %p6764_p3 = scmp.lt.s32.totalorder %s6762_s8, %s6755_s19 }
  0x89   : > { %p6759_p7 = pneg %p6758_p0  ;;  %p6765_p8 = por %p6764_p3, %p6763_p9 }
  0x8b   : > { %p6766_p4 = pnand %p6765_p8, %p6759_p7 }
  0x8d   : > { %6769 = shalt.err (!%p6766_p4)
}
  0x8e   : > { %s9642_s24 = smov 64   ;;  %s9643_s3 = smov 4  }
  0x8f   : > { %s9780_s19 = scalar_lea.sflag [#allocation13], %s7564_s9  ;;  %s162_s12 = sld [smem:[#allocation5 + %s7254_s13]] }
  0x90   : > { %6071 = dma.hbm_to_vmem [thread:$0]  (!%p7577_p12), %s7571_s15, 128, %s7573_s29, %s9780_s19, %s9642_s24, %s9642_s24, %s9643_s3  }
  0x91   : > { %s163_s23 = sld [smem:[#allocation5 + %s7541_s11]]  ;;  %s167_s7 = sadd.s32 1, %s7226_s28 }
  0x92   : > { %p174_p7 = scmp.ne.s32.totalorder %s7226_s28, %s7222_s27  ;;  %p180_p9 = scmp.ne.s32.totalorder %s7222_s27, %s7218_s26 }
  0x93   : > { %s489_s8 = sand.u32 1, %s7226_s28   ;;  %p9781_p2 = scmp.eq.s32.totalorder %s7254_s13, 0 }
  0x94   : > { %p9783_p10 = scmp.eq.s32.totalorder %s7463_s18, 0  ;;  %s5987_s29 = smul.u32 192, %s489_s8 }
  0x95   : > { %p7622_p5 = por %p174_p7, %p9781_p2  ;;  %p9786_p1 = scmp.lt.s32.totalorder %s7254_s13, 12 }
  0x96   : > { %p7628_p12 = por %p180_p9, %p9783_p10  ;;  %s491_s24 = scalar_lea.vmem [#allocation15], %s5987_s29 }
  0x97   : > { %s6015_s26 = scalar_select %p7622_p5, [#allocation5], [#allocation28] }
  0x98   : > { %s9784_s15 = scalar_select %p7628_p12, 1, 0 }
  0x99   : > { %s164_s19 = ssub.s32 %s162_s12, %s163_s23  ;;  %s499_s3 = sshll.u32 %s491_s24, 4  ;;  %s7644_s3 = int_to_ptr.vmem [resolvable:$true] %s499_s3 }
  0x9a   : > { %p165_p13 = scmp.eq.s32.totalorder %s164_s19, 0  ;;  %s10022_s26 = smov (!%p9786_p1, %s6015_s26), [#allocation33] }
  0x9b   : > { %s6016_s2 = scalar_select %p7622_p5, %s7254_s13, 0 }
  0x9c   : > { %s7638_s4 = scalar_select %p165_p13, %s7226_s28, %s167_s7  }
  0x9d   : > { %p9787_p6 = pmov %p9786_p1  ;;  %p9788_p0 = pmov %p9786_p1 }
  0x9e   : > { %9785 = sst [smem:[#allocation65_spill]] %s7638_s4  ;;  %p230_p8 = scmp.ne.s32.totalorder %s7202_s22, %s7198_s21 }
  0x9f   : > { %s10024_s2 = smov (!%p9787_p6, %s6016_s2), 0  ;;  %p7650_p3 = pnand %p9788_p0, %p7622_p5 }
  0xa0   : > { %s492_s24 = sld [smem:[%s10022_s26 + %s10024_s2]]  ;;  %p9791_p7 = pmov %p9781_p2 }
  0xa1   : > { %s7655_s23 = sld [smem:[#allocation5 + %s7254_s13]]  ;;  %p6772_p5 = pneg %p7650_p3 }
  0xa2   : > { %s7658_s8 = sld [smem:[#allocation5 + %s7541_s11]]  ;;  %p7672_p9 = por %p230_p8, %p9791_p7 }
  0xa3   : > { %s9790_s6 = sld [smem:[#allocation87_spill]] }
  0xa6   : > { %s5988_s29 = smul.u32 3072, %s492_s24 }
  0xa9   : > { %s7668_s25 = scalar_lea.hbm %s9790_s6, %s5988_s29  ;;  %s6775_s29 = scalar_lea.hbm %s9790_s6, 39936 }
  0xaa   : > { %s6770_s30 = scalar_lea.hbm %s7668_s25, 3072  ;;  %p6776_p1 = scmp.lt.u32.totalorder %s7668_s25, %s9790_s6 }
  0xab   : > { %p6771_p2 = scmp.ne.s32.totalorder %s7668_s25, %s6770_s30  ;;  %p6777_p6 = scmp.lt.u32.totalorder %s6775_s29, %s6770_s30 }
  0xac   : > { %p6779_p8 = scmp.lt.u32.totalorder %s6770_s30, %s7668_s25 }
  0xad   : > { %p6773_p10 = pnand %p6772_p5, %p6771_p2  ;;  %p6778_p0 = por %p6777_p6, %p6776_p1 }
  0xaf   : > { %p6774_p13 = pneg %p6773_p10  ;;  %p6780_p7 = por %p6779_p8, %p6778_p0 }
  0xb1   : > { %p6781_p4 = pnand %p6780_p7, %p6774_p13 }
  0xb3   : > { %6784 = shalt.err (!%p6781_p4)
}
  0xb4   : > { %s6785_s26 = scalar_lea.vmem %s7644_s3, 3072  ;;  %s7264_s10 = smov [#allocation15]  }
  0xb5   : > { %p6786_p2 = scmp.ne.s32.totalorder %s7644_s3, %s6785_s26  ;;  %s6790_s24 = sshll.u32 %s7264_s10, 4  ;;  %s6791_s24 = int_to_ptr.vmem [resolvable:$false] %s6790_s24 }
  0xb6   : > { %s6792_s7 = scalar_lea.vmem %s6791_s24, 6144  ;;  %p6793_p11 = scmp.lt.s32.totalorder %s7644_s3, %s6791_s24 }
  0xb7   : > { %p6788_p10 = pnand %p6786_p2, %p6772_p5  ;;  %p6794_p1 = scmp.lt.s32.totalorder %s6792_s7, %s6785_s26 }
  0xb9   : > { %p6789_p12 = pneg %p6788_p10  ;;  %p6795_p6 = por %p6794_p1, %p6793_p11 }
  0xbb   : > { %p6796_p0 = pnand %p6795_p6, %p6789_p12 }
  0xbd   : > { %6799 = shalt.err (!%p6796_p0)
}
  0xbe   : > { %s9648_s30 = smov 192   ;;  %s9649_s26 = smov 12  }
  0xbf   : > { %s9793_s29 = scalar_lea.sflag [#allocation16], %s7564_s9  ;;  %p9794_p11 = scmp.eq.s32.totalorder %s7463_s18, 0 }
  0xc0   : > { %6081 = dma.hbm_to_vmem [thread:$0]  (!%p7650_p3), %s7668_s25, 3072, %s7644_s3, %s9793_s29, %s9648_s30, %s9648_s30, %s9649_s26  }
  0xc1   : > { %p9795_p12 = scmp.ne.s32.totalorder %s7198_s21, %s7194_s0  ;;  %s533_s10 = sand.u32 1, %s7202_s22  }
  0xc2   : > { %s220_s24 = ssub.s32 %s7655_s23, %s7658_s8  ;;  %s5991_s7 = smul.u32 3, %s533_s10 }
  0xc3   : > { %p7712_p4 = por %p9795_p12, %p9794_p11  ;;  %p221_p5 = scmp.eq.s32.totalorder %s220_s24, 0 }
  0xc4   : > { %p9798_p13 = scmp.lt.s32.totalorder %s7254_s13, 12  ;;  %s9800_s6 = sadd.s32 1, %s7202_s22 }
  0xc5   : > { %s9796_s19 = scalar_select %p7712_p4, 1, 0 }
  0xc6   : > { %p7723_p8 = pnand %p9798_p13, %p7672_p9  ;;  %p9802_p3 = pmov %p9798_p13 }
  0xc7   : > { %9797 = sst [smem:[#allocation66_spill]] %s9796_s19  ;;  %s535_s23 = scalar_lea.vmem [#allocation18], %s5991_s7 }
  0xc8   : > { %s9799_s12 = scalar_select %p7723_p8, 1, 0 }
  0xc9   : > { %s7730_s17 = scalar_select %p221_p5, %s7202_s22, %s9800_s6  }
  0xca   : > { %s6021_s0 = scalar_select %p7672_p9, [#allocation5], [#allocation30] }
  0xcb   : > { %9801 = sst [smem:[#allocation67_spill]] %s7730_s17  ;;  %p9803_p7 = pmov %p9802_p3 }
  0xcc   : > { %s6022_s3 = scalar_select %p7672_p9, %s7254_s13, 0 }
  0xcd   : > { %s10026_s0 = smov (!%p9802_p3, %s6021_s0), [#allocation35]  ;;  %s544_s8 = sshll.u32 %s535_s23, 4  ;;  %s7743_s8 = int_to_ptr.vmem [resolvable:$true] %s544_s8 }
  0xce   : > { %s10028_s3 = smov (!%p9803_p7, %s6022_s3), 0  ;;  %s7267_s29 = smov [#allocation6]  }
  0xcf   : > { %s7741_s25 = sld [smem:[%s10026_s0 + %s10028_s3]]  ;;  %s371_s10 = sshll.u32 %s7267_s29, 4  ;;  %s372_s10 = int_to_ptr.vmem [resolvable:$true] %s371_s10 }
  0xd0   : > { %s9804_s1 = sld [smem:[#allocation82_spill]]  ;;  %p9805_p2 = scmp.ne.s32.totalorder %s9773_s20, 0 }
  0xd6   : > { %s6800_s30 = scalar_lea.hbm %s9804_s1, 768 }
  0xd7   : > { %p6801_p9 = scmp.ne.s32.totalorder %s9804_s1, %s6800_s30  ;;  %p6807_p6 = scmp.lt.u32.totalorder %s6800_s30, %s9804_s1 }
  0xd9   : > { %p6803_p10 = pnand %p6801_p9, %p9805_p2 }
  0xdb   : > { %p6804_p1 = pneg %p6803_p10 }
  0xdd   : > { %p6809_p0 = pnand %p6807_p6, %p6804_p1 }
  0xdf   : > { %6812 = shalt.err (!%p6809_p0)
}
  0xe0   : > { %s6813_s0 = scalar_lea.vmem %s372_s10, 768  ;;  %p6821_p13 = scmp.lt.s32.totalorder %s372_s10, %s372_s10 }
  0xe1   : > { %p6814_p11 = scmp.ne.s32.totalorder %s372_s10, %s6813_s0  ;;  %p6822_p3 = scmp.lt.s32.totalorder %s6813_s0, %s6813_s0 }
  0xe3   : > { %p6816_p12 = pnand %p6814_p11, %p9805_p2  ;;  %p6823_p7 = por %p6822_p3, %p6821_p13 }
  0xe5   : > { %p6817_p5 = pneg %p6816_p12 }
  0xe7   : > { %p6824_p4 = pnand %p6823_p7, %p6817_p5 }
  0xe9   : > { %6827 = shalt.err (!%p6824_p4)
}
  0xea   : > { %s7268_s26 = smov 384   ;;  %s7269_s3 = smov 24  }
  0xeb   : > { %p9806_p9 = scmp.ne.s32.totalorder %s9771_s5, 0  ;;  %s7270_s24 = smov [#allocation11]  }
  0xec   : > { %s398_s6 = sshll.u32 %s7270_s24, 4  ;;  %s7271_s2 = smov [#allocation23]   ;;  %s399_s6 = int_to_ptr.vmem [resolvable:$true] %s398_s6 }
  0xed   : > { %6052 = dma.hbm_to_vmem [thread:$0]  (!%p9806_p9), %s9804_s1, 768, %s372_s10, [#allocation7], %s7268_s26, %s7268_s26, %s7269_s3  }
  0xee   : > { %s419_s7 = sshll.u32 %s7271_s2, 4  ;;  %s5992_s23 = smul.u32 48, %s7741_s25  ;;  %s7787_s7 = int_to_ptr.vmem [resolvable:$true] %s419_s7 }
  0xef   : > { %s9807_s28 = sld [smem:[#allocation84_spill]] }
  0xf5   : > { %s9808_s11 = smov %s9807_s28  ;;  %s6828_s17 = scalar_lea.hbm %s9807_s28, 16 }
  0xf6   : > { %p6829_p4 = scmp.ne.s32.totalorder %s9808_s11, %s6828_s17  ;;  %p6835_p6 = scmp.lt.u32.totalorder %s6828_s17, %s9808_s11 }
  0xf8   : > { %p6831_p10 = pnand %p6829_p4, %p9805_p2 }
  0xfa   : > { %p6832_p1 = pneg %p6831_p10 }
  0xfc   : > { %p6837_p0 = pnand %p6835_p6, %p6832_p1 }
  0xfe   : > { %6840 = shalt.err (!%p6837_p0)
}
  0xff   : > { %s6841_s10 = scalar_lea.vmem %s399_s6, 16  ;;  %s6848_s4 = scalar_lea.vmem %s399_s6, 32 }
 0x100   : > { %p6842_p11 = scmp.ne.s32.totalorder %s399_s6, %s6841_s10  ;;  %p6849_p13 = scmp.lt.s32.totalorder %s399_s6, %s399_s6 }
 0x101   : > { %p6850_p3 = scmp.lt.s32.totalorder %s6848_s4, %s6841_s10 }
 0x102   : > { %p6844_p12 = pnand %p6842_p11, %p9805_p2 }
 0x103   : > { %p6851_p7 = por %p6850_p3, %p6849_p13 }
 0x104   : > { %p6845_p5 = pneg %p6844_p12 }
 0x106   : > { %p6852_p8 = pnand %p6851_p7, %p6845_p5 }
 0x108   : > { %6855 = shalt.err (!%p6852_p8)
}
 0x109   : > { %6058 = dma.hbm_to_vmem [thread:$0]  (!%p9806_p9), %s9808_s11, 16, %s399_s6, [#allocation10]  }
 0x10a   : > { %s9809_s19 = sld [smem:[#allocation89_spill]]  ;;  %s9661_s26 = scalar_lea.sflag [#allocation19], %s7564_s9 }
 0x10b   : > { %p9811_p4 = scmp.ne.s32.totalorder %s9799_s12, 0 }
 0x10d   : > { %p6858_p10 = pneg %p9811_p4 }
 0x110   : > { %s9810_s3 = smov %s9809_s19  ;;  %s7785_s25 = scalar_lea.hbm %s9809_s19, %s5992_s23 }
 0x111   : > { %s6856_s29 = scalar_lea.hbm %s7785_s25, 48  ;;  %s6861_s2 = scalar_lea.hbm %s9810_s3, 624 }
 0x112   : > { %p6857_p8 = scmp.ne.s32.totalorder %s7785_s25, %s6856_s29  ;;  %p6862_p0 = scmp.lt.u32.totalorder %s7785_s25, %s9810_s3 }
 0x113   : > { %p6863_p11 = scmp.lt.u32.totalorder %s6861_s2, %s6856_s29  ;;  %p6865_p5 = scmp.lt.u32.totalorder %s6856_s29, %s7785_s25 }
 0x114   : > { %p6859_p1 = pnand %p6858_p10, %p6857_p8 }
 0x115   : > { %p6864_p12 = por %p6863_p11, %p6862_p0 }
 0x116   : > { %p6860_p6 = pneg %p6859_p1 }
 0x117   : > { %p6866_p13 = por %p6865_p5, %p6864_p12 }
 0x119   : > { %p6867_p3 = pnand %p6866_p13, %p6860_p6 }
 0x11b   : > { %6870 = shalt.err (!%p6867_p3)
}
 0x11c   : > { %s6871_s30 = scalar_lea.vmem %s7743_s8, 48  ;;  %s7272_s10 = smov [#allocation18]  }
 0x11d   : > { %p6872_p7 = scmp.ne.s32.totalorder %s7743_s8, %s6871_s30  ;;  %s6876_s4 = sshll.u32 %s7272_s10, 4  ;;  %s6877_s4 = int_to_ptr.vmem [resolvable:$false] %s6876_s4 }
 0x11e   : > { %s6878_s22 = scalar_lea.vmem %s6877_s4, 96  ;;  %p6879_p9 = scmp.lt.s32.totalorder %s7743_s8, %s6877_s4 }
 0x11f   : > { %p6874_p8 = pnand %p6872_p7, %p6858_p10  ;;  %p6880_p0 = scmp.lt.s32.totalorder %s6878_s22, %s6871_s30 }
 0x121   : > { %p6875_p1 = pneg %p6874_p8  ;;  %p6881_p11 = por %p6880_p0, %p6879_p9 }
 0x123   : > { %p6882_p12 = pnand %p6881_p11, %p6875_p1 }
 0x125   : > { %6885 = shalt.err (!%p6882_p12)
}
 0x126   : > { %6091 = dma.hbm_to_vmem [thread:$0]  (!%p9811_p4), %s7785_s25, 48, %s7743_s8, %s9661_s26  }
 0x127   : > { %s9812_s17 = sld [smem:[#allocation92_spill]] }
 0x12d   : > { %s9813_s6 = smov %s9812_s17  ;;  %s6886_s19 = scalar_lea.hbm %s9812_s17, 2048 }
 0x12e   : > { %p6887_p10 = scmp.ne.s32.totalorder %s9813_s6, %s6886_s19  ;;  %p6893_p5 = scmp.lt.u32.totalorder %s6886_s19, %s9813_s6 }
 0x130   : > { %p6889_p9 = pnand %p6887_p10, %p9805_p2 }
 0x132   : > { %p6890_p6 = pneg %p6889_p9 }
 0x134   : > { %p6895_p13 = pnand %p6893_p5, %p6890_p6 }
 0x136   : > { %6898 = shalt.err (!%p6895_p13)
}
 0x137   : > { %s6899_s12 = scalar_lea.vmem %s7787_s7, 2048  ;;  %p6907_p8 = scmp.lt.s32.totalorder %s7787_s7, %s7787_s7 }
 0x138   : > { %p6900_p4 = scmp.ne.s32.totalorder %s7787_s7, %s6899_s12  ;;  %p6908_p1 = scmp.lt.s32.totalorder %s6899_s12, %s6899_s12 }
 0x13a   : > { %p6902_p3 = pnand %p6900_p4, %p9805_p2  ;;  %p6909_p0 = por %p6908_p1, %p6907_p8 }
 0x13c   : > { %p6903_p7 = pneg %p6902_p3 }
 0x13e   : > { %p6910_p11 = pnand %p6909_p0, %p6903_p7 }
 0x140   : > { %6913 = shalt.err (!%p6910_p11)
}
 0x141   : > { %p9814_p12 = scmp.ne.s32.totalorder %s9771_s5, 0  ;;  %s9815_s8 = smov 8  }
 0x142   : > { %s9816_s25 = smov 128   ;;  %s7273_s10 = smov [#allocation24]  }
 0x143   : > { %6064 = dma.hbm_to_vmem [thread:$0]  (!%p9814_p12), %s9813_s6, 2048, %s7787_s7, [#allocation22], %s9816_s25, %s9816_s25, %s9815_s8  }
 0x144   : > { %s433_s4 = sshll.u32 %s7273_s10, 4  ;;  %s9817_s21 = sld [smem:[#allocation93_spill]]  ;;  %s434_s4 = int_to_ptr.vmem [resolvable:$true] %s433_s4 }
 0x14a   : > { %s9818_s2 = smov %s9817_s21  ;;  %s6914_s17 = scalar_lea.hbm %s9817_s21, 16 }
 0x14b   : > { %p6915_p10 = scmp.ne.s32.totalorder %s9818_s2, %s6914_s17  ;;  %p6921_p5 = scmp.lt.u32.totalorder %s6914_s17, %s9818_s2 }
 0x14d   : > { %p6917_p9 = pnand %p6915_p10, %p9805_p2 }
 0x14f   : > { %p6918_p6 = pneg %p6917_p9 }
 0x151   : > { %p6923_p13 = pnand %p6921_p5, %p6918_p6 }
 0x153   : > { %6926 = shalt.err (!%p6923_p13)
}
 0x154   : > { %s6927_s7 = scalar_lea.vmem %s434_s4, 16  ;;  %s6934_s12 = scalar_lea.vmem %s434_s4, 32 }
 0x155   : > { %p6928_p4 = scmp.ne.s32.totalorder %s434_s4, %s6927_s7  ;;  %p6935_p8 = scmp.lt.s32.totalorder %s434_s4, %s434_s4 }
 0x156   : > { %p6936_p1 = scmp.lt.s32.totalorder %s6934_s12, %s6927_s7 }
 0x157   : > { %p6930_p3 = pnand %p6928_p4, %p9805_p2 }
 0x158   : > { %p6937_p0 = por %p6936_p1, %p6935_p8 }
 0x159   : > { %p6931_p7 = pneg %p6930_p3 }
 0x15b   : > { %p6938_p11 = pnand %p6937_p0, %p6931_p7 }
 0x15d   : > { %6941 = shalt.err (!%p6938_p11)
}
 0x15e   : > { %s9819_s0 = sld [smem:[#allocation63_spill]]  ;;  %s9820_s30 = sld [smem:[#allocation59_spill]] }
 0x15f   : > { %s9821_s10 = sld [smem:[#allocation60_spill]]  ;;  %p9823_p9 = scmp.eq.s32.totalorder %s7463_s18, 0 }
 0x160   : > { %s9822_s22 = sld [smem:[#allocation58_spill]]  ;;  %p9825_p5 = scmp.eq.s32.totalorder %s7254_s13, 0 }
 0x161   : > { %6067 = dma.hbm_to_vmem [thread:$0]  (!%p9814_p12), %s9818_s2, 16, %s434_s4, [#allocation25]  }
 0x162   : > { %s134_s20 = sld [smem:[#allocation5 + %s7254_s13]]  ;;  %p9829_p12 = scmp.lt.s32.totalorder %s7254_s13, 12 }
 0x163   : > { %s9826_s4 = sld [smem:[#allocation55_spill]]  ;;  %s9827_s19 = sld [smem:[#allocation56_spill]] }
 0x164   : > { %s135_s28 = sld [smem:[#allocation5 + %s9819_s0]]  ;;  %p9831_p7 = pmov %p9829_p12 }
 0x165   : > { %p146_p2 = scmp.ne.s32.totalorder %s9821_s10, %s9820_s30  ;;  %s139_s5 = sadd.s32 1, %s9821_s10 }
 0x166   : > { %p152_p10 = scmp.ne.s32.totalorder %s9820_s30, %s9822_s22  ;;  %s467_s21 = sand.u32 1, %s9821_s10  }
 0x167   : > { %p148_p13 = por %p146_p2, %p9825_p5  ;;  %s4595_s29 = sshll.u32 %s467_s21, 9 }
 0x168   : > { %p7871_p6 = por %p152_p10, %p9823_p9  ;;  %s9828_s24 = sld [smem:[#allocation54_spill]] }
 0x169   : > { %p7879_p4 = pnand %p9829_p12, %p148_p13  ;;  %s469_s12 = scalar_lea.vmem [#allocation14], %s4595_s29 }
 0x16a   : > { %s9824_s17 = scalar_select %p7871_p6, 1, 0 }
 0x16b   : > { %s136_s23 = ssub.s32 %s134_s20, %s135_s28  ;;  %s477_s8 = sshll.u32 %s469_s12, 4  ;;  %s7897_s8 = int_to_ptr.vmem [resolvable:$true] %s477_s8 }
 0x16c   : > { %p137_p3 = scmp.eq.s32.totalorder %s136_s23, 0  ;;  %p9832_p8 = pmov %p9831_p7 }
 0x16d   : > { %s6012_s25 = scalar_select %p148_p13, [#allocation5], [#allocation27] }
 0x16e   : > { %s10030_s10 = smov (!%p137_p3, %s9821_s10), %s139_s5  ;;  %s7892_s20 = sld [smem:[#allocation5 + %s7254_s13]] }
 0x16f   : > { %s6013_s30 = scalar_select %p148_p13, %s7254_s13, 0 }
 0x170   : > { %s10032_s25 = smov (!%p9831_p7, %s6012_s25), [#allocation32]  ;;  %s7895_s28 = sld [smem:[#allocation5 + %s9819_s0]] }
 0x171   : > { %s10034_s30 = smov (!%p9832_p8, %s6013_s30), 0  ;;  %p202_p1 = scmp.ne.s32.totalorder %s9827_s19, %s9826_s4 }
 0x172   : > { %s470_s22 = sld [smem:[%s10032_s25 + %s10034_s30]]  ;;  %p208_p0 = scmp.ne.s32.totalorder %s9826_s4, %s9828_s24 }
 0x173   : > { %s511_s21 = sand.u32 1, %s9827_s19   ;;  %p9833_p11 = pmov %p9825_p5 }
 0x174   : > { %s7910_s29 = smul.u32 192, %s511_s21  ;;  %p9835_p10 = pmov %p9823_p9 }
 0x175   : > { %p7906_p2 = por %p202_p1, %p9833_p11  ;;  %s9837_s26 = sld [smem:[#allocation86_spill]] }
 0x176   : > { %p7914_p9 = por %p208_p0, %p9835_p10  ;;  %p6944_p13 = pneg %p7879_p4 }
 0x178   : > { %s4886_s23 = sshll.u32 %s470_s22, 13 }
 0x179   : > { %s9836_s12 = scalar_select %p7914_p9, 1, 0 }
 0x17b   : > { %s9838_s1 = smov %s9837_s26  ;;  %s7921_s2 = scalar_lea.hbm %s9837_s26, %s4886_s23 }
 0x17c   : > { %s6942_s4 = scalar_lea.hbm %s7921_s2, 8192  ;;  %s6947_s21 = scalar_lea.hbm %s9838_s1, 106496 }
 0x17d   : > { %p6943_p5 = scmp.ne.s32.totalorder %s7921_s2, %s6942_s4  ;;  %p6948_p7 = scmp.lt.u32.totalorder %s7921_s2, %s9838_s1 }
 0x17e   : > { %p6949_p8 = scmp.lt.u32.totalorder %s6947_s21, %s6942_s4  ;;  %p6951_p0 = scmp.lt.u32.totalorder %s6942_s4, %s7921_s2 }
 0x17f   : > { %p6945_p12 = pnand %p6944_p13, %p6943_p5 }
 0x180   : > { %p6950_p1 = por %p6949_p8, %p6948_p7 }
 0x181   : > { %p6946_p3 = pneg %p6945_p12 }
 0x182   : > { %p6952_p11 = por %p6951_p0, %p6950_p1 }
 0x184   : > { %p6953_p10 = pnand %p6952_p11, %p6946_p3 }
 0x186   : > { %6956 = shalt.err (!%p6953_p10)
}
 0x187   : > { %s6957_s26 = scalar_lea.vmem %s7897_s8, 8192  ;;  %s7274_s23 = smov [#allocation14]  }
 0x188   : > { %p6958_p5 = scmp.ne.s32.totalorder %s7897_s8, %s6957_s26  ;;  %s6962_s30 = sshll.u32 %s7274_s23, 4  ;;  %s6963_s30 = int_to_ptr.vmem [resolvable:$false] %s6962_s30 }
 0x189   : > { %s6964_s3 = scalar_lea.vmem %s6963_s30, 16384  ;;  %p6965_p6 = scmp.lt.s32.totalorder %s7897_s8, %s6963_s30 }
 0x18a   : > { %p6960_p12 = pnand %p6958_p5, %p6944_p13  ;;  %p6966_p7 = scmp.lt.s32.totalorder %s6964_s3, %s6957_s26 }
 0x18c   : > { %p6961_p9 = pneg %p6960_p12  ;;  %p6967_p8 = por %p6966_p7, %p6965_p6 }
 0x18e   : > { %p6968_p1 = pnand %p6967_p8, %p6961_p9 }
 0x190   : > { %6971 = shalt.err (!%p6968_p1)
}
 0x191   : > { %s9839_s4 = smov 4   ;;  %s9840_s24 = smov 64  }
 0x192   : > { %s9841_s22 = scalar_lea.sflag [#allocation13], %s7564_s9  ;;  %s9842_s7 = sld [smem:[#allocation50_spill]] }
 0x193   : > { %s9843_s21 = sld [smem:[#allocation51_spill]]  ;;  %s9844_s25 = sld [smem:[#allocation49_spill]] }
 0x194   : > { %6076 = dma.hbm_to_vmem [thread:$0]  (!%p7879_p4), %s7921_s2, 8192, %s7897_s8, %s9841_s22, %s9840_s24, %s9840_s24, %s9839_s4  }
 0x195   : > { %s192_s26 = ssub.s32 %s7892_s20, %s7895_s28  ;;  %s195_s23 = sadd.s32 1, %s9827_s19 }
 0x196   : > { %p193_p6 = scmp.eq.s32.totalorder %s192_s26, 0  ;;  %s513_s30 = scalar_lea.vmem [#allocation17], %s7910_s29 }
 0x197   : > { %s521_s3 = sshll.u32 %s513_s30, 4  ;;  %p9845_p9 = scmp.lt.s32.totalorder %s7254_s13, 12  ;;  %s7987_s3 = int_to_ptr.vmem [resolvable:$true] %s521_s3 }
 0x198   : > { %s6018_s1 = scalar_select %p7906_p2, [#allocation5], [#allocation29] }
 0x199   : > { %s10036_s19 = smov (!%p193_p6, %s9827_s19), %s195_s23  ;;  %p9846_p13 = pmov %p9845_p9 }
 0x19a   : > { %s6019_s6 = scalar_select %p7906_p2, %s7254_s13, 0 }
 0x19b   : > { %s10038_s1 = smov (!%p9845_p9, %s6018_s1), [#allocation34]  ;;  %p9847_p4 = pmov %p9845_p9 }
 0x19c   : > { %s10040_s6 = smov (!%p9846_p13, %s6019_s6), 0  ;;  %s7978_s20 = sld [smem:[#allocation5 + %s7254_s13]] }
 0x19d   : > { %p7973_p3 = pnand %p9847_p4, %p7906_p2  ;;  %s514_s8 = sld [smem:[%s10038_s1 + %s10040_s6]] }
 0x19e   : > { %s7981_s28 = sld [smem:[#allocation5 + %s9819_s0]]  ;;  %p258_p0 = scmp.ne.s32.totalorder %s9843_s21, %s9842_s7 }
 0x19f   : > { %p264_p11 = scmp.ne.s32.totalorder %s9842_s7, %s9844_s25  ;;  %p9849_p10 = scmp.eq.s32.totalorder %s7463_s18, 0 }
 0x1a0   : > { %s553_s4 = sand.u32 1, %s9843_s21   ;;  %s9851_s26 = sld [smem:[#allocation88_spill]] }
 0x1a1   : > { %p7991_p5 = por %p264_p11, %p9849_p10  ;;  %p9853_p2 = scmp.eq.s32.totalorder %s7254_s13, 0 }
 0x1a2   : > { %p6974_p8 = pneg %p7973_p3 }
 0x1a3   : > { %s5990_s29 = smul.u32 3072, %s514_s8  ;;  %p8003_p12 = por %p258_p0, %p9853_p2 }
 0x1a4   : > { %s9850_s5 = scalar_select %p7991_p5, 1, 0 }
 0x1a6   : > { %s9852_s11 = smov %s9851_s26  ;;  %s7999_s23 = scalar_lea.hbm %s9851_s26, %s5990_s29 }
 0x1a7   : > { %s6972_s6 = scalar_lea.hbm %s7999_s23, 3072  ;;  %s6977_s25 = scalar_lea.hbm %s9852_s11, 39936 }
 0x1a8   : > { %p6973_p7 = scmp.ne.s32.totalorder %s7999_s23, %s6972_s6  ;;  %p6978_p9 = scmp.lt.u32.totalorder %s7999_s23, %s9852_s11 }
 0x1a9   : > { %p6979_p13 = scmp.lt.u32.totalorder %s6977_s25, %s6972_s6  ;;  %p6981_p0 = scmp.lt.u32.totalorder %s6972_s6, %s7999_s23 }
 0x1aa   : > { %p6975_p1 = pnand %p6974_p8, %p6973_p7 }
 0x1ab   : > { %p6980_p4 = por %p6979_p13, %p6978_p9 }
 0x1ac   : > { %p6976_p6 = pneg %p6975_p1 }
 0x1ad   : > { %p6982_p11 = por %p6981_p0, %p6980_p4 }
 0x1af   : > { %p6983_p10 = pnand %p6982_p11, %p6976_p6 }
 0x1b1   : > { %6986 = shalt.err (!%p6983_p10)
}
 0x1b2   : > { %s6987_s29 = scalar_lea.vmem %s7987_s3, 3072  ;;  %s7275_s24 = smov [#allocation17]  }
 0x1b3   : > { %p6988_p2 = scmp.ne.s32.totalorder %s7987_s3, %s6987_s29  ;;  %s6992_s22 = sshll.u32 %s7275_s24, 4  ;;  %s6993_s22 = int_to_ptr.vmem [resolvable:$false] %s6992_s22 }
 0x1b4   : > { %s6994_s26 = scalar_lea.vmem %s6993_s22, 6144  ;;  %p6995_p5 = scmp.lt.s32.totalorder %s7987_s3, %s6993_s22 }
 0x1b5   : > { %p6990_p7 = pnand %p6988_p2, %p6974_p8  ;;  %p6996_p9 = scmp.lt.s32.totalorder %s6994_s26, %s6987_s29 }
 0x1b7   : > { %p6991_p1 = pneg %p6990_p7  ;;  %p6997_p13 = por %p6996_p9, %p6995_p5 }
 0x1b9   : > { %p6998_p4 = pnand %p6997_p13, %p6991_p1 }
 0x1bb   : > { %7001 = shalt.err (!%p6998_p4)
}
 0x1bc   : > { %s9855_s6 = smov 12   ;;  %s9856_s0 = smov 192  }
 0x1bd   : > { %s9857_s7 = scalar_lea.sflag [#allocation16], %s7564_s9  ;;  %s248_s2 = ssub.s32 %s7978_s20, %s7981_s28 }
 0x1be   : > { %6086 = dma.hbm_to_vmem [thread:$0]  (!%p7973_p3), %s7999_s23, 3072, %s7987_s3, %s9857_s7, %s9856_s0, %s9856_s0, %s9855_s6  }
 0x1bf   : > { %s251_s25 = sadd.s32 1, %s9843_s21  ;;  %p249_p5 = scmp.eq.s32.totalorder %s248_s2, 0 }
 0x1c0   : > { %s5993_s30 = smul.u32 3, %s553_s4  ;;  %p9858_p8 = scmp.lt.s32.totalorder %s7254_s13, 12 }
 0x1c1   : > { %s6024_s8 = scalar_select %p8003_p12, [#allocation5], [#allocation31] }
 0x1c2   : > { %s10042_s21 = smov (!%p249_p5, %s9843_s21), %s251_s25  ;;  %p9859_p6 = pmov %p9858_p8 }
 0x1c3   : > { %s6025_s29 = scalar_select %p8003_p12, %s7254_s13, 0 }
 0x1c4   : > { %s10044_s8 = smov (!%p9858_p8, %s6024_s8), [#allocation36]  ;;  %p9860_p0 = pmov %p9859_p6 }
 0x1c5   : > { %s10046_s29 = smov (!%p9859_p6, %s6025_s29), 0  ;;  %s555_s20 = scalar_lea.vmem [#allocation20], %s5993_s30 }
 0x1c6   : > { %p8058_p11 = pnand %p9860_p0, %p8003_p12  ;;  %s556_s3 = sld [smem:[%s10044_s8 + %s10046_s29]] }
 0x1c7   : > { %s564_s28 = sshll.u32 %s555_s20, 4  ;;  %s9862_s26 = sld [smem:[#allocation90_spill]]  ;;  %s8062_s28 = int_to_ptr.vmem [resolvable:$true] %s564_s28 }
 0x1c8   : > { %p7004_p10 = pneg %p8058_p11 }
 0x1cc   : > { %s5994_s4 = smul.u32 48, %s556_s3 }
 0x1cd   : > { %s9863_s6 = smov %s9862_s26 }
 0x1ce   : > { %s562_s0 = scalar_lea.hbm %s9862_s26, %s5994_s4  ;;  %s7007_s2 = scalar_lea.hbm %s9863_s6, 624 }
 0x1cf   : > { %s7002_s7 = scalar_lea.hbm %s562_s0, 48  ;;  %p7008_p7 = scmp.lt.u32.totalorder %s562_s0, %s9863_s6 }
 0x1d0   : > { %p7003_p3 = scmp.ne.s32.totalorder %s562_s0, %s7002_s7  ;;  %p7009_p1 = scmp.lt.u32.totalorder %s7007_s2, %s7002_s7 }
 0x1d1   : > { %p7011_p13 = scmp.lt.u32.totalorder %s7002_s7, %s562_s0 }
 0x1d2   : > { %p7005_p12 = pnand %p7004_p10, %p7003_p3  ;;  %p7010_p9 = por %p7009_p1, %p7008_p7 }
 0x1d4   : > { %p7006_p2 = pneg %p7005_p12  ;;  %p7012_p4 = por %p7011_p13, %p7010_p9 }
 0x1d6   : > { %p7013_p5 = pnand %p7012_p4, %p7006_p2 }
 0x1d8   : > { %7016 = shalt.err (!%p7013_p5)
}
 0x1d9   : > { %s7017_s8 = scalar_lea.vmem %s8062_s28, 48  ;;  %s7276_s29 = smov [#allocation20]  }
 0x1da   : > { %p7018_p8 = scmp.ne.s32.totalorder %s8062_s28, %s7017_s8  ;;  %s7022_s3 = sshll.u32 %s7276_s29, 4  ;;  %s7023_s3 = int_to_ptr.vmem [resolvable:$false] %s7022_s3 }
 0x1db   : > { %s7024_s20 = scalar_lea.vmem %s7023_s3, 96  ;;  %p7025_p3 = scmp.lt.s32.totalorder %s8062_s28, %s7023_s3 }
 0x1dc   : > { %p7020_p6 = pnand %p7018_p8, %p7004_p10  ;;  %p7026_p12 = scmp.lt.s32.totalorder %s7024_s20, %s7017_s8 }
 0x1de   : > { %p7021_p0 = pneg %p7020_p6  ;;  %p7027_p7 = por %p7026_p12, %p7025_p3 }
 0x1e0   : > { %p7028_p1 = pnand %p7027_p7, %p7021_p0 }
 0x1e2   : > { %7031 = shalt.err (!%p7028_p1)
}
 0x1e3   : > { %s9864_s4 = scalar_lea.sflag [#allocation19], %s7564_s9  ;;  %s9865_s23 = sld [smem:[#allocation62_spill]] }
 0x1e4   : > { %6096 = dma.hbm_to_vmem [thread:$0]  (!%p8058_p11), %s562_s0, 48, %s8062_s28, %s9864_s4  }
 0x1e9   : > { %p9866_p2 = scmp.ne.s32.totalorder %s9865_s23, 0 }
 0x1eb   : > { %573 = sbr.rel (%p9866_p2) target bundleno = 7168 (0x1c00), region = 68 }
 0x1f2   : > { %p9867_p10 = scmp.eq.s32.totalorder %s7463_s18, 0 }
 0x1f4   : > { %7137 = dma.done.wait (%p9867_p10), [#allocation7], 768   ;;  %p9868_p9 = pmov %p9867_p10 }
 0x1f6   : > { %7139 = vsyncadd (%p9868_p9), [#allocation7], 4294966528  ;;  %p9869_p13 = pmov %p9868_p9 }
 0x1f7   : > { %p9870_p4 = pmov %p9868_p9 }
 0x1f8   : > { %7141 = dma.done.wait (%p9869_p13), [#allocation10], 6160  }
 0x1f9   : > { %7143 = vsyncadd (%p9870_p4), [#allocation10], 4294961136  ;;  %s587_s9 = sand.u32 1, %s7463_s18   ;;  %s589_s24 = sand.u32 1, %s7246_s16  }
 0x1fa   : > { %s4606_s28 = sshll.u32 %s589_s24, 3  ;;  %s588_s22 = scalar_lea.sflag [#allocation13], %s587_s9 }
 0x1fb   : > { %s8101_s26 = scalar_lea.vmem [#allocation12], %s4606_s28  ;;  %p9871_p11 = scmp.ne.s32.totalorder %s9777_s14, 0 }
 0x1fd   : > { %7145 = dma.done.wait (%p9871_p11), %s588_s22, 128  }
 0x1fe   : > { %7147 = vsyncadd (%p9871_p11), %s588_s22, 4294967168  ;;  %s9872_s0 = sld [smem:[#allocation59_spill]]  ;;  %p9873_p5 = scmp.ne.s32.totalorder %s9824_s17, 0 }
 0x204   : > { %s598_s7 = sand.u32 1, %s9872_s0  }
 0x205   : > { %s4607_s13 = sshll.u32 %s598_s7, 9 }
 0x206   : > { %s8108_s1 = scalar_lea.vmem [#allocation14], %s4607_s13 }
 0x207   : > { %7149 = dma.done.wait (%p9873_p5), %s588_s22, 8192  }
 0x208   : > { %7151 = vsyncadd (%p9873_p5), %s588_s22, 4294959104  ;;  %s607_s2 = sand.u32 1, %s7222_s27   ;;  %s606_s30 = scalar_lea.sflag [#allocation16], %s587_s9 }
 0x209   : > { %s5995_s25 = smul.u32 192, %s607_s2  ;;  %p9874_p8 = scmp.ne.s32.totalorder %s9784_s15, 0 }
 0x20b   : > { %s8115_s8 = scalar_lea.vmem [#allocation15], %s5995_s25 }
 0x20c   : > { %7153 = dma.done.wait (%p9874_p8), %s606_s30, 3072  }
 0x20d   : > { %7155 = vsyncadd (%p9874_p8), %s606_s30, 4294964224  ;;  %s9875_s14 = sld [smem:[#allocation55_spill]]  ;;  %p9876_p6 = scmp.ne.s32.totalorder %s9836_s12, 0 }
 0x213   : > { %s616_s29 = sand.u32 1, %s9875_s14  }
 0x214   : > { %s5996_s3 = smul.u32 192, %s616_s29 }
 0x216   : > { %s8122_s20 = scalar_lea.vmem [#allocation17], %s5996_s3 }
 0x217   : > { %7157 = dma.done.wait (%p9876_p6), %s606_s30, 3072  }
 0x218   : > { %7159 = vsyncadd (%p9876_p6), %s606_s30, 4294964224  ;;  %s9877_s17 = sld [smem:[#allocation52_spill]]  ;;  %s624_s28 = scalar_lea.sflag [#allocation19], %s587_s9 }
 0x219   : > { %s9878_s4 = sld [smem:[#allocation66_spill]] }
 0x21e   : > { %s625_s23 = sand.u32 1, %s9877_s17  }
 0x21f   : > { %s8129_s24 = smul.u32 3, %s625_s23  ;;  %p9879_p0 = scmp.ne.s32.totalorder %s9878_s4, 0 }
 0x221   : > { %s627_s15 = scalar_lea.vmem [#allocation18], %s8129_s24 }
 0x222   : > { %7161 = dma.done.wait (%p9879_p0), %s624_s28, 48  }
 0x223   : > { %7163 = vsyncadd (%p9879_p0), %s624_s28, 4294967248  ;;  %s9880_s22 = sld [smem:[#allocation50_spill]]  ;;  %p9881_p3 = scmp.ne.s32.totalorder %s9850_s5, 0 }
 0x229   : > { %s634_s0 = sand.u32 1, %s9880_s22  }
 0x22a   : > { %s8137_s7 = smul.u32 3, %s634_s0 }
 0x22c   : > { %s636_s12 = scalar_lea.vmem [#allocation20], %s8137_s7 }
 0x22d   : > { %7165 = dma.done.wait (%p9881_p3), %s624_s28, 48  }
 0x22e   : > { %7167 = vsyncadd (%p9881_p3), %s624_s28, 4294967248  ;;  %p9882_p12 = pmov %p9870_p4 }
 0x22f   : > { %p9883_p7 = pmov %p9870_p4 }
 0x230   : > { %7169 = dma.done.wait (%p9882_p12), [#allocation22], 2176  }
 0x231   : > { %7171 = vsyncadd (%p9883_p7), [#allocation22], 4294965120  ;;  %p9884_p1 = pmov %p9870_p4 }
 0x233   : > { %7173 = dma.done.wait (%p9884_p1), [#allocation25], 16   ;;  %p9885_p2 = pmov %p9884_p1 }
 0x234   : > { %p9886_p10 = scmp.ne.s32.totalorder %s7463_s18, 0 }
 0x235   : > { %7175 = vsyncadd (%p9885_p2), [#allocation25], 4294967280  ;;  %v741_v0 = vld [vmem:[#allocation9 + $0x80] sm:$0xff] (!%p9886_p10)  ;;  %v742_v1 = vld [vmem:[#allocation9 + $0x88] sm:$0xff] (!%p9886_p10) }
 0x236   : > { %718 = sbr.rel (%p9886_p10) target bundleno = 824 (0x338), region = 120  ;;  %v725_v2 = vld [vmem:[#allocation9] sm:$0xff] (!%p9886_p10)  ;;  %v5800_v3 = vpack.c.bf16 (!%p9886_p10), %v742_v1, %v741_v0  ;;  %v726_v4 = vld [vmem:[#allocation9 + $0x8] sm:$0xff] (!%p9886_p10)  ;;  %v743_v5 = vld [vmem:[#allocation9 + $0x90] sm:$0xff] (!%p9886_p10) }
 0x237   : > { %v744_v6 = vld [vmem:[#allocation9 + $0x98] sm:$0xff] (!%p9886_p10)  ;;  %v5802_v7 = vpack.c.bf16 (!%p9886_p10), %v726_v4, %v725_v2  ;;  %v757_v9 = vld [vmem:[#allocation9 + $0x100] sm:$0xff] (!%p9886_p10)  ;;  %v758_v10 = vld [vmem:[#allocation9 + $0x108] sm:$0xff] (!%p9886_p10) }
 0x238   : > { %v5804_v8 = vpack.c.bf16 (!%p9886_p10), %v744_v6, %v743_v5  ;;  %v727_v11 = vld [vmem:[#allocation9 + $0x10] sm:$0xff] (!%p9886_p10)  ;;  %5801 = vmatprep.subr.bf16.mxu0 (!%p9886_p10), %v5800_v3  ;;  %v5832_v12 = vpack.c.bf16 (!%p9886_p10), %v758_v10, %v757_v9  ;;  %v728_v13 = vld [vmem:[#allocation9 + $0x18] sm:$0xff] (!%p9886_p10)  ;;  %v745_v14 = vld [vmem:[#allocation9 + $0xa0] sm:$0xff] (!%p9886_p10) }
 0x239   : > { %v746_v15 = vld [vmem:[#allocation9 + $0xa8] sm:$0xff] (!%p9886_p10)  ;;  %5803 = vmatpush3.bf16.msra.mxu0 (!%p9886_p10), %v5802_v7  ;;  %v5806_v16 = vpack.c.bf16 (!%p9886_p10), %v728_v13, %v727_v11  ;;  %v759_v17 = vld [vmem:[#allocation9 + $0x110] sm:$0xff] (!%p9886_p10)  ;;  %v760_v18 = vld [vmem:[#allocation9 + $0x118] sm:$0xff] (!%p9886_p10) }
 0x23a   : > { %5805 = vmatprep.subr.bf16.mxu0 (!%p9886_p10), %v5804_v8  ;;  %5833 = vmatprep.subr.bf16.mxu1 (!%p9886_p10), %v5832_v12  ;;  %v5808_v19 = vpack.c.bf16 (!%p9886_p10), %v746_v15, %v745_v14  ;;  %v5836_v20 = vpack.c.bf16 (!%p9886_p10), %v760_v18, %v759_v17  ;;  %v729_v21 = vld [vmem:[#allocation9 + $0x20] sm:$0xff] (!%p9886_p10)  ;;  %v730_v22 = vld [vmem:[#allocation9 + $0x28] sm:$0xff] (!%p9886_p10)  ;;  %v747_v23 = vld [vmem:[#allocation9 + $0xb0] sm:$0xff] (!%p9886_p10)  ;;  %v7277_v14 = vmov (!%p9886_p10), 0.0  }
 0x23b   : > { %5835 = vmatpush3.bf16.msra.mxu1 (!%p9886_p10), %v5832_v12  ;;  %v748_v24 = vld [vmem:[#allocation9 + $0xb8] sm:$0xff] (!%p9886_p10)  ;;  %v761_v25 = vld [vmem:[#allocation9 + $0x120] sm:$0xff] (!%p9886_p10)  ;;  %v762_v26 = vld [vmem:[#allocation9 + $0x128] sm:$0xff] (!%p9886_p10)  ;;  %v5810_v28 = vpack.c.bf16 (!%p9886_p10), %v730_v22, %v729_v21  ;;  %932 = vst [vmem:[#allocation3] sm:$0xff] (!%p9886_p10), %v7277_v14 }
 0x23c   : > { %5837 = vmatprep.subr.bf16.mxu1 (!%p9886_p10), %v5836_v20  ;;  %v5840_v27 = vpack.c.bf16 (!%p9886_p10), %v762_v26, %v761_v25  ;;  %v763_v29 = vld [vmem:[#allocation9 + $0x130] sm:$0xff] (!%p9886_p10)  ;;  %v764_v30 = vld [vmem:[#allocation9 + $0x138] sm:$0xff] (!%p9886_p10)  ;;  %v5812_v31 = vpack.c.bf16 (!%p9886_p10), %v748_v24, %v747_v23  ;;  %v749_v34 = vld [vmem:[#allocation9 + $0xc0] sm:$0xff] (!%p9886_p10)  ;;  %933 = vst [vmem:[#allocation3 + $0x8] sm:$0xff] (!%p9886_p10), %v7277_v14 }
 0x23d   : > { %5807 = vmatpush3.bf16.msra.mxu0 %v5806_v16  ;;  %v731_v32 = vld [vmem:[#allocation9 + $0x30] sm:$0xff]  ;;  %v732_v33 = vld [vmem:[#allocation9 + $0x38] sm:$0xff]  ;;  %v750_v35 = vld [vmem:[#allocation9 + $0xc8] sm:$0xff]  ;;  %v5844_v36 = vpack.c.bf16 %v764_v30, %v763_v29 }
 0x23e   : > { %5809 = vmatprep.subr.bf16.mxu0 %v5808_v19  ;;  %v5814_v37 = vpack.c.bf16 %v732_v33, %v731_v32  ;;  %v765_v38 = vld [vmem:[#allocation9 + $0x140] sm:$0xff]  ;;  %v766_v39 = vld [vmem:[#allocation9 + $0x148] sm:$0xff]  ;;  %v5816_v40 = vpack.c.bf16 %v750_v35, %v749_v34  ;;  %v751_v43 = vld [vmem:[#allocation9 + $0xd0] sm:$0xff] }
 0x23f   : > { %5839 = vmatpush3.bf16.msra.mxu1 %v5836_v20  ;;  %v733_v41 = vld [vmem:[#allocation9 + $0x40] sm:$0xff]  ;;  %v734_v42 = vld [vmem:[#allocation9 + $0x48] sm:$0xff]  ;;  %v752_v44 = vld [vmem:[#allocation9 + $0xd8] sm:$0xff]  ;;  %v5848_v45 = vpack.c.bf16 %v766_v39, %v765_v38 }
 0x240   : > { %5841 = vmatprep.subr.bf16.mxu1 %v5840_v27  ;;  %v720_v46 = vld [vmem:[#allocation6 + $0x8] sm:$0xff]  ;;  %v5818_v47 = vpack.c.bf16 %v734_v42, %v733_v41  ;;  %v767_v48 = vld [vmem:[#allocation9 + $0x150] sm:$0xff]  ;;  %v5820_v50 = vpack.c.bf16 %v752_v44, %v751_v43  ;;  %v721_v53 = vld [vmem:[#allocation6 + $0x10] sm:$0xff] }
 0x241   : > { %5811 = vmatpush3.bf16.msra.mxu0 %v5810_v28  ;;  %v768_v49 = vld [vmem:[#allocation9 + $0x158] sm:$0xff]  ;;  %844 = vmatprep.mubr.f32.mxu0 %v720_v46  ;;  %v735_v51 = vld [vmem:[#allocation9 + $0x50] sm:$0xff]  ;;  %v753_v54 = vld [vmem:[#allocation9 + $0xe0] sm:$0xff] }
 0x242   : > { %5813 = vmatprep.subr.bf16.mxu0 %v5812_v31  ;;  %v736_v52 = vld [vmem:[#allocation9 + $0x58] sm:$0xff]  ;;  %v754_v55 = vld [vmem:[#allocation9 + $0xe8] sm:$0xff]  ;;  %5227 = vmatprep.mubr.f32.mxu1 %v721_v53  ;;  %v5852_v56 = vpack.c.bf16 %v768_v49, %v767_v48  ;;  %v769_v58 = vld [vmem:[#allocation9 + $0x160] sm:$0xff] }
 0x243   : > { %5843 = vmatpush3.bf16.msra.mxu1 %v5840_v27  ;;  %v5822_v57 = vpack.c.bf16 %v736_v52, %v735_v51  ;;  %v770_v59 = vld [vmem:[#allocation9 + $0x168] sm:$0xff]  ;;  %v5824_v60 = vpack.c.bf16 %v754_v55, %v753_v54  ;;  %v737_v61 = vld [vmem:[#allocation9 + $0x60] sm:$0xff]  ;;  %v755_v63 = vld [vmem:[#allocation9 + $0xf0] sm:$0xff] }
 0x244   : > { %5845 = vmatprep.subr.bf16.mxu1 %v5844_v36  ;;  %v738_v62 = vld [vmem:[#allocation9 + $0x68] sm:$0xff]  ;;  %v756_v0 = vld [vmem:[#allocation9 + $0xf8] sm:$0xff]  ;;  %v5856_v1 = vpack.c.bf16 %v770_v59, %v769_v58  ;;  %v771_v3 = vld [vmem:[#allocation9 + $0x170] sm:$0xff] }
 0x245   : > { %5815 = vmatpush3.bf16.msra.mxu0 %v5814_v37  ;;  %v5826_v2 = vpack.c.bf16 %v738_v62, %v737_v61  ;;  %v772_v4 = vld [vmem:[#allocation9 + $0x178] sm:$0xff]  ;;  %v5828_v5 = vpack.c.bf16 %v756_v0, %v755_v63  ;;  %v739_v6 = vld [vmem:[#allocation9 + $0x70] sm:$0xff]  ;;  %v722_v13 = vld [vmem:[#allocation6 + $0x18] sm:$0xff] }
 0x246   : > { %5817 = vmatprep.subr.bf16.mxu0 %v5816_v40  ;;  %v740_v7 = vld [vmem:[#allocation9 + $0x78] sm:$0xff]  ;;  %v5860_v8 = vpack.c.bf16 %v772_v4, %v771_v3  ;;  %v719_v10 = vld [vmem:[#allocation6] sm:$0xff]  ;;  %v4612_v17 = vld [vmem:[#allocation11] ss:$0 sm:$0xff] }
 0x247   : > { %5847 = vmatpush3.bf16.msra.mxu1 %v5844_v36  ;;  %v5830_v9 = vpack.c.bf16 %v740_v7, %v739_v6  ;;  %v723_v11 = vld [vmem:[#allocation6 + $0x20] sm:$0xff]  ;;  %v724_v12 = vld [vmem:[#allocation6 + $0x28] sm:$0xff] }
 0x248   : > { %5849 = vmatprep.subr.bf16.mxu1 %v5848_v45 }
 0x249   : > { %5819 = vmatpush3.bf16.msra.mxu0 %v5818_v47 }
 0x24a   : > { %5821 = vmatprep.subr.bf16.mxu0 %v5820_v50 }
 0x24b   : > { %5851 = vmatpush3.bf16.msra.mxu1 %v5848_v45 }
 0x24c   : > { %5853 = vmatprep.subr.bf16.mxu1 %v5852_v56 }
 0x24d   : > { %5823 = vmatpush3.bf16.msra.mxu0 %v5822_v57 }
 0x24e   : > { %5825 = vmatprep.subr.bf16.mxu0 %v5824_v60 }
 0x24f   : > { %5855 = vmatpush3.bf16.msra.mxu1 %v5852_v56 }
 0x250   : > { %5857 = vmatprep.subr.bf16.mxu1 %v5856_v1 }
 0x251   : > { %5827 = vmatpush3.bf16.msra.mxu0 %v5826_v2 }
 0x252   : > { %5829 = vmatprep.subr.bf16.mxu0 %v5828_v5 }
 0x253   : > { %5859 = vmatpush3.bf16.msra.mxu1 %v5856_v1 }
 0x254   : > { %5861 = vmatprep.subr.bf16.mxu1 %v5860_v8 }
 0x255   : > { %5831 = vmatpush3.bf16.msra.mxu0 %v5830_v9 }
 0x257   : > { %5863 = vmatpush3.bf16.msra.mxu1 %v5860_v8 }
 0x258   : > { %845 = vmatmul.mubr.f32.vlgmr.msra.gmra.mrb[0].mxu0 %v719_v10 }
 0x259   : > { %849 = vmatprep.mubr.f32.mxu0 %v723_v11 }
 0x25a   : > { %5228 = vmatmul.mubr.f32.vlgmr.msra.gmra.mrb[0].mxu1 %v724_v12 }
 0x25c   : > { %850 = vmatmul.mubr.f32.gmra.mrb[2].mxu0 %v722_v13 }
 0x32b   : > { %v4919_v15 = vpop.f32.mrb[0].mxu0 }
 0x32c   : > { %v4920_v16 = vpop.f32.mrb[1].mxu0 }
 0x32d   : > { %v4921_v18 = vadd.f32 %v4920_v16, %v4919_v15  ;;  %v5229_v19 = vpop.f32.mrb[0].mxu1 }
 0x32e   : > { %v921_v20 = vpop.f32.mrb[1].mxu1 }
 0x32f   : > { %v4922_v21 = vpop.f32.mrb[2].mxu0  ;;  %v847_v22 = vadd.f32 %v4921_v18, %v4612_v17 }
 0x330   : > { %v4923_v23 = vpop.f32.mrb[3].mxu0 }
 0x331   : > { %v4924_v24 = vadd.f32 %v4923_v23, %v4922_v21  ;;  %v922_v25 = vadd.f32 %v921_v20, %v847_v22 }
 0x333   : > { %v852_v26 = vadd.f32 %v4924_v24, %v4612_v17  ;;  %930 = vst [vmem:[#allocation2] sm:$0xff] %v922_v25 }
 0x335   : > { %v927_v27 = vadd.f32 %v5229_v19, %v852_v26 }
 0x337   : > { %931 = vst [vmem:[#allocation2 + $0x8] sm:$0xff] %v927_v27 }
 0x338 PF: > { %v6287_v28 = vld [vmem:[%s8108_s1] sm:$0xff]   ;;  %v9678_v29 = vmov 0.0   ;;  %v6288_v30 = vld [vmem:[%s8108_s1 + $0x8] sm:$0xff]   ;;  %vm7279_vm0 = vmmov 0   ;;  %v6289_v31 = vld [vmem:[%s8108_s1 + $0x10] sm:$0xff]   ;;  %vm1148_vm1 = vcmask 130048  }
 0x339   : > { %5230 = vmatprep.subr.bf16.mxu0 %v9678_v29  ;;  %5250 = vmatprep.subr.bf16.mxu1 %v9678_v29  ;;  %v6290_v32 = vld [vmem:[%s8108_s1 + $0x18] sm:$0xff]   ;;  %v6291_v33 = vld [vmem:[%s8108_s1 + $0x20] sm:$0xff]   ;;  %v6292_v34 = vld [vmem:[%s8108_s1 + $0x28] sm:$0xff]   ;;  %v9670_v7 = vmov 0   ;;  %p4878_p9 = scmp.ne.s32.totalorder %s7463_s18, 11 }
 0x33a   : > { %5231 = vmatpush3.bf16.msra.mxu0 %v6287_v28  ;;  %5246 = vmatprep.mubr.msk.bf16.mxu0 %vm7279_vm0, %v9678_v29  ;;  %v6293_v35 = vld [vmem:[%s8108_s1 + $0x30] sm:$0xff]   ;;  %v6294_v36 = vld [vmem:[%s8108_s1 + $0x38] sm:$0xff]   ;;  %v8193_v41 = vld [vmem:[%s8115_s8 + $0x20] ss:$12 sps:$4 sm:$0xff]   ;;  %vm7282_vm2 = vmmov (!%p4878_p9), 0  }
 0x33b   : > { %5232 = vmatprep.subr.bf16.mxu0 %v9678_v29  ;;  %5252 = vmatprep.mubr.msk.bf16.mxu1 %vm7279_vm0, %v9678_v29  ;;  %v8174_v37 = vld [vmem:[#allocation2] sm:$0xff]  ;;  %v8188_v40 = vld [vmem:[%s8115_s8 + $0x8] ss:$12 sps:$4 sm:$0xff]   ;;  %v8251_v59 = vld [vmem:[%s8115_s8 + $0x4c] ss:$12 sps:$4 sm:$0xff]  }
 0x33c   : > { %v8198_v42 = vld [vmem:[%s8115_s8 + $0x38] ss:$12 sps:$4 sm:$0xff]   ;;  %v8203_v43 = vld [vmem:[%s8115_s8 + $0x50] ss:$12 sps:$4 sm:$0xff]   ;;  %v8208_v44 = vld [vmem:[%s8115_s8 + $0x68] ss:$12 sps:$4 sm:$0xff]  }
 0x33d   : > { %v8213_v45 = vld [vmem:[%s8115_s8 + $0x80] ss:$12 sps:$4 sm:$0xff]   ;;  %v8218_v46 = vld [vmem:[%s8115_s8 + $0x98] ss:$12 sps:$4 sm:$0xff]   ;;  %v8233_v55 = vld [vmem:[%s8115_s8 + $0x1c] ss:$12 sps:$4 sm:$0xff]  }
 0x33e   : > { %5233 = vmatpush3.bf16.msra.mxu0 %v6288_v30  ;;  %v8176_v38 = vld [vmem:[#allocation2 + $0x8] sm:$0xff]  ;;  %v8226_v53 = vld [vmem:[%s8101_s26] sm:$0xff]  }
 0x33f   : > { %5234 = vmatprep.subr.bf16.mxu0 %v9678_v29  ;;  %v8181_v39 = vpack.c.bf16 %v8176_v38, %v8174_v37  ;;  %v8223_v50 = vld [vmem:[%s8115_s8 + $0x4] ss:$12 sps:$4 sm:$0xff]   ;;  %v8229_v54 = vld [vmem:[%s8115_s8] ss:$12 sps:$4 sm:$0xff]   ;;  %v8255_v60 = vld [vmem:[%s8115_s8 + $0x48] ss:$12 sps:$4 sm:$0xff]  }
 0x340   : > { %9887 = vst [vmem:[#allocation68_spill] sm:$0xff] %v8223_v50  ;;  %v8239_v56 = vld [vmem:[%s8115_s8 + $0x18] ss:$12 sps:$4 sm:$0xff]   ;;  %v8243_v57 = vld [vmem:[%s8115_s8 + $0x34] ss:$12 sps:$4 sm:$0xff]  }
 0x341   : > { %v8247_v58 = vld [vmem:[%s8115_s8 + $0x30] ss:$12 sps:$4 sm:$0xff]   ;;  %v8263_v62 = vld [vmem:[%s8115_s8 + $0x60] ss:$12 sps:$4 sm:$0xff]   ;;  %v8271_v0 = vld [vmem:[%s8115_s8 + $0x78] ss:$12 sps:$4 sm:$0xff]  }
 0x342   : > { %5235 = vmatpush3.bf16.msra.mxu0 %v6289_v31  ;;  %v8259_v61 = vld [vmem:[%s8115_s8 + $0x64] ss:$12 sps:$4 sm:$0xff]   ;;  %v8267_v63 = vld [vmem:[%s8115_s8 + $0x7c] ss:$12 sps:$4 sm:$0xff]   ;;  %v8275_v1 = vld [vmem:[%s8115_s8 + $0x94] ss:$12 sps:$4 sm:$0xff]  }
 0x343   : > { %5236 = vmatprep.subr.bf16.mxu0 %v9678_v29  ;;  %v8279_v2 = vld [vmem:[%s8115_s8 + $0x90] ss:$12 sps:$4 sm:$0xff]   ;;  %v8284_v3 = vld [vmem:[%s8115_s8 + $0xac] ss:$12 sps:$4 sm:$0xff]   ;;  %v8287_v4 = vld [vmem:[%s8115_s8 + $0xa8] ss:$12 sps:$4 sm:$0xff]  }
 0x344   : > { %v8291_v5 = vld [vmem:[%s8115_s8 + $0xb0] ss:$12 sps:$4 sm:$0xff]   ;;  %v8302_v11 = vld [vmem:[%s8122_s20] ss:$12 sps:$4 sm:$0xff]   ;;  %v8305_v12 = vld [vmem:[%s8122_s20 + $0x8] ss:$12 sps:$4 sm:$0xff]  }
 0x345   : > { %v8296_v6 = vld [vmem:[%s8122_s20 + $0x4] ss:$12 sps:$4 sm:$0xff]   ;;  %v8308_v15 = vld [vmem:[%s8122_s20 + $0x1c] ss:$12 sps:$4 sm:$0xff]   ;;  %v8316_v17 = vld [vmem:[%s8122_s20 + $0x20] ss:$12 sps:$4 sm:$0xff]  }
 0x346   : > { %5237 = vmatpush3.bf16.msra.mxu0 %v6290_v32  ;;  %v8312_v16 = vld [vmem:[%s8122_s20 + $0x18] ss:$12 sps:$4 sm:$0xff]   ;;  %v8320_v18 = vld [vmem:[%s8122_s20 + $0x34] ss:$12 sps:$4 sm:$0xff]   ;;  %v8328_v19 = vld [vmem:[%s8122_s20 + $0x30] ss:$12 sps:$4 sm:$0xff]  }
 0x347   : > { %5238 = vmatprep.subr.bf16.mxu0 %v9678_v29  ;;  %v8332_v20 = vld [vmem:[%s8122_s20 + $0x38] ss:$12 sps:$4 sm:$0xff]   ;;  %v8341_v22 = vld [vmem:[%s8122_s20 + $0x48] ss:$12 sps:$4 sm:$0xff]   ;;  %v8345_v23 = vld [vmem:[%s8122_s20 + $0x50] ss:$12 sps:$4 sm:$0xff]  }
 0x348   : > { %v8336_v21 = vld [vmem:[%s8122_s20 + $0x4c] ss:$12 sps:$4 sm:$0xff]   ;;  %v8349_v24 = vld [vmem:[%s8122_s20 + $0x64] ss:$12 sps:$4 sm:$0xff]   ;;  %v8358_v26 = vld [vmem:[%s8122_s20 + $0x68] ss:$12 sps:$4 sm:$0xff]  }
 0x349   : > { %v8354_v25 = vld [vmem:[%s8122_s20 + $0x60] ss:$12 sps:$4 sm:$0xff]   ;;  %9889 = vst [vmem:[#allocation70_spill] sm:$0xff] %v8358_v26  ;;  %v8362_v27 = vld [vmem:[%s8122_s20 + $0x7c] ss:$12 sps:$4 sm:$0xff]  }
 0x34a   : > { %5239 = vmatpush3.bf16.msra.mxu0 %v6291_v33  ;;  %9888 = vst [vmem:[#allocation69_spill] sm:$0xff] %v8354_v25  ;;  %9890 = vst [vmem:[#allocation71_spill] sm:$0xff] %v8362_v27  ;;  %v8367_v28 = vld [vmem:[%s8122_s20 + $0x78] ss:$12 sps:$4 sm:$0xff]   ;;  %v8371_v30 = vld [vmem:[%s8122_s20 + $0x80] ss:$12 sps:$4 sm:$0xff]  }
 0x34b   : > { %5240 = vmatprep.subr.bf16.mxu0 %v9678_v29  ;;  %9891 = vst [vmem:[#allocation72_spill] sm:$0xff] %v8367_v28  ;;  %9892 = vst [vmem:[#allocation73_spill] sm:$0xff] %v8371_v30  ;;  %v8375_v31 = vld [vmem:[%s8122_s20 + $0x94] ss:$12 sps:$4 sm:$0xff]   ;;  %v8380_v32 = vld [vmem:[%s8122_s20 + $0x90] ss:$12 sps:$4 sm:$0xff]  }
 0x34c   : > { %9893 = vst [vmem:[#allocation74_spill] sm:$0xff] %v8375_v31  ;;  %9894 = vst [vmem:[#allocation75_spill] sm:$0xff] %v8380_v32  ;;  %v8384_v33 = vld [vmem:[%s8122_s20 + $0x98] ss:$12 sps:$4 sm:$0xff]  }
 0x34d   : > { %9895 = vst [vmem:[#allocation76_spill] sm:$0xff] %v8384_v33 }
 0x34e   : > { %5241 = vmatpush3.bf16.msra.mxu0 %v6292_v34  ;;  %v8388_v34 = vld [vmem:[%s8122_s20 + $0xac] ss:$12 sps:$4 sm:$0xff]  }
 0x34f   : > { %5242 = vmatprep.subr.bf16.mxu0 %v9678_v29  ;;  %9896 = vst [vmem:[#allocation77_spill] sm:$0xff] %v8388_v34 }
 0x352   : > { %5243 = vmatpush3.bf16.msra.mxu0 %v6293_v35  ;;  %v8393_v35 = vld [vmem:[%s8122_s20 + $0xa8] ss:$12 sps:$4 sm:$0xff]  }
 0x353   : > { %5244 = vmatprep.subr.bf16.mxu0 %v9678_v29  ;;  %9897 = vst [vmem:[#allocation78_spill] sm:$0xff] %v8393_v35 }
 0x356   : > { %5245 = vmatpush3.bf16.msra.mxu0 %v6294_v36  ;;  %v8397_v36 = vld [vmem:[%s8122_s20 + $0xb0] ss:$12 sps:$4 sm:$0xff]  }
 0x357   : > { %5256 = vmatprep.subr.bf16.mxu0 %v9678_v29  ;;  %9898 = vst [vmem:[#allocation79_spill] sm:$0xff] %v8397_v36 }
 0x359   : > { %5247 = vmatmul.mubr.bf16.vlgmr.msra.gmra.mrb[0].mxu0 %v8181_v39 }
 0x35a   : > { %5272 = vmatprep.mubr.msk.bf16.mxu0 %vm7279_vm0, %v9678_v29  ;;  %5257 = vmatpush3.bf16.msra.mxu0 %v8188_v40 }
 0x35b   : > { %5258 = vmatprep.subr.bf16.mxu0 %v9678_v29 }
 0x35e   : > { %5259 = vmatpush3.bf16.msra.mxu0 %v8193_v41 }
 0x35f   : > { %5260 = vmatprep.subr.bf16.mxu0 %v9678_v29 }
 0x362   : > { %5261 = vmatpush3.bf16.msra.mxu0 %v8198_v42 }
 0x363   : > { %5262 = vmatprep.subr.bf16.mxu0 %v9678_v29 }
 0x366   : > { %5263 = vmatpush3.bf16.msra.mxu0 %v8203_v43 }
 0x367   : > { %5264 = vmatprep.subr.bf16.mxu0 %v9678_v29 }
 0x36a   : > { %5265 = vmatpush3.bf16.msra.mxu0 %v8208_v44 }
 0x36b   : > { %5266 = vmatprep.subr.bf16.mxu0 %v9678_v29 }
 0x36e   : > { %5267 = vmatpush3.bf16.msra.mxu0 %v8213_v45 }
 0x36f   : > { %5268 = vmatprep.subr.bf16.mxu0 %v9678_v29 }
 0x372   : > { %5269 = vmatpush3.bf16.msra.mxu0 %v8218_v46 }
 0x373   : > { %5270 = vmatprep.subr.bf16.mxu0 %v9678_v29 }
 0x376   : > { %5271 = vmatpush3.bf16.msra.mxu0 %v8291_v5 }
 0x377   : > { %5276 = vmatprep.subr.bf16.mxu0 %v9678_v29 }
 0x42c   : > { %v1135_v47 = vpop.f32.mrb[0].mxu0 }
 0x42d   : > { %v5248_v48 = vpop.f32.mrb[1].mxu0 }
 0x42e   : > { %v1138_v49 = vpop.f32.mrb[2].mxu0  ;;  %v6361_v48 = vld [vmem:[%s8108_s1 + $0x48] sm:$0xff]  }
 0x42f   : > { %v1142_v51 = vpack.c.bf16 %v1138_v49, %v1135_v47  ;;  %v5249_v52 = vpop.f32.mrb[3].mxu0  ;;  %v6360_v47 = vld [vmem:[%s8108_s1 + $0x40] sm:$0xff]   ;;  %v6362_v49 = vld [vmem:[%s8108_s1 + $0x50] sm:$0xff]  }
 0x430   : > { %v6365_v52 = vld [vmem:[%s8108_s1 + $0x68] sm:$0xff]  }
 0x431   : > { %5251 = vmatpush3.bf16.msra.mxu1 %v1142_v51  ;;  %v6364_v51 = vld [vmem:[%s8108_s1 + $0x60] sm:$0xff]  }
 0x432   : > { %1322 = vmatprep.subr.bf16.mxu1 %v8223_v50 }
 0x434   : > { %5253 = vmatmul.mubr.msk.bf16.vlgmr.msra.gmra.mrb[0].mxu1 %vm1148_vm1, %v8226_v53 }
 0x435   : > { %1323 = vmatpush1.bf16.msra.mxu1 %v8229_v54  ;;  %1354 = vmatprep.mubr.bf16.mxu1 %v9670_v7 }
 0x436   : > { %1324 = vmatprep.subr.bf16.mxu1 %v8233_v55 }
 0x439   : > { %1325 = vmatpush1.bf16.msra.mxu1 %v8239_v56 }
 0x43a   : > { %1326 = vmatprep.subr.bf16.mxu1 %v8243_v57 }
 0x43d   : > { %1327 = vmatpush1.bf16.msra.mxu1 %v8247_v58 }
 0x43e   : > { %1328 = vmatprep.subr.bf16.mxu1 %v8251_v59 }
 0x441   : > { %1329 = vmatpush1.bf16.msra.mxu1 %v8255_v60 }
 0x442   : > { %1330 = vmatprep.subr.bf16.mxu1 %v8259_v61 }
 0x445   : > { %1331 = vmatpush1.bf16.msra.mxu1 %v8263_v62 }
 0x446   : > { %1332 = vmatprep.subr.bf16.mxu1 %v8267_v63 }
 0x449   : > { %1333 = vmatpush1.bf16.msra.mxu1 %v8271_v0 }
 0x44a   : > { %1334 = vmatprep.subr.bf16.mxu1 %v8275_v1 }
 0x44d   : > { %1335 = vmatpush1.bf16.msra.mxu1 %v8279_v2 }
 0x44e   : > { %1336 = vmatprep.subr.bf16.mxu1 %v8284_v3 }
 0x451   : > { %1337 = vmatpush1.bf16.msra.mxu1 %v8287_v4 }
 0x452   : > { %1534 = vmatprep.subr.bf16.mxu1 %v8296_v6 }
 0x507   : > { %v1186_v8 = vpop.f32.mrb[0].mxu1 }
 0x508   : > { %v5254_v9 = vpop.f32.mrb[1].mxu1 }
 0x509   : > { %v1189_v10 = vpop.f32.mrb[2].mxu1  ;;  %v6367_v9 = vld [vmem:[%s8108_s1 + $0x78] sm:$0xff]  }
 0x50a   : > { %v1193_v13 = vpack.c.bf16 %v1189_v10, %v1186_v8  ;;  %v5255_v14 = vpop.f32.mrb[3].mxu1  ;;  %v6366_v8 = vld [vmem:[%s8108_s1 + $0x70] sm:$0xff]  }
 0x50c   : > { %1355 = vmatmul.mubr.bf16.vlgmr.msra.gmra.mrb[4].mxu1 %v1193_v13  ;;  %5273 = vmatmul.mubr.bf16.vlgmr.msra.gmra.mrb[4].mxu0 %v1193_v13 }
 0x50d   : > { %1535 = vmatpush1.bf16.msra.mxu1 %v8302_v11  ;;  %5277 = vmatpush3.bf16.msra.mxu0 %v8305_v12 }
 0x50e   : > { %1536 = vmatprep.subr.bf16.mxu1 %v8308_v15  ;;  %5278 = vmatprep.subr.bf16.mxu0 %v9678_v29 }
 0x50f   : > { %1566 = vmatprep.mubr.bf16.mxu1 %v9670_v7  ;;  %5292 = vmatprep.mubr.msk.bf16.mxu0 %vm7279_vm0, %v9678_v29 }
 0x511   : > { %1537 = vmatpush1.bf16.msra.mxu1 %v8312_v16  ;;  %5279 = vmatpush3.bf16.msra.mxu0 %v8316_v17 }
 0x512   : > { %1538 = vmatprep.subr.bf16.mxu1 %v8320_v18  ;;  %5280 = vmatprep.subr.bf16.mxu0 %v9678_v29 }
 0x515   : > { %1539 = vmatpush1.bf16.msra.mxu1 %v8328_v19  ;;  %5281 = vmatpush3.bf16.msra.mxu0 %v8332_v20 }
 0x516   : > { %1540 = vmatprep.subr.bf16.mxu1 %v8336_v21  ;;  %5282 = vmatprep.subr.bf16.mxu0 %v9678_v29 }
 0x519   : > { %1541 = vmatpush1.bf16.msra.mxu1 %v8341_v22  ;;  %5283 = vmatpush3.bf16.msra.mxu0 %v8345_v23 }
 0x51a   : > { %1542 = vmatprep.subr.bf16.mxu1 %v8349_v24  ;;  %5284 = vmatprep.subr.bf16.mxu0 %v9678_v29 }
 0x51d   : > { %1543 = vmatpush1.bf16.msra.mxu1 %v8354_v25  ;;  %5285 = vmatpush3.bf16.msra.mxu0 %v8358_v26 }
 0x51e   : > { %1544 = vmatprep.subr.bf16.mxu1 %v8362_v27  ;;  %5286 = vmatprep.subr.bf16.mxu0 %v9678_v29 }
 0x521   : > { %1545 = vmatpush1.bf16.msra.mxu1 %v8367_v28  ;;  %5287 = vmatpush3.bf16.msra.mxu0 %v8371_v30 }
 0x522   : > { %1546 = vmatprep.subr.bf16.mxu1 %v8375_v31  ;;  %5288 = vmatprep.subr.bf16.mxu0 %v9678_v29 }
 0x525   : > { %1547 = vmatpush1.bf16.msra.mxu1 %v8380_v32  ;;  %5289 = vmatpush3.bf16.msra.mxu0 %v8384_v33 }
 0x526   : > { %1548 = vmatprep.subr.bf16.mxu1 %v8388_v34  ;;  %5290 = vmatprep.subr.bf16.mxu0 %v9678_v29 }
 0x529   : > { %1549 = vmatpush1.bf16.msra.mxu1 %v8393_v35  ;;  %5291 = vmatpush3.bf16.msra.mxu0 %v8397_v36 }
 0x52a   : > { %5296 = vmatprep.subr.bf16.mxu1 %v9678_v29  ;;  %5316 = vmatprep.subr.bf16.mxu0 %v9678_v29 }
 0x52c   : > { %1567 = vmatmul.mubr.bf16.vlgmr.msra.gmra.mrb[4].mxu1 %v8181_v39  ;;  %5293 = vmatmul.mubr.bf16.vlgmr.msra.gmra.mrb[8].mxu0 %v8181_v39  ;;  %v6363_v39 = vld [vmem:[%s8108_s1 + $0x58] sm:$0xff]  }
 0x52d   : > { %5312 = vmatprep.mubr.msk.bf16.mxu1 %vm7279_vm0, %v9678_v29  ;;  %5318 = vmatprep.mubr.msk.bf16.mxu0 %vm7279_vm0, %v9678_v29 }
 0x52e   : > { %5297 = vmatpush3.bf16.msra.mxu1 %v6360_v47 }
 0x52f   : > { %5298 = vmatprep.subr.bf16.mxu1 %v9678_v29 }
 0x532   : > { %5299 = vmatpush3.bf16.msra.mxu1 %v6361_v48  ;;  %v1002_v48 = vlaneseq }
 0x533   : > { %5300 = vmatprep.subr.bf16.mxu1 %v9678_v29 }
 0x536   : > { %5301 = vmatpush3.bf16.msra.mxu1 %v6362_v49  ;;  %v1003_v49 = vshrl.u32 %v1002_v48, 7 }
 0x537   : > { %5302 = vmatprep.subr.bf16.mxu1 %v9678_v29 }
 0x538   : > { %v1008_v7 = vsub.s32 1, %v1003_v49  ;;  %v1012_v25 = vsub.s32 2, %v1003_v49 }
 0x53a   : > { %5303 = vmatpush3.bf16.msra.mxu1 %v6363_v39  ;;  %v1004_v39 = vsub.s32 0, %v1003_v49 }
 0x53b   : > { %5304 = vmatprep.subr.bf16.mxu1 %v9678_v29 }
 0x53e   : > { %5305 = vmatpush3.bf16.msra.mxu1 %v6364_v51  ;;  %v1017_v51 = vld [vmem:[%s636_s12] sm:$0x7] }
 0x53f   : > { %5306 = vmatprep.subr.bf16.mxu1 %v9678_v29  ;;  %v1026_v34 = vrot.slane %v1017_v51, %v1008_v7 }
 0x542   : > { %5307 = vmatpush3.bf16.msra.mxu1 %v6365_v52  ;;  %v1000_v52 = vld [vmem:[%s627_s15] sm:$0x7] }
 0x543   : > { %5308 = vmatprep.subr.bf16.mxu1 %v9678_v29  ;;  %v1005_v36 = vrot.slane %v1000_v52, %v1004_v39  ;;  %v1009_v35 = vrot.slane %v1000_v52, %v1008_v7 }
 0x546   : > { %5309 = vmatpush3.bf16.msra.mxu1 %v6366_v8  ;;  %v1022_v8 = vrot.slane %v1017_v51, %v1004_v39 }
 0x547   : > { %5310 = vmatprep.subr.bf16.mxu1 %v9678_v29 }
 0x548   : > { %v8431_v29 = vadd.f32 %v1022_v8, %v1005_v36 }
 0x54a   : > { %5311 = vmatpush3.bf16.msra.mxu1 %v6367_v9  ;;  %9899 = vst [vmem:[#allocation80_spill] sm:$0xff] %v8431_v29 }
 0x54b   : > { %1810 = vmatprep.subr.bf16.mxu1 %v8223_v50  ;;  %v8433_v50 = vadd.f32 %v1026_v34, %v1009_v35 }
 0x54d   : > { %9900 = vst [vmem:[#allocation81_spill] sm:$0xff] %v8433_v50 }
 0x5df   : > { %v1399_v10 = vpop.f32.mrb[4].mxu0 }
 0x5e0   : > { %v5274_v13 = vpop.f32.mrb[5].mxu0 }
 0x5e1   : > { %v1402_v14 = vpop.f32.mrb[6].mxu0 }
 0x5e2   : > { %v5275_v47 = vpop.f32.mrb[7].mxu0 }
 0x5ff   : > { %v1568_v9 = vpop.f32.mrb[4].mxu1  ;;  %v1611_v13 = vpop.f32.mrb[8].mxu0 }
 0x600   : > { %v5892_v47 = vadd.f32 %v8431_v29, %v1568_v9  ;;  %v1570_v33 = vpop.f32.mrb[5].mxu1  ;;  %v5294_v48 = vpop.f32.mrb[9].mxu0 }
 0x601   : > { %v1572_v32 = vpop.f32.mrb[6].mxu1  ;;  %v1614_v31 = vpop.f32.mrb[10].mxu0  ;;  %v5894_v39 = vadd.f32 %v8433_v50, %v1570_v33 }
 0x602   : > { %v4671_v30 = vmul.f32 -1.442695, %v5892_v47  ;;  %v5896_v28 = vadd.f32 %v8431_v29, %v1572_v32  ;;  %v1574_v27 = vpop.f32.mrb[7].mxu1  ;;  %v5295_v26 = vpop.f32.mrb[11].mxu0  ;;  %v8439_v32 = vrot.slane %v1017_v51, %v1012_v25 }
 0x603   : > { %v5898_v36 = vadd.f32 %v8433_v50, %v1574_v27  ;;  %v4673_v34 = vmul.f32 -1.442695, %v5894_v39 }
 0x604   : > { %6416 = vpow2.f32 %v4671_v30  ;;  %v4672_v7 = vmul.f32 -1.442695, %v5896_v28  ;;  %v8441_v30 = vrot.slane %v1000_v52, %v1012_v25  ;;  %v1612_v27 = vadd.f32 %v1611_v13, %v8439_v32 }
 0x605   : > { %v4674_v35 = vmul.f32 -1.442695, %v5898_v36 }
 0x606   : > { %6418 = vpow2.f32 %v4672_v7  ;;  %v1400_v36 = vadd.f32 %v1399_v10, %v8441_v30  ;;  %v1403_v49 = vadd.f32 %v1402_v14, %v8441_v30 }
 0x607   : > { %6420 = vpow2.f32 %v4673_v34 }
 0x608   : > { %6422 = vpow2.f32 %v4674_v35  ;;  %v1615_v35 = vadd.f32 %v1614_v31, %v8439_v32 }
 0x60e   : > { %v6417_v8 = vpop.eup %6416 }
 0x60f   : > { %v1626_v9 = vadd.f32 1.0, %v6417_v8 }
 0x610   : > { %v6419_v48 = vpop.eup %6418 }
 0x611   : > { %6424 = vrcp.f32 %v1626_v9  ;;  %v1627_v47 = vadd.f32 1.0, %v6419_v48  ;;  %v6421_v26 = vpop.eup %6420 }
 0x612   : > { %v6423_v33 = vpop.eup %6422  ;;  %v1640_v28 = vadd.f32 1.0, %v6421_v26 }
 0x613   : > { %6426 = vrcp.f32 %v1627_v47  ;;  %v1641_v39 = vadd.f32 1.0, %v6423_v33 }
 0x614   : > { %6428 = vrcp.f32 %v1640_v28 }
 0x615   : > { %6430 = vrcp.f32 %v1641_v39 }
 0x61b   : > { %v6425_v7 = vpop.eup %6424 }
 0x61c   : > { %v1646_v34 = vmul.f32 %v6425_v7, %v1612_v27 }
 0x61d   : > { %v6427_v8 = vpop.eup %6426 }
 0x61e   : > { %v1648_v51 = vadd.f32 %v1646_v34, %v1400_v36  ;;  %v1647_v9 = vmul.f32 %v6427_v8, %v1615_v35  ;;  %v6429_v52 = vpop.eup %6428  ;;  %v9901_v36 = vmov 0  }
 0x61f   : > { %v6431_v48 = vpop.eup %6430  ;;  %v1652_v13 = vsub.f32 1.0, %v6429_v52  ;;  %v1656_v10 = vmul.f32 %v6429_v52, %v8174_v37 }
 0x620   : > { %6432 = vtanh.f32 %v1648_v51  ;;  %v1649_v25 = vadd.f32 %v1647_v9, %v1403_v49  ;;  %v1653_v26 = vsub.f32 1.0, %v6431_v48  ;;  %v1657_v31 = vmul.f32 %v6431_v48, %v8176_v38 }
 0x621   : > { %v9902_v49 = vmov 0.0  }
 0x622   : > { %6434 = vtanh.f32 %v1649_v25 }
 0x62a   : > { %v6433_v47 = vpop.eup %6432 }
 0x62b   : > { %v1654_v33 = vmul.f32 %v6433_v47, %v1652_v13  ;;  %v9903_v13 = vld [vmem:[#allocation69_spill] sm:$0xff]  ;;  %v9904_v47 = vld [vmem:[#allocation70_spill] sm:$0xff] }
 0x62c   : > { %v6435_v28 = vpop.eup %6434 }
 0x62d   : > { %v1655_v27 = vmul.f32 %v6435_v28, %v1653_v26  ;;  %v8449_v7 = vadd.f32 %v1656_v10, %v1654_v33  ;;  %v9905_v26 = vld [vmem:[#allocation71_spill] sm:$0xff]  ;;  %v9906_v33 = vld [vmem:[#allocation72_spill] sm:$0xff]  ;;  %v9907_v10 = vld [vmem:[#allocation73_spill] sm:$0xff] }
 0x62e   : > { %v9908_v28 = vld [vmem:[#allocation74_spill] sm:$0xff] }
 0x62f   : > { %v8451_v14 = vadd.f32 %v1657_v31, %v1655_v27  ;;  %v9909_v27 = vld [vmem:[#allocation75_spill] sm:$0xff]  ;;  %v9910_v31 = vld [vmem:[#allocation76_spill] sm:$0xff] }
 0x631   : > { %v8455_v39 = vpack.c.bf16 %v8451_v14, %v8449_v7 }
 0x633   : > { %5313 = vmatmul.mubr.bf16.vlgmr.msra.gmra.mrb[8].mxu1 %v8455_v39 }
 0x634   : > { %1811 = vmatpush1.bf16.msra.mxu1 %v8229_v54  ;;  %1842 = vmatprep.mubr.bf16.mxu1 %v9901_v36 }
 0x635   : > { %1812 = vmatprep.subr.bf16.mxu1 %v8233_v55 }
 0x638   : > { %1813 = vmatpush1.bf16.msra.mxu1 %v8239_v56 }
 0x639   : > { %1814 = vmatprep.subr.bf16.mxu1 %v8243_v57 }
 0x63c   : > { %1815 = vmatpush1.bf16.msra.mxu1 %v8247_v58 }
 0x63d   : > { %1816 = vmatprep.subr.bf16.mxu1 %v8251_v59 }
 0x640   : > { %1817 = vmatpush1.bf16.msra.mxu1 %v8255_v60 }
 0x641   : > { %1818 = vmatprep.subr.bf16.mxu1 %v8259_v61 }
 0x644   : > { %1819 = vmatpush1.bf16.msra.mxu1 %v8263_v62 }
 0x645   : > { %1820 = vmatprep.subr.bf16.mxu1 %v8267_v63 }
 0x648   : > { %1821 = vmatpush1.bf16.msra.mxu1 %v8271_v0 }
 0x649   : > { %1822 = vmatprep.subr.bf16.mxu1 %v8275_v1 }
 0x64c   : > { %1823 = vmatpush1.bf16.msra.mxu1 %v8279_v2 }
 0x64d   : > { %1824 = vmatprep.subr.bf16.mxu1 %v8284_v3 }
 0x650   : > { %1825 = vmatpush1.bf16.msra.mxu1 %v8287_v4 }
 0x651   : > { %1894 = vmatprep.subr.bf16.mxu1 %v8296_v6 }
 0x706   : > { %v1760_v37 = vpop.f32.mrb[8].mxu1 }
 0x707   : > { %v5314_v38 = vpop.f32.mrb[9].mxu1 }
 0x708   : > { %v1763_v34 = vpop.f32.mrb[10].mxu1  ;;  %v9912_v38 = vld [vmem:[#allocation78_spill] sm:$0xff] }
 0x709   : > { %v1767_v35 = vpack.c.bf16 %v1763_v34, %v1760_v37  ;;  %v5315_v8 = vpop.f32.mrb[11].mxu1  ;;  %v9911_v37 = vld [vmem:[#allocation77_spill] sm:$0xff]  ;;  %v9913_v34 = vld [vmem:[#allocation79_spill] sm:$0xff] }
 0x70a   : > { %v6369_v8 = vld [vmem:[%s8108_s1 + $0x88] sm:$0xff]  }
 0x70b   : > { %5317 = vmatpush3.bf16.msra.mxu0 %v1767_v35  ;;  %v6368_v35 = vld [vmem:[%s8108_s1 + $0x80] sm:$0xff]  }
 0x70c   : > { %5322 = vmatprep.subr.bf16.mxu0 %v9902_v49 }
 0x70e   : > { %5319 = vmatmul.mubr.msk.bf16.vlgmr.msra.gmra.mrb[12].mxu0 %vm1148_vm1, %v8226_v53 }
 0x70f   : > { %5323 = vmatpush3.bf16.msra.mxu0 %v8188_v40  ;;  %5338 = vmatprep.mubr.msk.bf16.mxu0 %vm7279_vm0, %v9902_v49 }
 0x710   : > { %5324 = vmatprep.subr.bf16.mxu0 %v9902_v49 }
 0x713   : > { %5325 = vmatpush3.bf16.msra.mxu0 %v8193_v41 }
 0x714   : > { %5326 = vmatprep.subr.bf16.mxu0 %v9902_v49 }
 0x717   : > { %5327 = vmatpush3.bf16.msra.mxu0 %v8198_v42 }
 0x718   : > { %5328 = vmatprep.subr.bf16.mxu0 %v9902_v49 }
 0x71b   : > { %5329 = vmatpush3.bf16.msra.mxu0 %v8203_v43 }
 0x71c   : > { %5330 = vmatprep.subr.bf16.mxu0 %v9902_v49 }
 0x71f   : > { %5331 = vmatpush3.bf16.msra.mxu0 %v8208_v44 }
 0x720   : > { %5332 = vmatprep.subr.bf16.mxu0 %v9902_v49 }
 0x723   : > { %5333 = vmatpush3.bf16.msra.mxu0 %v8213_v45 }
 0x724   : > { %5334 = vmatprep.subr.bf16.mxu0 %v9902_v49 }
 0x727   : > { %5335 = vmatpush3.bf16.msra.mxu0 %v8218_v46 }
 0x728   : > { %5336 = vmatprep.subr.bf16.mxu0 %v9902_v49 }
 0x72b   : > { %5337 = vmatpush3.bf16.msra.mxu0 %v8291_v5 }
 0x72c   : > { %5342 = vmatprep.subr.bf16.mxu0 %v9902_v49 }
 0x7e1   : > { %v1802_v51 = vpop.f32.mrb[12].mxu0 }
 0x7e2   : > { %v5320_v9 = vpop.f32.mrb[13].mxu0 }
 0x7e3   : > { %v1805_v25 = vpop.f32.mrb[14].mxu0  ;;  %v6372_v9 = vld [vmem:[%s8108_s1 + $0xa0] sm:$0xff]  }
 0x7e4   : > { %v1809_v52 = vpack.c.bf16 %v1805_v25, %v1802_v51  ;;  %v5321_v48 = vpop.f32.mrb[15].mxu0  ;;  %v6370_v51 = vld [vmem:[%s8108_s1 + $0x90] sm:$0xff]   ;;  %v6373_v25 = vld [vmem:[%s8108_s1 + $0xa8] sm:$0xff]  }
 0x7e5   : > { %v6375_v48 = vld [vmem:[%s8108_s1 + $0xb8] sm:$0xff]  }
 0x7e6   : > { %1843 = vmatmul.mubr.bf16.vlgmr.msra.gmra.mrb[12].mxu1 %v1809_v52  ;;  %5339 = vmatmul.mubr.bf16.vlgmr.msra.gmra.mrb[16].mxu0 %v1809_v52  ;;  %v6374_v52 = vld [vmem:[%s8108_s1 + $0xb0] sm:$0xff]  }
 0x7e7   : > { %1895 = vmatpush1.bf16.msra.mxu1 %v8302_v11  ;;  %5343 = vmatpush3.bf16.msra.mxu0 %v8305_v12 }
 0x7e8   : > { %1896 = vmatprep.subr.bf16.mxu1 %v8308_v15  ;;  %5344 = vmatprep.subr.bf16.mxu0 %v9902_v49 }
 0x7e9   : > { %1926 = vmatprep.mubr.bf16.mxu1 %v9901_v36  ;;  %5358 = vmatprep.mubr.msk.bf16.mxu0 %vm7279_vm0, %v9902_v49 }
 0x7eb   : > { %1897 = vmatpush1.bf16.msra.mxu1 %v8312_v16  ;;  %5345 = vmatpush3.bf16.msra.mxu0 %v8316_v17 }
 0x7ec   : > { %1898 = vmatprep.subr.bf16.mxu1 %v8320_v18  ;;  %5346 = vmatprep.subr.bf16.mxu0 %v9902_v49 }
 0x7ef   : > { %1899 = vmatpush1.bf16.msra.mxu1 %v8328_v19  ;;  %5347 = vmatpush3.bf16.msra.mxu0 %v8332_v20 }
 0x7f0   : > { %1900 = vmatprep.subr.bf16.mxu1 %v8336_v21  ;;  %5348 = vmatprep.subr.bf16.mxu0 %v9902_v49 }
 0x7f3   : > { %1901 = vmatpush1.bf16.msra.mxu1 %v8341_v22  ;;  %5349 = vmatpush3.bf16.msra.mxu0 %v8345_v23 }
 0x7f4   : > { %1902 = vmatprep.subr.bf16.mxu1 %v8349_v24  ;;  %5350 = vmatprep.subr.bf16.mxu0 %v9902_v49 }
 0x7f7   : > { %1903 = vmatpush1.bf16.msra.mxu1 %v9903_v13  ;;  %5351 = vmatpush3.bf16.msra.mxu0 %v9904_v47 }
 0x7f8   : > { %1904 = vmatprep.subr.bf16.mxu1 %v9905_v26  ;;  %5352 = vmatprep.subr.bf16.mxu0 %v9902_v49 }
 0x7fb   : > { %1905 = vmatpush1.bf16.msra.mxu1 %v9906_v33  ;;  %5353 = vmatpush3.bf16.msra.mxu0 %v9907_v10 }
 0x7fc   : > { %1906 = vmatprep.subr.bf16.mxu1 %v9908_v28  ;;  %5354 = vmatprep.subr.bf16.mxu0 %v9902_v49 }
 0x7ff   : > { %1907 = vmatpush1.bf16.msra.mxu1 %v9909_v27  ;;  %5355 = vmatpush3.bf16.msra.mxu0 %v9910_v31 }
 0x800   : > { %1908 = vmatprep.subr.bf16.mxu1 %v9911_v37  ;;  %5356 = vmatprep.subr.bf16.mxu0 %v9902_v49 }
 0x803   : > { %1909 = vmatpush1.bf16.msra.mxu1 %v9912_v38  ;;  %5357 = vmatpush3.bf16.msra.mxu0 %v9913_v34 }
 0x804   : > { %5362 = vmatprep.subr.bf16.mxu1 %v9902_v49  ;;  %5382 = vmatprep.subr.bf16.mxu0 %v9902_v49 }
 0x806   : > { %1927 = vmatmul.mubr.bf16.vlgmr.msra.gmra.mrb[12].mxu1 %v8455_v39  ;;  %5359 = vmatmul.mubr.bf16.vlgmr.msra.gmra.mrb[20].mxu0 %v8455_v39  ;;  %v6371_v39 = vld [vmem:[%s8108_s1 + $0x98] sm:$0xff]  }
 0x807   : > { %5378 = vmatprep.mubr.msk.bf16.mxu1 %vm7279_vm0, %v9902_v49  ;;  %5384 = vmatprep.mubr.msk.bf16.mxu0 %vm7279_vm0, %v9902_v49 }
 0x808   : > { %5363 = vmatpush3.bf16.msra.mxu1 %v6368_v35 }
 0x809   : > { %5364 = vmatprep.subr.bf16.mxu1 %v9902_v49 }
 0x80c   : > { %5365 = vmatpush3.bf16.msra.mxu1 %v6369_v8 }
 0x80d   : > { %5366 = vmatprep.subr.bf16.mxu1 %v9902_v49 }
 0x810   : > { %5367 = vmatpush3.bf16.msra.mxu1 %v6370_v51 }
 0x811   : > { %5368 = vmatprep.subr.bf16.mxu1 %v9902_v49 }
 0x814   : > { %5369 = vmatpush3.bf16.msra.mxu1 %v6371_v39 }
 0x815   : > { %5370 = vmatprep.subr.bf16.mxu1 %v9902_v49 }
 0x818   : > { %5371 = vmatpush3.bf16.msra.mxu1 %v6372_v9 }
 0x819   : > { %5372 = vmatprep.subr.bf16.mxu1 %v9902_v49 }
 0x81c   : > { %5373 = vmatpush3.bf16.msra.mxu1 %v6373_v25 }
 0x81d   : > { %5374 = vmatprep.subr.bf16.mxu1 %v9902_v49 }
 0x820   : > { %5375 = vmatpush3.bf16.msra.mxu1 %v6374_v52 }
 0x821   : > { %5376 = vmatprep.subr.bf16.mxu1 %v9902_v49 }
 0x824   : > { %5377 = vmatpush3.bf16.msra.mxu1 %v6375_v48 }
 0x825   : > { %5388 = vmatprep.subr.bf16.mxu1 %v9902_v49 }
 0x8b9   : > { %v1887_v35 = vpop.f32.mrb[16].mxu0 }
 0x8ba   : > { %v5340_v8 = vpop.f32.mrb[17].mxu0 }
 0x8bb   : > { %v1890_v51 = vpop.f32.mrb[18].mxu0 }
 0x8bc   : > { %v5341_v39 = vpop.f32.mrb[19].mxu0 }
 0x8d9   : > { %v1928_v34 = vpop.f32.mrb[12].mxu1  ;;  %v1971_v9 = vpop.f32.mrb[20].mxu0 }
 0x8da   : > { %v5900_v38 = vadd.f32 %v8431_v29, %v1928_v34  ;;  %v1930_v37 = vpop.f32.mrb[13].mxu1  ;;  %v5360_v25 = vpop.f32.mrb[21].mxu0 }
 0x8db   : > { %v1932_v31 = vpop.f32.mrb[14].mxu1  ;;  %v1974_v27 = vpop.f32.mrb[22].mxu0  ;;  %v5902_v48 = vadd.f32 %v8433_v50, %v1930_v37  ;;  %v1972_v37 = vadd.f32 %v1971_v9, %v8439_v32 }
 0x8dc   : > { %v4700_v28 = vmul.f32 -1.442695, %v5900_v38  ;;  %v5904_v52 = vadd.f32 %v8431_v29, %v1932_v31  ;;  %v1934_v10 = vpop.f32.mrb[15].mxu1  ;;  %v5361_v33 = vpop.f32.mrb[23].mxu0 }
 0x8dd   : > { %v5906_v8 = vadd.f32 %v8433_v50, %v1934_v10  ;;  %v4702_v39 = vmul.f32 -1.442695, %v5902_v48  ;;  %v1888_v10 = vadd.f32 %v1887_v35, %v8441_v30  ;;  %v1975_v48 = vadd.f32 %v1974_v27, %v8439_v32 }
 0x8de   : > { %6436 = vpow2.f32 %v4700_v28  ;;  %v4701_v26 = vmul.f32 -1.442695, %v5904_v52 }
 0x8df   : > { %v4703_v47 = vmul.f32 -1.442695, %v5906_v8  ;;  %v1891_v8 = vadd.f32 %v1890_v51, %v8441_v30 }
 0x8e0   : > { %6438 = vpow2.f32 %v4701_v26 }
 0x8e1   : > { %6440 = vpow2.f32 %v4702_v39 }
 0x8e2   : > { %6442 = vpow2.f32 %v4703_v47 }
 0x8e8   : > { %v6437_v34 = vpop.eup %6436 }
 0x8e9   : > { %v1986_v25 = vadd.f32 1.0, %v6437_v34 }
 0x8ea   : > { %v6439_v13 = vpop.eup %6438 }
 0x8eb   : > { %6444 = vrcp.f32 %v1986_v25  ;;  %v1987_v38 = vadd.f32 1.0, %v6439_v13  ;;  %v6441_v31 = vpop.eup %6440 }
 0x8ec   : > { %v6443_v29 = vpop.eup %6442  ;;  %v2000_v33 = vadd.f32 1.0, %v6441_v31 }
 0x8ed   : > { %6446 = vrcp.f32 %v1987_v38  ;;  %v2001_v28 = vadd.f32 1.0, %v6443_v29 }
 0x8ee   : > { %6448 = vrcp.f32 %v2000_v33 }
 0x8ef   : > { %6450 = vrcp.f32 %v2001_v28 }
 0x8f5   : > { %v6445_v52 = vpop.eup %6444 }
 0x8f6   : > { %v2006_v26 = vmul.f32 %v6445_v52, %v1972_v37 }
 0x8f7   : > { %v6447_v47 = vpop.eup %6446 }
 0x8f8   : > { %v2008_v39 = vadd.f32 %v2006_v26, %v1888_v10  ;;  %v2007_v34 = vmul.f32 %v6447_v47, %v1975_v48  ;;  %v6449_v25 = vpop.eup %6448 }
 0x8f9   : > { %v6451_v38 = vpop.eup %6450  ;;  %v2012_v9 = vsub.f32 1.0, %v6449_v25  ;;  %v2016_v35 = vmul.f32 %v6449_v25, %v8449_v7 }
 0x8fa   : > { %6452 = vtanh.f32 %v2008_v39  ;;  %v2009_v13 = vadd.f32 %v2007_v34, %v1891_v8  ;;  %v2013_v31 = vsub.f32 1.0, %v6451_v38  ;;  %v2017_v27 = vmul.f32 %v6451_v38, %v8451_v14  ;;  %v9927_v34 = vld [vmem:[#allocation81_spill] sm:$0xff] }
 0x8fc   : > { %6454 = vtanh.f32 %v2009_v13 }
 0x904   : > { %v6453_v29 = vpop.eup %6452 }
 0x905   : > { %v2014_v50 = vmul.f32 %v6453_v29, %v2012_v9 }
 0x906   : > { %v6455_v33 = vpop.eup %6454 }
 0x907   : > { %v2015_v37 = vmul.f32 %v6455_v33, %v2013_v31  ;;  %v8563_v52 = vadd.f32 %v2016_v35, %v2014_v50 }
 0x909   : > { %v8565_v51 = vadd.f32 %v2017_v27, %v2015_v37 }
 0x90b   : > { %v8569_v28 = vpack.c.bf16 %v8565_v51, %v8563_v52 }
 0x90d   : > { %5379 = vmatmul.mubr.bf16.vlgmr.msra.gmra.mrb[16].mxu1 %v8569_v28 }
 0x90e   : > { %5389 = vmatpush3.bf16.msra.mxu1 %v8188_v40  ;;  %5404 = vmatprep.mubr.msk.bf16.mxu1 %vm7279_vm0, %v9902_v49 }
 0x90f   : > { %5390 = vmatprep.subr.bf16.mxu1 %v9902_v49 }
 0x912   : > { %5391 = vmatpush3.bf16.msra.mxu1 %v8193_v41 }
 0x913   : > { %5392 = vmatprep.subr.bf16.mxu1 %v9902_v49 }
 0x916   : > { %5393 = vmatpush3.bf16.msra.mxu1 %v8198_v42 }
 0x917   : > { %5394 = vmatprep.subr.bf16.mxu1 %v9902_v49 }
 0x91a   : > { %5395 = vmatpush3.bf16.msra.mxu1 %v8203_v43 }
 0x91b   : > { %5396 = vmatprep.subr.bf16.mxu1 %v9902_v49 }
 0x91e   : > { %5397 = vmatpush3.bf16.msra.mxu1 %v8208_v44  ;;  %v9914_v44 = vld [vmem:[#allocation68_spill] sm:$0xff] }
 0x91f   : > { %5398 = vmatprep.subr.bf16.mxu1 %v9902_v49 }
 0x922   : > { %5399 = vmatpush3.bf16.msra.mxu1 %v8213_v45 }
 0x923   : > { %5400 = vmatprep.subr.bf16.mxu1 %v9902_v49 }
 0x926   : > { %5401 = vmatpush3.bf16.msra.mxu1 %v8218_v46 }
 0x927   : > { %5402 = vmatprep.subr.bf16.mxu1 %v9902_v49 }
 0x92a   : > { %5403 = vmatpush3.bf16.msra.mxu1 %v8291_v5  ;;  %v6378_v5 = vld [vmem:[%s8108_s1 + $0xd0] sm:$0xff]  }
 0x92b   : > { %5408 = vmatprep.subr.bf16.mxu1 %v9902_v49 }
 0x9e0   : > { %v2120_v40 = vpop.f32.mrb[16].mxu1 }
 0x9e1   : > { %v5380_v41 = vpop.f32.mrb[17].mxu1 }
 0x9e2   : > { %v2123_v42 = vpop.f32.mrb[18].mxu1 }
 0x9e3   : > { %v2127_v43 = vpack.c.bf16 %v2123_v42, %v2120_v40  ;;  %v5381_v50 = vpop.f32.mrb[19].mxu1 }
 0x9e5   : > { %5383 = vmatpush3.bf16.msra.mxu0 %v2127_v43 }
 0x9e6   : > { %2170 = vmatprep.subr.bf16.mxu0 %v9914_v44 }
 0x9e8   : > { %5385 = vmatmul.mubr.msk.bf16.vlgmr.msra.gmra.mrb[24].mxu0 %vm1148_vm1, %v8226_v53 }
 0x9e9   : > { %2171 = vmatpush1.bf16.msra.mxu0 %v8229_v54  ;;  %2202 = vmatprep.mubr.bf16.mxu0 %v9901_v36 }
 0x9ea   : > { %2172 = vmatprep.subr.bf16.mxu0 %v8233_v55 }
 0x9ed   : > { %2173 = vmatpush1.bf16.msra.mxu0 %v8239_v56  ;;  %v9915_v56 = vld [vmem:[#allocation69_spill] sm:$0xff] }
 0x9ee   : > { %2174 = vmatprep.subr.bf16.mxu0 %v8243_v57  ;;  %v9916_v57 = vld [vmem:[#allocation70_spill] sm:$0xff] }
 0x9f1   : > { %2175 = vmatpush1.bf16.msra.mxu0 %v8247_v58  ;;  %v9917_v58 = vld [vmem:[#allocation71_spill] sm:$0xff] }
 0x9f2   : > { %2176 = vmatprep.subr.bf16.mxu0 %v8251_v59  ;;  %v9918_v59 = vld [vmem:[#allocation72_spill] sm:$0xff] }
 0x9f5   : > { %2177 = vmatpush1.bf16.msra.mxu0 %v8255_v60  ;;  %v9919_v60 = vld [vmem:[#allocation73_spill] sm:$0xff] }
 0x9f6   : > { %2178 = vmatprep.subr.bf16.mxu0 %v8259_v61  ;;  %v9920_v61 = vld [vmem:[#allocation74_spill] sm:$0xff] }
 0x9f9   : > { %2179 = vmatpush1.bf16.msra.mxu0 %v8263_v62  ;;  %v9921_v62 = vld [vmem:[#allocation75_spill] sm:$0xff] }
 0x9fa   : > { %2180 = vmatprep.subr.bf16.mxu0 %v8267_v63  ;;  %v9922_v63 = vld [vmem:[#allocation76_spill] sm:$0xff] }
 0x9fd   : > { %2181 = vmatpush1.bf16.msra.mxu0 %v8271_v0  ;;  %v9923_v0 = vld [vmem:[#allocation77_spill] sm:$0xff] }
 0x9fe   : > { %2182 = vmatprep.subr.bf16.mxu0 %v8275_v1  ;;  %v9924_v1 = vld [vmem:[#allocation78_spill] sm:$0xff] }
 0xa01   : > { %2183 = vmatpush1.bf16.msra.mxu0 %v8279_v2  ;;  %v9925_v2 = vld [vmem:[#allocation79_spill] sm:$0xff] }
 0xa02   : > { %2184 = vmatprep.subr.bf16.mxu0 %v8284_v3  ;;  %v6376_v3 = vld [vmem:[%s8108_s1 + $0xc0] sm:$0xff]  }
 0xa05   : > { %2185 = vmatpush1.bf16.msra.mxu0 %v8287_v4  ;;  %v6377_v4 = vld [vmem:[%s8108_s1 + $0xc8] sm:$0xff]  }
 0xa06   : > { %2254 = vmatprep.subr.bf16.mxu0 %v8296_v6  ;;  %v6379_v6 = vld [vmem:[%s8108_s1 + $0xd8] sm:$0xff]  }
 0xabb   : > { %v2162_v45 = vpop.f32.mrb[24].mxu0 }
 0xabc   : > { %v5386_v46 = vpop.f32.mrb[25].mxu0 }
 0xabd   : > { %v2165_v53 = vpop.f32.mrb[26].mxu0 }
 0xabe   : > { %v2169_v54 = vpack.c.bf16 %v2165_v53, %v2162_v45  ;;  %v5387_v55 = vpop.f32.mrb[27].mxu0 }
 0xac0   : > { %2203 = vmatmul.mubr.bf16.vlgmr.msra.gmra.mrb[28].mxu0 %v2169_v54  ;;  %5405 = vmatmul.mubr.bf16.vlgmr.msra.gmra.mrb[20].mxu1 %v2169_v54 }
 0xac1   : > { %2255 = vmatpush1.bf16.msra.mxu0 %v8302_v11  ;;  %5409 = vmatpush3.bf16.msra.mxu1 %v8305_v12  ;;  %v6380_v11 = vld [vmem:[%s8108_s1 + $0xe0] sm:$0xff]   ;;  %v6381_v12 = vld [vmem:[%s8108_s1 + $0xe8] sm:$0xff]  }
 0xac2   : > { %2256 = vmatprep.subr.bf16.mxu0 %v8308_v15  ;;  %5410 = vmatprep.subr.bf16.mxu1 %v9902_v49  ;;  %v6382_v15 = vld [vmem:[%s8108_s1 + $0xf0] sm:$0xff]  }
 0xac3   : > { %2286 = vmatprep.mubr.bf16.mxu0 %v9901_v36  ;;  %5424 = vmatprep.mubr.msk.bf16.mxu1 %vm7279_vm0, %v9902_v49 }
 0xac5   : > { %2257 = vmatpush1.bf16.msra.mxu0 %v8312_v16  ;;  %5411 = vmatpush3.bf16.msra.mxu1 %v8316_v17  ;;  %v6383_v16 = vld [vmem:[%s8108_s1 + $0xf8] sm:$0xff]  }
 0xac6   : > { %2258 = vmatprep.subr.bf16.mxu0 %v8320_v18  ;;  %5412 = vmatprep.subr.bf16.mxu1 %v9902_v49 }
 0xac9   : > { %2259 = vmatpush1.bf16.msra.mxu0 %v8328_v19  ;;  %5413 = vmatpush3.bf16.msra.mxu1 %v8332_v20 }
 0xaca   : > { %2260 = vmatprep.subr.bf16.mxu0 %v8336_v21  ;;  %5414 = vmatprep.subr.bf16.mxu1 %v9902_v49 }
 0xacd   : > { %2261 = vmatpush1.bf16.msra.mxu0 %v8341_v22  ;;  %5415 = vmatpush3.bf16.msra.mxu1 %v8345_v23  ;;  %v9926_v23 = vld [vmem:[#allocation80_spill] sm:$0xff] }
 0xace   : > { %2262 = vmatprep.subr.bf16.mxu0 %v8349_v24  ;;  %5416 = vmatprep.subr.bf16.mxu1 %v9902_v49 }
 0xad1   : > { %2263 = vmatpush1.bf16.msra.mxu0 %v9915_v56  ;;  %5417 = vmatpush3.bf16.msra.mxu1 %v9916_v57 }
 0xad2   : > { %2264 = vmatprep.subr.bf16.mxu0 %v9917_v58  ;;  %5418 = vmatprep.subr.bf16.mxu1 %v9902_v49 }
 0xad5   : > { %2265 = vmatpush1.bf16.msra.mxu0 %v9918_v59  ;;  %5419 = vmatpush3.bf16.msra.mxu1 %v9919_v60 }
 0xad6   : > { %2266 = vmatprep.subr.bf16.mxu0 %v9920_v61  ;;  %5420 = vmatprep.subr.bf16.mxu1 %v9902_v49 }
 0xad9   : > { %2267 = vmatpush1.bf16.msra.mxu0 %v9921_v62  ;;  %5421 = vmatpush3.bf16.msra.mxu1 %v9922_v63 }
 0xada   : > { %2268 = vmatprep.subr.bf16.mxu0 %v9923_v0  ;;  %5422 = vmatprep.subr.bf16.mxu1 %v9902_v49 }
 0xadd   : > { %2269 = vmatpush1.bf16.msra.mxu0 %v9924_v1  ;;  %5423 = vmatpush3.bf16.msra.mxu1 %v9925_v2 }
 0xade   : > { %5428 = vmatprep.subr.bf16.mxu0 %v9902_v49  ;;  %5448 = vmatprep.subr.bf16.mxu1 %v9902_v49 }
 0xae0   : > { %2287 = vmatmul.mubr.bf16.vlgmr.msra.gmra.mrb[28].mxu0 %v8569_v28  ;;  %5425 = vmatmul.mubr.bf16.vlgmr.msra.gmra.mrb[24].mxu1 %v8569_v28 }
 0xae1   : > { %5444 = vmatprep.mubr.msk.bf16.mxu0 %vm7279_vm0, %v9902_v49  ;;  %5450 = vmatprep.mubr.msk.bf16.mxu1 %vm7279_vm0, %v9902_v49 }
 0xae2   : > { %5429 = vmatpush3.bf16.msra.mxu0 %v6376_v3 }
 0xae3   : > { %5430 = vmatprep.subr.bf16.mxu0 %v9902_v49 }
 0xae6   : > { %5431 = vmatpush3.bf16.msra.mxu0 %v6377_v4 }
 0xae7   : > { %5432 = vmatprep.subr.bf16.mxu0 %v9902_v49 }
 0xaea   : > { %5433 = vmatpush3.bf16.msra.mxu0 %v6378_v5 }
 0xaeb   : > { %5434 = vmatprep.subr.bf16.mxu0 %v9902_v49 }
 0xaee   : > { %5435 = vmatpush3.bf16.msra.mxu0 %v6379_v6  ;;  %v8687_v6 = vld [vmem:[%s8115_s8 + $0x8] ss:$12 sps:$4 sm:$0xff]  }
 0xaef   : > { %5436 = vmatprep.subr.bf16.mxu0 %v9902_v49 }
 0xaf2   : > { %5437 = vmatpush3.bf16.msra.mxu0 %v6380_v11  ;;  %v8704_v11 = vld [vmem:[%s8115_s8 + $0x50] ss:$12 sps:$4 sm:$0xff]  }
 0xaf3   : > { %5438 = vmatprep.subr.bf16.mxu0 %v9902_v49 }
 0xaf6   : > { %5439 = vmatpush3.bf16.msra.mxu0 %v6381_v12  ;;  %v8709_v12 = vld [vmem:[%s8115_s8 + $0x68] ss:$12 sps:$4 sm:$0xff]  }
 0xaf7   : > { %5440 = vmatprep.subr.bf16.mxu0 %v9902_v49 }
 0xafa   : > { %5441 = vmatpush3.bf16.msra.mxu0 %v6382_v15  ;;  %v8714_v15 = vld [vmem:[%s8115_s8 + $0x80] ss:$12 sps:$4 sm:$0xff]  }
 0xafb   : > { %5442 = vmatprep.subr.bf16.mxu0 %v9902_v49 }
 0xafe   : > { %5443 = vmatpush3.bf16.msra.mxu0 %v6383_v16  ;;  %v8719_v16 = vld [vmem:[%s8115_s8 + $0x98] ss:$12 sps:$4 sm:$0xff]  }
 0xaff   : > { %5454 = vmatprep.subr.bf16.mxu0 %v9902_v49 }
 0xb93   : > { %v2247_v17 = vpop.f32.mrb[20].mxu1 }
 0xb94   : > { %v5406_v18 = vpop.f32.mrb[21].mxu1  ;;  %v2248_v50 = vadd.f32 %v2247_v17, %v8441_v30  ;;  %v8724_v17 = vld [vmem:[%s8115_s8 + $0xb0] ss:$12 sps:$4 sm:$0xff]  }
 0xb95   : > { %v2250_v19 = vpop.f32.mrb[22].mxu1 }
 0xb96   : > { %v5407_v20 = vpop.f32.mrb[23].mxu1  ;;  %v2251_v53 = vadd.f32 %v2250_v19, %v8441_v30 }
 0xbb3   : > { %v2288_v21 = vpop.f32.mrb[28].mxu0  ;;  %v2331_v22 = vpop.f32.mrb[24].mxu1 }
 0xbb4   : > { %v5908_v24 = vadd.f32 %v9926_v23, %v2288_v21  ;;  %v2290_v7 = vpop.f32.mrb[29].mxu0  ;;  %v5426_v14 = vpop.f32.mrb[25].mxu1  ;;  %v2332_v41 = vadd.f32 %v2331_v22, %v8439_v32 }
 0xbb5   : > { %v2292_v10 = vpop.f32.mrb[30].mxu0  ;;  %v2334_v26 = vpop.f32.mrb[26].mxu1  ;;  %v5910_v13 = vadd.f32 %v9927_v34, %v2290_v7  ;;  %v8733_v7 = vld [vmem:[%s8101_s26] sm:$0xff]   ;;  %v8738_v14 = vld [vmem:[%s8115_s8] ss:$12 sps:$4 sm:$0xff]  }
 0xbb6   : > { %v4729_v48 = vmul.f32 -1.442695, %v5908_v24  ;;  %v5912_v47 = vadd.f32 %v9926_v23, %v2292_v10  ;;  %v2294_v8 = vpop.f32.mrb[31].mxu0  ;;  %v5427_v39 = vpop.f32.mrb[27].mxu1  ;;  %v2335_v45 = vadd.f32 %v2334_v26, %v8439_v32  ;;  %v8729_v24 = vld [vmem:[%s8115_s8 + $0x4] ss:$12 sps:$4 sm:$0xff]  }
 0xbb7   : > { %v5914_v38 = vadd.f32 %v9927_v34, %v2294_v8  ;;  %v4731_v9 = vmul.f32 -1.442695, %v5910_v13  ;;  %v8743_v10 = vld [vmem:[%s8115_s8 + $0x1c] ss:$12 sps:$4 sm:$0xff]   ;;  %v8747_v26 = vld [vmem:[%s8115_s8 + $0x18] ss:$12 sps:$4 sm:$0xff]  }
 0xbb8   : > { %6456 = vpow2.f32 %v4729_v48  ;;  %v4730_v25 = vmul.f32 -1.442695, %v5912_v47  ;;  %v8751_v48 = vld [vmem:[%s8115_s8 + $0x34] ss:$12 sps:$4 sm:$0xff]   ;;  %v8755_v47 = vld [vmem:[%s8115_s8 + $0x30] ss:$12 sps:$4 sm:$0xff]  }
 0xbb9   : > { %v4732_v29 = vmul.f32 -1.442695, %v5914_v38  ;;  %v8759_v8 = vld [vmem:[%s8115_s8 + $0x4c] ss:$12 sps:$4 sm:$0xff]   ;;  %v8763_v39 = vld [vmem:[%s8115_s8 + $0x48] ss:$12 sps:$4 sm:$0xff]  }
 0xbba   : > { %6458 = vpow2.f32 %v4730_v25  ;;  %v8767_v13 = vld [vmem:[%s8115_s8 + $0x64] ss:$12 sps:$4 sm:$0xff]   ;;  %v8771_v25 = vld [vmem:[%s8115_s8 + $0x60] ss:$12 sps:$4 sm:$0xff]   ;;  %v8775_v38 = vld [vmem:[%s8115_s8 + $0x7c] ss:$12 sps:$4 sm:$0xff]  }
 0xbbb   : > { %6460 = vpow2.f32 %v4731_v9  ;;  %v8779_v9 = vld [vmem:[%s8115_s8 + $0x78] ss:$12 sps:$4 sm:$0xff]  }
 0xbbc   : > { %6462 = vpow2.f32 %v4732_v29  ;;  %v8783_v29 = vld [vmem:[%s8115_s8 + $0x94] ss:$12 sps:$4 sm:$0xff]  }
 0xbc2   : > { %v6457_v31 = vpop.eup %6456 }
 0xbc3   : > { %v2346_v35 = vadd.f32 1.0, %v6457_v31  ;;  %v8787_v31 = vld [vmem:[%s8115_s8 + $0x90] ss:$12 sps:$4 sm:$0xff]  }
 0xbc4   : > { %v6459_v33 = vpop.eup %6458 }
 0xbc5   : > { %6464 = vrcp.f32 %v2346_v35  ;;  %v2347_v37 = vadd.f32 1.0, %v6459_v33  ;;  %v6461_v27 = vpop.eup %6460  ;;  %v8791_v35 = vld [vmem:[%s8115_s8 + $0xac] ss:$12 sps:$4 sm:$0xff]   ;;  %v8795_v33 = vld [vmem:[%s8115_s8 + $0xa8] ss:$12 sps:$4 sm:$0xff]  }
 0xbc6   : > { %v6463_v28 = vpop.eup %6462  ;;  %v2360_v40 = vadd.f32 1.0, %v6461_v27 }
 0xbc7   : > { %6466 = vrcp.f32 %v2347_v37  ;;  %v2361_v42 = vadd.f32 1.0, %v6463_v28  ;;  %v8799_v37 = vld [vmem:[%s8122_s20 + $0x4] ss:$12 sps:$4 sm:$0xff]  }
 0xbc8   : > { %6468 = vrcp.f32 %v2360_v40 }
 0xbc9   : > { %6470 = vrcp.f32 %v2361_v42 }
 0xbcf   : > { %v6465_v43 = vpop.eup %6464 }
 0xbd0   : > { %v2366_v44 = vmul.f32 %v6465_v43, %v2332_v41  ;;  %v8803_v43 = vld [vmem:[%s8122_s20] ss:$12 sps:$4 sm:$0xff]  }
 0xbd1   : > { %v6467_v46 = vpop.eup %6466 }
 0xbd2   : > { %v2368_v54 = vadd.f32 %v2366_v44, %v2248_v50  ;;  %v2367_v55 = vmul.f32 %v6467_v46, %v2335_v45  ;;  %v6469_v57 = vpop.eup %6468  ;;  %v8807_v50 = vld [vmem:[%s8122_s20 + $0x8] ss:$12 sps:$4 sm:$0xff]   ;;  %v8819_v45 = vld [vmem:[%s8122_s20 + $0x18] ss:$12 sps:$4 sm:$0xff]   ;;  %v8823_v46 = vld [vmem:[%s8122_s20 + $0x20] ss:$12 sps:$4 sm:$0xff]  }
 0xbd3   : > { %v6471_v58 = vpop.eup %6470  ;;  %v2372_v59 = vsub.f32 1.0, %v6469_v57  ;;  %v2376_v63 = vmul.f32 %v6469_v57, %v8563_v52  ;;  %v8694_v52 = vld [vmem:[%s8115_s8 + $0x20] ss:$12 sps:$4 sm:$0xff]   ;;  %v8811_v44 = vld [vmem:[%s8122_s20 + $0x1c] ss:$12 sps:$4 sm:$0xff]  }
 0xbd4   : > { %6472 = vtanh.f32 %v2368_v54  ;;  %v2369_v56 = vadd.f32 %v2367_v55, %v2251_v53  ;;  %v2373_v61 = vsub.f32 1.0, %v6471_v58  ;;  %v2377_v2 = vmul.f32 %v6471_v58, %v8565_v51  ;;  %v8699_v51 = vld [vmem:[%s8115_s8 + $0x38] ss:$12 sps:$4 sm:$0xff]   ;;  %v8827_v53 = vld [vmem:[%s8122_s20 + $0x34] ss:$12 sps:$4 sm:$0xff]  }
 0xbd5   : > { %v8832_v54 = vld [vmem:[%s8122_s20 + $0x30] ss:$12 sps:$4 sm:$0xff]   ;;  %v8836_v55 = vld [vmem:[%s8122_s20 + $0x38] ss:$12 sps:$4 sm:$0xff]   ;;  %v8845_v57 = vld [vmem:[%s8122_s20 + $0x48] ss:$12 sps:$4 sm:$0xff]  }
 0xbd6   : > { %6474 = vtanh.f32 %v2369_v56  ;;  %v8840_v56 = vld [vmem:[%s8122_s20 + $0x4c] ss:$12 sps:$4 sm:$0xff]   ;;  %v8849_v58 = vld [vmem:[%s8122_s20 + $0x50] ss:$12 sps:$4 sm:$0xff]  }
 0xbde   : > { %v6473_v60 = vpop.eup %6472 }
 0xbdf   : > { %v2374_v62 = vmul.f32 %v6473_v60, %v2372_v59  ;;  %v8853_v59 = vld [vmem:[%s8122_s20 + $0x64] ss:$12 sps:$4 sm:$0xff]   ;;  %v8858_v60 = vld [vmem:[%s8122_s20 + $0x60] ss:$12 sps:$4 sm:$0xff]  }
 0xbe0   : > { %v6475_v0 = vpop.eup %6474  ;;  %9928 = vst [vmem:[#allocation68_spill] sm:$0xff] %v8853_v59  ;;  %9929 = vst [vmem:[#allocation69_spill] sm:$0xff] %v8858_v60 }
 0xbe1   : > { %v2375_v1 = vmul.f32 %v6475_v0, %v2373_v61  ;;  %v8677_v3 = vadd.f32 %v2376_v63, %v2374_v62  ;;  %v8862_v61 = vld [vmem:[%s8122_s20 + $0x68] ss:$12 sps:$4 sm:$0xff]   ;;  %v8871_v63 = vld [vmem:[%s8122_s20 + $0x78] ss:$12 sps:$4 sm:$0xff]   ;;  %v8875_v0 = vld [vmem:[%s8122_s20 + $0x80] ss:$12 sps:$4 sm:$0xff]  }
 0xbe2   : > { %9930 = vst [vmem:[#allocation70_spill] sm:$0xff] %v8862_v61  ;;  %v8866_v62 = vld [vmem:[%s8122_s20 + $0x7c] ss:$12 sps:$4 sm:$0xff]   ;;  %9932 = vst [vmem:[#allocation72_spill] sm:$0xff] %v8871_v63 }
 0xbe3   : > { %v8679_v4 = vadd.f32 %v2377_v2, %v2375_v1  ;;  %9931 = vst [vmem:[#allocation71_spill] sm:$0xff] %v8866_v62  ;;  %9933 = vst [vmem:[#allocation73_spill] sm:$0xff] %v8875_v0  ;;  %v8879_v1 = vld [vmem:[%s8122_s20 + $0x94] ss:$12 sps:$4 sm:$0xff]   ;;  %v8884_v2 = vld [vmem:[%s8122_s20 + $0x90] ss:$12 sps:$4 sm:$0xff]  }
 0xbe4   : > { %9934 = vst [vmem:[#allocation74_spill] sm:$0xff] %v8879_v1  ;;  %9935 = vst [vmem:[#allocation75_spill] sm:$0xff] %v8884_v2 }
 0xbe5   : > { %v8683_v5 = vpack.c.bf16 %v8679_v4, %v8677_v3 }
 0xbe7   : > { %5445 = vmatmul.mubr.bf16.vlgmr.msra.gmra.mrb[32].mxu0 %v8683_v5 }
 0xbe8   : > { %5455 = vmatpush3.bf16.msra.mxu0 %v8687_v6  ;;  %5470 = vmatprep.mubr.msk.bf16.mxu0 %vm7279_vm0, %v9902_v49 }
 0xbe9   : > { %5456 = vmatprep.subr.bf16.mxu0 %v9902_v49 }
 0xbec   : > { %5457 = vmatpush3.bf16.msra.mxu0 %v8694_v52 }
 0xbed   : > { %5458 = vmatprep.subr.bf16.mxu0 %v9902_v49 }
 0xbf0   : > { %5459 = vmatpush3.bf16.msra.mxu0 %v8699_v51 }
 0xbf1   : > { %5460 = vmatprep.subr.bf16.mxu0 %v9902_v49 }
 0xbf4   : > { %5461 = vmatpush3.bf16.msra.mxu0 %v8704_v11 }
 0xbf5   : > { %5462 = vmatprep.subr.bf16.mxu0 %v9902_v49 }
 0xbf8   : > { %5463 = vmatpush3.bf16.msra.mxu0 %v8709_v12 }
 0xbf9   : > { %5464 = vmatprep.subr.bf16.mxu0 %v9902_v49 }
 0xbfc   : > { %5465 = vmatpush3.bf16.msra.mxu0 %v8714_v15 }
 0xbfd   : > { %5466 = vmatprep.subr.bf16.mxu0 %v9902_v49 }
 0xc00   : > { %5467 = vmatpush3.bf16.msra.mxu0 %v8719_v16 }
 0xc01   : > { %5468 = vmatprep.subr.bf16.mxu0 %v9902_v49 }
 0xc04   : > { %5469 = vmatpush3.bf16.msra.mxu0 %v8724_v17 }
 0xc05   : > { %5474 = vmatprep.subr.bf16.mxu0 %v9902_v49 }
 0xcba   : > { %v2480_v18 = vpop.f32.mrb[32].mxu0 }
 0xcbb   : > { %v5446_v19 = vpop.f32.mrb[33].mxu0 }
 0xcbc   : > { %v2483_v20 = vpop.f32.mrb[34].mxu0  ;;  %v8892_v19 = vld [vmem:[%s8122_s20 + $0xac] ss:$12 sps:$4 sm:$0xff]  }
 0xcbd   : > { %v2487_v21 = vpack.c.bf16 %v2483_v20, %v2480_v18  ;;  %v5447_v22 = vpop.f32.mrb[35].mxu0  ;;  %v8888_v18 = vld [vmem:[%s8122_s20 + $0x98] ss:$12 sps:$4 sm:$0xff]   ;;  %9937 = vst [vmem:[#allocation77_spill] sm:$0xff] %v8892_v19  ;;  %v8897_v20 = vld [vmem:[%s8122_s20 + $0xa8] ss:$12 sps:$4 sm:$0xff]  }
 0xcbe   : > { %9936 = vst [vmem:[#allocation76_spill] sm:$0xff] %v8888_v18  ;;  %9938 = vst [vmem:[#allocation78_spill] sm:$0xff] %v8897_v20  ;;  %v6384_v22 = vld [vmem:[%s8108_s1 + $0x100] sm:$0xff]  }
 0xcbf   : > { %5449 = vmatpush3.bf16.msra.mxu1 %v2487_v21  ;;  %v8901_v21 = vld [vmem:[%s8122_s20 + $0xb0] ss:$12 sps:$4 sm:$0xff]  }
 0xcc0   : > { %2530 = vmatprep.subr.bf16.mxu1 %v8729_v24  ;;  %9939 = vst [vmem:[#allocation79_spill] sm:$0xff] %v8901_v21 }
 0xcc2   : > { %5451 = vmatmul.mubr.msk.bf16.vlgmr.msra.gmra.mrb[28].mxu1 %vm1148_vm1, %v8733_v7 }
 0xcc3   : > { %2531 = vmatpush1.bf16.msra.mxu1 %v8738_v14  ;;  %2562 = vmatprep.mubr.bf16.mxu1 %v9901_v36 }
 0xcc4   : > { %2532 = vmatprep.subr.bf16.mxu1 %v8743_v10 }
 0xcc7   : > { %2533 = vmatpush1.bf16.msra.mxu1 %v8747_v26 }
 0xcc8   : > { %2534 = vmatprep.subr.bf16.mxu1 %v8751_v48 }
 0xccb   : > { %2535 = vmatpush1.bf16.msra.mxu1 %v8755_v47 }
 0xccc   : > { %2536 = vmatprep.subr.bf16.mxu1 %v8759_v8 }
 0xccf   : > { %2537 = vmatpush1.bf16.msra.mxu1 %v8763_v39 }
 0xcd0   : > { %2538 = vmatprep.subr.bf16.mxu1 %v8767_v13 }
 0xcd3   : > { %2539 = vmatpush1.bf16.msra.mxu1 %v8771_v25 }
 0xcd4   : > { %2540 = vmatprep.subr.bf16.mxu1 %v8775_v38 }
 0xcd7   : > { %2541 = vmatpush1.bf16.msra.mxu1 %v8779_v9 }
 0xcd8   : > { %2542 = vmatprep.subr.bf16.mxu1 %v8783_v29 }
 0xcdb   : > { %2543 = vmatpush1.bf16.msra.mxu1 %v8787_v31 }
 0xcdc   : > { %2544 = vmatprep.subr.bf16.mxu1 %v8791_v35 }
 0xcdf   : > { %2545 = vmatpush1.bf16.msra.mxu1 %v8795_v33 }
 0xce0   : > { %2614 = vmatprep.subr.bf16.mxu1 %v8799_v37 }
 0xd95   : > { %v2522_v27 = vpop.f32.mrb[28].mxu1 }
 0xd96   : > { %v5452_v28 = vpop.f32.mrb[29].mxu1 }
 0xd97   : > { %v2525_v40 = vpop.f32.mrb[30].mxu1  ;;  %v6386_v28 = vld [vmem:[%s8108_s1 + $0x110] sm:$0xff]  }
 0xd98   : > { %v2529_v41 = vpack.c.bf16 %v2525_v40, %v2522_v27  ;;  %v5453_v42 = vpop.f32.mrb[31].mxu1  ;;  %v6385_v27 = vld [vmem:[%s8108_s1 + $0x108] sm:$0xff]   ;;  %v6388_v40 = vld [vmem:[%s8108_s1 + $0x120] sm:$0xff]  }
 0xd99   : > { %v6390_v42 = vld [vmem:[%s8108_s1 + $0x130] sm:$0xff]  }
 0xd9a   : > { %2563 = vmatmul.mubr.bf16.vlgmr.msra.gmra.mrb[32].mxu1 %v2529_v41  ;;  %5471 = vmatmul.mubr.bf16.vlgmr.msra.gmra.mrb[36].mxu0 %v2529_v41  ;;  %v6389_v41 = vld [vmem:[%s8108_s1 + $0x128] sm:$0xff]  }
 0xd9b   : > { %2615 = vmatpush1.bf16.msra.mxu1 %v8803_v43  ;;  %5475 = vmatpush3.bf16.msra.mxu0 %v8807_v50 }
 0xd9c   : > { %2616 = vmatprep.subr.bf16.mxu1 %v8811_v44  ;;  %5476 = vmatprep.subr.bf16.mxu0 %v9902_v49 }
 0xd9d   : > { %2646 = vmatprep.mubr.bf16.mxu1 %v9901_v36  ;;  %5490 = vmatprep.mubr.msk.bf16.mxu0 %vm7279_vm0, %v9902_v49 }
 0xd9f   : > { %2617 = vmatpush1.bf16.msra.mxu1 %v8819_v45  ;;  %5477 = vmatpush3.bf16.msra.mxu0 %v8823_v46 }
 0xda0   : > { %2618 = vmatprep.subr.bf16.mxu1 %v8827_v53  ;;  %5478 = vmatprep.subr.bf16.mxu0 %v9902_v49 }
 0xda3   : > { %2619 = vmatpush1.bf16.msra.mxu1 %v8832_v54  ;;  %5479 = vmatpush3.bf16.msra.mxu0 %v8836_v55 }
 0xda4   : > { %2620 = vmatprep.subr.bf16.mxu1 %v8840_v56  ;;  %5480 = vmatprep.subr.bf16.mxu0 %v9902_v49 }
 0xda7   : > { %2621 = vmatpush1.bf16.msra.mxu1 %v8845_v57  ;;  %5481 = vmatpush3.bf16.msra.mxu0 %v8849_v58 }
 0xda8   : > { %2622 = vmatprep.subr.bf16.mxu1 %v8853_v59  ;;  %5482 = vmatprep.subr.bf16.mxu0 %v9902_v49 }
 0xdab   : > { %2623 = vmatpush1.bf16.msra.mxu1 %v8858_v60  ;;  %5483 = vmatpush3.bf16.msra.mxu0 %v8862_v61 }
 0xdac   : > { %2624 = vmatprep.subr.bf16.mxu1 %v8866_v62  ;;  %5484 = vmatprep.subr.bf16.mxu0 %v9902_v49 }
 0xdaf   : > { %2625 = vmatpush1.bf16.msra.mxu1 %v8871_v63  ;;  %5485 = vmatpush3.bf16.msra.mxu0 %v8875_v0 }
 0xdb0   : > { %2626 = vmatprep.subr.bf16.mxu1 %v8879_v1  ;;  %5486 = vmatprep.subr.bf16.mxu0 %v9902_v49 }
 0xdb3   : > { %2627 = vmatpush1.bf16.msra.mxu1 %v8884_v2  ;;  %5487 = vmatpush3.bf16.msra.mxu0 %v8888_v18 }
 0xdb4   : > { %2628 = vmatprep.subr.bf16.mxu1 %v8892_v19  ;;  %5488 = vmatprep.subr.bf16.mxu0 %v9902_v49 }
 0xdb7   : > { %2629 = vmatpush1.bf16.msra.mxu1 %v8897_v20  ;;  %5489 = vmatpush3.bf16.msra.mxu0 %v8901_v21 }
 0xdb8   : > { %5494 = vmatprep.subr.bf16.mxu1 %v9902_v49  ;;  %5514 = vmatprep.subr.bf16.mxu0 %v9902_v49 }
 0xdba   : > { %2647 = vmatmul.mubr.bf16.vlgmr.msra.gmra.mrb[32].mxu1 %v8683_v5  ;;  %5491 = vmatmul.mubr.bf16.vlgmr.msra.gmra.mrb[40].mxu0 %v8683_v5  ;;  %v6387_v5 = vld [vmem:[%s8108_s1 + $0x118] sm:$0xff]  }
 0xdbb   : > { %5510 = vmatprep.mubr.msk.bf16.mxu1 %vm7279_vm0, %v9902_v49  ;;  %5516 = vmatprep.mubr.msk.bf16.mxu0 %vm7279_vm0, %v9902_v49 }
 0xdbc   : > { %5495 = vmatpush3.bf16.msra.mxu1 %v6384_v22  ;;  %v6391_v22 = vld [vmem:[%s8108_s1 + $0x138] sm:$0xff]  }
 0xdbd   : > { %5496 = vmatprep.subr.bf16.mxu1 %v9902_v49 }
 0xdc0   : > { %5497 = vmatpush3.bf16.msra.mxu1 %v6385_v27 }
 0xdc1   : > { %5498 = vmatprep.subr.bf16.mxu1 %v9902_v49 }
 0xdc4   : > { %5499 = vmatpush3.bf16.msra.mxu1 %v6386_v28 }
 0xdc5   : > { %5500 = vmatprep.subr.bf16.mxu1 %v9902_v49 }
 0xdc8   : > { %5501 = vmatpush3.bf16.msra.mxu1 %v6387_v5 }
 0xdc9   : > { %5502 = vmatprep.subr.bf16.mxu1 %v9902_v49 }
 0xdcc   : > { %5503 = vmatpush3.bf16.msra.mxu1 %v6388_v40 }
 0xdcd   : > { %5504 = vmatprep.subr.bf16.mxu1 %v9902_v49 }
 0xdd0   : > { %5505 = vmatpush3.bf16.msra.mxu1 %v6389_v41 }
 0xdd1   : > { %5506 = vmatprep.subr.bf16.mxu1 %v9902_v49 }
 0xdd4   : > { %5507 = vmatpush3.bf16.msra.mxu1 %v6390_v42 }
 0xdd5   : > { %5508 = vmatprep.subr.bf16.mxu1 %v9902_v49 }
 0xdd8   : > { %5509 = vmatpush3.bf16.msra.mxu1 %v6391_v22 }
 0xdd9   : > { %5520 = vmatprep.subr.bf16.mxu1 %v9902_v49 }
 0xe6d   : > { %v2607_v27 = vpop.f32.mrb[36].mxu0 }
 0xe6e   : > { %v5472_v28 = vpop.f32.mrb[37].mxu0 }
 0xe6f   : > { %v2610_v5 = vpop.f32.mrb[38].mxu0 }
 0xe70   : > { %v5473_v21 = vpop.f32.mrb[39].mxu0 }
 0xe8d   : > { %v2648_v20 = vpop.f32.mrb[32].mxu1  ;;  %v2691_v40 = vpop.f32.mrb[40].mxu0 }
 0xe8e   : > { %v5916_v19 = vadd.f32 %v9926_v23, %v2648_v20  ;;  %v2650_v18 = vpop.f32.mrb[33].mxu1  ;;  %v5492_v41 = vpop.f32.mrb[41].mxu0 }
 0xe8f   : > { %v2652_v2 = vpop.f32.mrb[34].mxu1  ;;  %v2694_v1 = vpop.f32.mrb[42].mxu0  ;;  %v5918_v22 = vadd.f32 %v9927_v34, %v2650_v18  ;;  %v2692_v18 = vadd.f32 %v2691_v40, %v8439_v32 }
 0xe90   : > { %v4758_v0 = vmul.f32 -1.442695, %v5916_v19  ;;  %v5920_v42 = vadd.f32 %v9926_v23, %v2652_v2  ;;  %v2654_v63 = vpop.f32.mrb[35].mxu1  ;;  %v5493_v62 = vpop.f32.mrb[43].mxu0 }
 0xe91   : > { %v5922_v28 = vadd.f32 %v9927_v34, %v2654_v63  ;;  %v4760_v21 = vmul.f32 -1.442695, %v5918_v22  ;;  %v2608_v63 = vadd.f32 %v2607_v27, %v8441_v30  ;;  %v2695_v22 = vadd.f32 %v2694_v1, %v8439_v32 }
 0xe92   : > { %6476 = vpow2.f32 %v4758_v0  ;;  %v4759_v61 = vmul.f32 -1.442695, %v5920_v42 }
 0xe93   : > { %v4761_v60 = vmul.f32 -1.442695, %v5922_v28  ;;  %v2611_v28 = vadd.f32 %v2610_v5, %v8441_v30 }
 0xe94   : > { %6478 = vpow2.f32 %v4759_v61 }
 0xe95   : > { %6480 = vpow2.f32 %v4760_v21 }
 0xe96   : > { %6482 = vpow2.f32 %v4761_v60 }
 0xe9c   : > { %v6477_v20 = vpop.eup %6476 }
 0xe9d   : > { %v2706_v41 = vadd.f32 1.0, %v6477_v20 }
 0xe9e   : > { %v6479_v59 = vpop.eup %6478 }
 0xe9f   : > { %6484 = vrcp.f32 %v2706_v41  ;;  %v2707_v19 = vadd.f32 1.0, %v6479_v59  ;;  %v6481_v2 = vpop.eup %6480 }
 0xea0   : > { %v6483_v23 = vpop.eup %6482  ;;  %v2720_v62 = vadd.f32 1.0, %v6481_v2 }
 0xea1   : > { %6486 = vrcp.f32 %v2707_v19  ;;  %v2721_v0 = vadd.f32 1.0, %v6483_v23 }
 0xea2   : > { %6488 = vrcp.f32 %v2720_v62 }
 0xea3   : > { %6490 = vrcp.f32 %v2721_v0 }
 0xea9   : > { %v6485_v42 = vpop.eup %6484 }
 0xeaa   : > { %v2726_v61 = vmul.f32 %v6485_v42, %v2692_v18 }
 0xeab   : > { %v6487_v60 = vpop.eup %6486 }
 0xeac   : > { %v2728_v21 = vadd.f32 %v2726_v61, %v2608_v63  ;;  %v2727_v20 = vmul.f32 %v6487_v60, %v2695_v22  ;;  %v6489_v41 = vpop.eup %6488 }
 0xead   : > { %v6491_v19 = vpop.eup %6490  ;;  %v2732_v40 = vsub.f32 1.0, %v6489_v41  ;;  %v2736_v27 = vmul.f32 %v6489_v41, %v8677_v3  ;;  %v9941_v41 = vld [vmem:[#allocation69_spill] sm:$0xff] }
 0xeae   : > { %6492 = vtanh.f32 %v2728_v21  ;;  %v2729_v59 = vadd.f32 %v2727_v20, %v2611_v28  ;;  %v2733_v2 = vsub.f32 1.0, %v6491_v19  ;;  %v2737_v1 = vmul.f32 %v6491_v19, %v8679_v4  ;;  %v9942_v19 = vld [vmem:[#allocation70_spill] sm:$0xff] }
 0xeb0   : > { %6494 = vtanh.f32 %v2729_v59  ;;  %v9940_v59 = vld [vmem:[#allocation68_spill] sm:$0xff] }
 0xeb8   : > { %v6493_v23 = vpop.eup %6492 }
 0xeb9   : > { %v2734_v34 = vmul.f32 %v6493_v23, %v2732_v40  ;;  %v9943_v40 = vld [vmem:[#allocation71_spill] sm:$0xff]  ;;  %v9944_v23 = vld [vmem:[#allocation72_spill] sm:$0xff] }
 0xeba   : > { %v6495_v62 = vpop.eup %6494 }
 0xebb   : > { %v2735_v18 = vmul.f32 %v6495_v62, %v2733_v2  ;;  %v8938_v42 = vadd.f32 %v2736_v27, %v2734_v34  ;;  %v9945_v2 = vld [vmem:[#allocation73_spill] sm:$0xff]  ;;  %v9946_v27 = vld [vmem:[#allocation74_spill] sm:$0xff]  ;;  %v9947_v62 = vld [vmem:[#allocation75_spill] sm:$0xff] }
 0xebd   : > { %v8940_v5 = vadd.f32 %v2737_v1, %v2735_v18  ;;  %v9948_v18 = vld [vmem:[#allocation76_spill] sm:$0xff]  ;;  %v9949_v1 = vld [vmem:[#allocation77_spill] sm:$0xff] }
 0xebf   : > { %v8944_v0 = vpack.c.bf16 %v8940_v5, %v8938_v42 }
 0xec1   : > { %5511 = vmatmul.mubr.bf16.vlgmr.msra.gmra.mrb[36].mxu1 %v8944_v0 }
 0xec2   : > { %5521 = vmatpush3.bf16.msra.mxu1 %v8687_v6  ;;  %5536 = vmatprep.mubr.msk.bf16.mxu1 %vm7279_vm0, %v9902_v49 }
 0xec3   : > { %5522 = vmatprep.subr.bf16.mxu1 %v9902_v49 }
 0xec6   : > { %5523 = vmatpush3.bf16.msra.mxu1 %v8694_v52 }
 0xec7   : > { %5524 = vmatprep.subr.bf16.mxu1 %v9902_v49 }
 0xeca   : > { %5525 = vmatpush3.bf16.msra.mxu1 %v8699_v51 }
 0xecb   : > { %5526 = vmatprep.subr.bf16.mxu1 %v9902_v49 }
 0xece   : > { %5527 = vmatpush3.bf16.msra.mxu1 %v8704_v11 }
 0xecf   : > { %5528 = vmatprep.subr.bf16.mxu1 %v9902_v49 }
 0xed2   : > { %5529 = vmatpush3.bf16.msra.mxu1 %v8709_v12 }
 0xed3   : > { %5530 = vmatprep.subr.bf16.mxu1 %v9902_v49 }
 0xed6   : > { %5531 = vmatpush3.bf16.msra.mxu1 %v8714_v15 }
 0xed7   : > { %5532 = vmatprep.subr.bf16.mxu1 %v9902_v49 }
 0xeda   : > { %5533 = vmatpush3.bf16.msra.mxu1 %v8719_v16 }
 0xedb   : > { %5534 = vmatprep.subr.bf16.mxu1 %v9902_v49 }
 0xede   : > { %5535 = vmatpush3.bf16.msra.mxu1 %v8724_v17 }
 0xedf   : > { %5540 = vmatprep.subr.bf16.mxu1 %v9902_v49 }
 0xf94   : > { %v2840_v34 = vpop.f32.mrb[36].mxu1 }
 0xf95   : > { %v5512_v3 = vpop.f32.mrb[37].mxu1 }
 0xf96   : > { %v2843_v4 = vpop.f32.mrb[38].mxu1  ;;  %v9951_v3 = vld [vmem:[#allocation79_spill] sm:$0xff] }
 0xf97   : > { %v2847_v63 = vpack.c.bf16 %v2843_v4, %v2840_v34  ;;  %v5513_v61 = vpop.f32.mrb[39].mxu1  ;;  %v9950_v34 = vld [vmem:[#allocation78_spill] sm:$0xff]  ;;  %v6392_v4 = vld [vmem:[%s8108_s1 + $0x140] sm:$0xff]  }
 0xf98   : > { %v6394_v61 = vld [vmem:[%s8108_s1 + $0x150] sm:$0xff]  }
 0xf99   : > { %5515 = vmatpush3.bf16.msra.mxu0 %v2847_v63  ;;  %v6393_v63 = vld [vmem:[%s8108_s1 + $0x148] sm:$0xff]  }
 0xf9a   : > { %2890 = vmatprep.subr.bf16.mxu0 %v8729_v24 }
 0xf9c   : > { %5517 = vmatmul.mubr.msk.bf16.vlgmr.msra.gmra.mrb[44].mxu0 %vm1148_vm1, %v8733_v7 }
 0xf9d   : > { %2891 = vmatpush1.bf16.msra.mxu0 %v8738_v14  ;;  %2922 = vmatprep.mubr.bf16.mxu0 %v9901_v36 }
 0xf9e   : > { %2892 = vmatprep.subr.bf16.mxu0 %v8743_v10 }
 0xfa1   : > { %2893 = vmatpush1.bf16.msra.mxu0 %v8747_v26 }
 0xfa2   : > { %2894 = vmatprep.subr.bf16.mxu0 %v8751_v48 }
 0xfa5   : > { %2895 = vmatpush1.bf16.msra.mxu0 %v8755_v47 }
 0xfa6   : > { %2896 = vmatprep.subr.bf16.mxu0 %v8759_v8 }
 0xfa9   : > { %2897 = vmatpush1.bf16.msra.mxu0 %v8763_v39 }
 0xfaa   : > { %2898 = vmatprep.subr.bf16.mxu0 %v8767_v13 }
 0xfad   : > { %2899 = vmatpush1.bf16.msra.mxu0 %v8771_v25 }
 0xfae   : > { %2900 = vmatprep.subr.bf16.mxu0 %v8775_v38 }
 0xfb1   : > { %2901 = vmatpush1.bf16.msra.mxu0 %v8779_v9 }
 0xfb2   : > { %2902 = vmatprep.subr.bf16.mxu0 %v8783_v29 }
 0xfb5   : > { %2903 = vmatpush1.bf16.msra.mxu0 %v8787_v31 }
 0xfb6   : > { %2904 = vmatprep.subr.bf16.mxu0 %v8791_v35 }
 0xfb9   : > { %2905 = vmatpush1.bf16.msra.mxu0 %v8795_v33 }
 0xfba   : > { %2974 = vmatprep.subr.bf16.mxu0 %v8799_v37 }
0x106f   : > { %v2882_v22 = vpop.f32.mrb[44].mxu0 }
0x1070   : > { %v5518_v60 = vpop.f32.mrb[45].mxu0 }
0x1071   : > { %v2885_v28 = vpop.f32.mrb[46].mxu0  ;;  %v6397_v60 = vld [vmem:[%s8108_s1 + $0x168] sm:$0xff]  }
0x1072   : > { %v2889_v21 = vpack.c.bf16 %v2885_v28, %v2882_v22  ;;  %v5519_v20 = vpop.f32.mrb[47].mxu0  ;;  %v6396_v22 = vld [vmem:[%s8108_s1 + $0x160] sm:$0xff]   ;;  %v6398_v28 = vld [vmem:[%s8108_s1 + $0x170] sm:$0xff]  }
0x1074   : > { %2923 = vmatmul.mubr.bf16.vlgmr.msra.gmra.mrb[48].mxu0 %v2889_v21  ;;  %5537 = vmatmul.mubr.bf16.vlgmr.msra.gmra.mrb[40].mxu1 %v2889_v21  ;;  %v6399_v21 = vld [vmem:[%s8108_s1 + $0x178] sm:$0xff]  }
0x1075   : > { %2975 = vmatpush1.bf16.msra.mxu0 %v8803_v43  ;;  %5541 = vmatpush3.bf16.msra.mxu1 %v8807_v50 }
0x1076   : > { %2976 = vmatprep.subr.bf16.mxu0 %v8811_v44  ;;  %5542 = vmatprep.subr.bf16.mxu1 %v9902_v49 }
0x1077   : > { %3006 = vmatprep.mubr.bf16.mxu0 %v9901_v36  ;;  %5556 = vmatprep.mubr.msk.bf16.mxu1 %vm7279_vm0, %v9902_v49 }
0x1079   : > { %2977 = vmatpush1.bf16.msra.mxu0 %v8819_v45  ;;  %5543 = vmatpush3.bf16.msra.mxu1 %v8823_v46 }
0x107a   : > { %2978 = vmatprep.subr.bf16.mxu0 %v8827_v53  ;;  %5544 = vmatprep.subr.bf16.mxu1 %v9902_v49 }
0x107d   : > { %2979 = vmatpush1.bf16.msra.mxu0 %v8832_v54  ;;  %5545 = vmatpush3.bf16.msra.mxu1 %v8836_v55 }
0x107e   : > { %2980 = vmatprep.subr.bf16.mxu0 %v8840_v56  ;;  %5546 = vmatprep.subr.bf16.mxu1 %v9902_v49 }
0x1081   : > { %2981 = vmatpush1.bf16.msra.mxu0 %v8845_v57  ;;  %5547 = vmatpush3.bf16.msra.mxu1 %v8849_v58 }
0x1082   : > { %2982 = vmatprep.subr.bf16.mxu0 %v9940_v59  ;;  %5548 = vmatprep.subr.bf16.mxu1 %v9902_v49 }
0x1085   : > { %2983 = vmatpush1.bf16.msra.mxu0 %v9941_v41  ;;  %5549 = vmatpush3.bf16.msra.mxu1 %v9942_v19 }
0x1086   : > { %2984 = vmatprep.subr.bf16.mxu0 %v9943_v40  ;;  %5550 = vmatprep.subr.bf16.mxu1 %v9902_v49 }
0x1089   : > { %2985 = vmatpush1.bf16.msra.mxu0 %v9944_v23  ;;  %5551 = vmatpush3.bf16.msra.mxu1 %v9945_v2 }
0x108a   : > { %2986 = vmatprep.subr.bf16.mxu0 %v9946_v27  ;;  %5552 = vmatprep.subr.bf16.mxu1 %v9902_v49 }
0x108d   : > { %2987 = vmatpush1.bf16.msra.mxu0 %v9947_v62  ;;  %5553 = vmatpush3.bf16.msra.mxu1 %v9948_v18 }
0x108e   : > { %2988 = vmatprep.subr.bf16.mxu0 %v9949_v1  ;;  %5554 = vmatprep.subr.bf16.mxu1 %v9902_v49 }
0x1091   : > { %2989 = vmatpush1.bf16.msra.mxu0 %v9950_v34  ;;  %5555 = vmatpush3.bf16.msra.mxu1 %v9951_v3  ;;  %v9952_v3 = vld [vmem:[#allocation80_spill] sm:$0xff] }
0x1092   : > { %5560 = vmatprep.subr.bf16.mxu0 %v9902_v49  ;;  %5580 = vmatprep.subr.bf16.mxu1 %v9902_v49 }
0x1094   : > { %3007 = vmatmul.mubr.bf16.vlgmr.msra.gmra.mrb[48].mxu0 %v8944_v0  ;;  %5557 = vmatmul.mubr.bf16.vlgmr.msra.gmra.mrb[44].mxu1 %v8944_v0  ;;  %v6395_v0 = vld [vmem:[%s8108_s1 + $0x158] sm:$0xff]  }
0x1095   : > { %5576 = vmatprep.mubr.msk.bf16.mxu0 %vm7279_vm0, %v9902_v49  ;;  %5582 = vmatprep.mubr.msk.bf16.mxu1 %vm7279_vm0, %v9902_v49 }
0x1096   : > { %5561 = vmatpush3.bf16.msra.mxu0 %v6392_v4 }
0x1097   : > { %5562 = vmatprep.subr.bf16.mxu0 %v9902_v49 }
0x109a   : > { %5563 = vmatpush3.bf16.msra.mxu0 %v6393_v63 }
0x109b   : > { %5564 = vmatprep.subr.bf16.mxu0 %v9902_v49 }
0x109e   : > { %5565 = vmatpush3.bf16.msra.mxu0 %v6394_v61 }
0x109f   : > { %5566 = vmatprep.subr.bf16.mxu0 %v9902_v49 }
0x10a2   : > { %5567 = vmatpush3.bf16.msra.mxu0 %v6395_v0 }
0x10a3   : > { %5568 = vmatprep.subr.bf16.mxu0 %v9902_v49 }
0x10a6   : > { %5569 = vmatpush3.bf16.msra.mxu0 %v6396_v22 }
0x10a7   : > { %5570 = vmatprep.subr.bf16.mxu0 %v9902_v49 }
0x10aa   : > { %5571 = vmatpush3.bf16.msra.mxu0 %v6397_v60 }
0x10ab   : > { %5572 = vmatprep.subr.bf16.mxu0 %v9902_v49 }
0x10ae   : > { %5573 = vmatpush3.bf16.msra.mxu0 %v6398_v28 }
0x10af   : > { %5574 = vmatprep.subr.bf16.mxu0 %v9902_v49 }
0x10b2   : > { %5575 = vmatpush3.bf16.msra.mxu0 %v6399_v21  ;;  %v9953_v21 = vld [vmem:[#allocation81_spill] sm:$0xff] }
0x10b3   : > { %5586 = vmatprep.subr.bf16.mxu0 %v9902_v49 }
0x1147   : > { %v2967_v20 = vpop.f32.mrb[40].mxu1 }
0x1148   : > { %v5538_v4 = vpop.f32.mrb[41].mxu1 }
0x1149   : > { %v2970_v63 = vpop.f32.mrb[42].mxu1 }
0x114a   : > { %v5539_v61 = vpop.f32.mrb[43].mxu1 }
0x1167   : > { %v3008_v0 = vpop.f32.mrb[48].mxu0  ;;  %v3051_v22 = vpop.f32.mrb[44].mxu1 }
0x1168   : > { %v5924_v34 = vadd.f32 %v9952_v3, %v3008_v0  ;;  %v3010_v1 = vpop.f32.mrb[49].mxu0  ;;  %v5558_v60 = vpop.f32.mrb[45].mxu1 }
0x1169   : > { %v3012_v18 = vpop.f32.mrb[50].mxu0  ;;  %v3054_v62 = vpop.f32.mrb[46].mxu1  ;;  %v5926_v40 = vadd.f32 %v9953_v21, %v3010_v1  ;;  %v3052_v1 = vadd.f32 %v3051_v22, %v8439_v32 }
0x116a   : > { %v4787_v27 = vmul.f32 -1.442695, %v5924_v34  ;;  %v5928_v28 = vadd.f32 %v9952_v3, %v3012_v18  ;;  %v3014_v2 = vpop.f32.mrb[51].mxu0  ;;  %v5559_v23 = vpop.f32.mrb[47].mxu1 }
0x116b   : > { %v5930_v4 = vadd.f32 %v9953_v21, %v3014_v2  ;;  %v4789_v61 = vmul.f32 -1.442695, %v5926_v40  ;;  %v2968_v2 = vadd.f32 %v2967_v20, %v8441_v30  ;;  %v3055_v40 = vadd.f32 %v3054_v62, %v8439_v32 }
0x116c   : > { %6496 = vpow2.f32 %v4787_v27  ;;  %v4788_v19 = vmul.f32 -1.442695, %v5928_v28 }
0x116d   : > { %v4790_v41 = vmul.f32 -1.442695, %v5930_v4  ;;  %v2971_v4 = vadd.f32 %v2970_v63, %v8441_v30 }
0x116e   : > { %6498 = vpow2.f32 %v4788_v19 }
0x116f   : > { %6500 = vpow2.f32 %v4789_v61 }
0x1170   : > { %6502 = vpow2.f32 %v4790_v41 }
0x1176   : > { %v6497_v0 = vpop.eup %6496 }
0x1177   : > { %v3066_v60 = vadd.f32 1.0, %v6497_v0 }
0x1178   : > { %v6499_v59 = vpop.eup %6498 }
0x1179   : > { %6504 = vrcp.f32 %v3066_v60  ;;  %v3067_v34 = vadd.f32 1.0, %v6499_v59  ;;  %v6501_v18 = vpop.eup %6500 }
0x117a   : > { %v6503_v3 = vpop.eup %6502  ;;  %v3080_v23 = vadd.f32 1.0, %v6501_v18 }
0x117b   : > { %6506 = vrcp.f32 %v3067_v34  ;;  %v3081_v27 = vadd.f32 1.0, %v6503_v3 }
0x117c   : > { %6508 = vrcp.f32 %v3080_v23 }
0x117d   : > { %6510 = vrcp.f32 %v3081_v27 }
0x1183   : > { %v6505_v28 = vpop.eup %6504 }
0x1184   : > { %v3086_v19 = vmul.f32 %v6505_v28, %v3052_v1 }
0x1185   : > { %v6507_v41 = vpop.eup %6506 }
0x1186   : > { %v3088_v61 = vadd.f32 %v3086_v19, %v2968_v2  ;;  %v3087_v0 = vmul.f32 %v6507_v41, %v3055_v40  ;;  %v6509_v60 = vpop.eup %6508 }
0x1187   : > { %v6511_v34 = vpop.eup %6510  ;;  %v3092_v22 = vsub.f32 1.0, %v6509_v60  ;;  %v3096_v20 = vmul.f32 %v6509_v60, %v8938_v42 }
0x1188   : > { %6512 = vtanh.f32 %v3088_v61  ;;  %v3089_v59 = vadd.f32 %v3087_v0, %v2971_v4  ;;  %v3093_v18 = vsub.f32 1.0, %v6511_v34  ;;  %v3097_v62 = vmul.f32 %v6511_v34, %v8940_v5  ;;  %v9967_v0 = vld [vmem:[#allocation81_spill] sm:$0xff] }
0x118a   : > { %6514 = vtanh.f32 %v3089_v59 }
0x1192   : > { %v6513_v3 = vpop.eup %6512 }
0x1193   : > { %v3094_v21 = vmul.f32 %v6513_v3, %v3092_v22 }
0x1194   : > { %v6515_v23 = vpop.eup %6514 }
0x1195   : > { %v3095_v1 = vmul.f32 %v6515_v23, %v3093_v18  ;;  %v9052_v28 = vadd.f32 %v3096_v20, %v3094_v21 }
0x1197   : > { %v9054_v63 = vadd.f32 %v3097_v62, %v3095_v1 }
0x1199   : > { %v9058_v27 = vpack.c.bf16 %v9054_v63, %v9052_v28 }
0x119b   : > { %5577 = vmatmul.mubr.bf16.vlgmr.msra.gmra.mrb[52].mxu0 %v9058_v27 }
0x119c   : > { %5587 = vmatpush3.bf16.msra.mxu0 %v8687_v6  ;;  %5602 = vmatprep.mubr.msk.bf16.mxu0 %vm7279_vm0, %v9902_v49 }
0x119d   : > { %5588 = vmatprep.subr.bf16.mxu0 %v9902_v49 }
0x11a0   : > { %5589 = vmatpush3.bf16.msra.mxu0 %v8694_v52 }
0x11a1   : > { %5590 = vmatprep.subr.bf16.mxu0 %v9902_v49 }
0x11a4   : > { %5591 = vmatpush3.bf16.msra.mxu0 %v8699_v51 }
0x11a5   : > { %5592 = vmatprep.subr.bf16.mxu0 %v9902_v49 }
0x11a8   : > { %5593 = vmatpush3.bf16.msra.mxu0 %v8704_v11 }
0x11a9   : > { %5594 = vmatprep.subr.bf16.mxu0 %v9902_v49 }
0x11ac   : > { %5595 = vmatpush3.bf16.msra.mxu0 %v8709_v12 }
0x11ad   : > { %5596 = vmatprep.subr.bf16.mxu0 %v9902_v49 }
0x11b0   : > { %5597 = vmatpush3.bf16.msra.mxu0 %v8714_v15 }
0x11b1   : > { %5598 = vmatprep.subr.bf16.mxu0 %v9902_v49 }
0x11b4   : > { %5599 = vmatpush3.bf16.msra.mxu0 %v8719_v16 }
0x11b5   : > { %5600 = vmatprep.subr.bf16.mxu0 %v9902_v49 }
0x11b8   : > { %5601 = vmatpush3.bf16.msra.mxu0 %v8724_v17 }
0x11b9   : > { %5606 = vmatprep.subr.bf16.mxu0 %v9902_v49 }
0x126e   : > { %v3200_v6 = vpop.f32.mrb[52].mxu0 }
0x126f   : > { %v5578_v52 = vpop.f32.mrb[53].mxu0 }
0x1270   : > { %v3203_v51 = vpop.f32.mrb[54].mxu0 }
0x1271   : > { %v3207_v11 = vpack.c.bf16 %v3203_v51, %v3200_v6  ;;  %v5579_v42 = vpop.f32.mrb[55].mxu0 }
0x1273   : > { %5581 = vmatpush3.bf16.msra.mxu1 %v3207_v11 }
0x1274   : > { %3250 = vmatprep.subr.bf16.mxu1 %v8729_v24 }
0x1276   : > { %5583 = vmatmul.mubr.msk.bf16.vlgmr.msra.gmra.mrb[48].mxu1 %vm1148_vm1, %v8733_v7  ;;  %v9954_v7 = vld [vmem:[#allocation68_spill] sm:$0xff] }
0x1277   : > { %3251 = vmatpush1.bf16.msra.mxu1 %v8738_v14  ;;  %3282 = vmatprep.mubr.bf16.mxu1 %v9901_v36  ;;  %v9955_v14 = vld [vmem:[#allocation69_spill] sm:$0xff] }
0x1278   : > { %3252 = vmatprep.subr.bf16.mxu1 %v8743_v10  ;;  %v9956_v10 = vld [vmem:[#allocation70_spill] sm:$0xff] }
0x127b   : > { %3253 = vmatpush1.bf16.msra.mxu1 %v8747_v26  ;;  %v9957_v26 = vld [vmem:[#allocation71_spill] sm:$0xff] }
0x127c   : > { %3254 = vmatprep.subr.bf16.mxu1 %v8751_v48  ;;  %v9958_v48 = vld [vmem:[#allocation72_spill] sm:$0xff] }
0x127f   : > { %3255 = vmatpush1.bf16.msra.mxu1 %v8755_v47  ;;  %v9959_v47 = vld [vmem:[#allocation73_spill] sm:$0xff] }
0x1280   : > { %3256 = vmatprep.subr.bf16.mxu1 %v8759_v8  ;;  %v9960_v8 = vld [vmem:[#allocation74_spill] sm:$0xff] }
0x1283   : > { %3257 = vmatpush1.bf16.msra.mxu1 %v8763_v39  ;;  %v9961_v39 = vld [vmem:[#allocation75_spill] sm:$0xff] }
0x1284   : > { %3258 = vmatprep.subr.bf16.mxu1 %v8767_v13  ;;  %v9962_v13 = vld [vmem:[#allocation76_spill] sm:$0xff] }
0x1287   : > { %3259 = vmatpush1.bf16.msra.mxu1 %v8771_v25  ;;  %v9963_v25 = vld [vmem:[#allocation77_spill] sm:$0xff] }
0x1288   : > { %3260 = vmatprep.subr.bf16.mxu1 %v8775_v38  ;;  %v9964_v38 = vld [vmem:[#allocation78_spill] sm:$0xff] }
0x128b   : > { %3261 = vmatpush1.bf16.msra.mxu1 %v8779_v9  ;;  %v9965_v9 = vld [vmem:[#allocation79_spill] sm:$0xff] }
0x128c   : > { %3262 = vmatprep.subr.bf16.mxu1 %v8783_v29  ;;  %v6400_v29 = vld [vmem:[%s8108_s1 + $0x180] sm:$0xff]  }
0x128f   : > { %3263 = vmatpush1.bf16.msra.mxu1 %v8787_v31  ;;  %v6401_v31 = vld [vmem:[%s8108_s1 + $0x188] sm:$0xff]  }
0x1290   : > { %3264 = vmatprep.subr.bf16.mxu1 %v8791_v35  ;;  %v6402_v35 = vld [vmem:[%s8108_s1 + $0x190] sm:$0xff]  }
0x1293   : > { %3265 = vmatpush1.bf16.msra.mxu1 %v8795_v33  ;;  %v6403_v33 = vld [vmem:[%s8108_s1 + $0x198] sm:$0xff]  }
0x1294   : > { %3334 = vmatprep.subr.bf16.mxu1 %v8799_v37  ;;  %v6404_v37 = vld [vmem:[%s8108_s1 + $0x1a0] sm:$0xff]  }
0x1349   : > { %v3242_v12 = vpop.f32.mrb[48].mxu1 }
0x134a   : > { %v5584_v15 = vpop.f32.mrb[49].mxu1 }
0x134b   : > { %v3245_v16 = vpop.f32.mrb[50].mxu1 }
0x134c   : > { %v3249_v17 = vpack.c.bf16 %v3245_v16, %v3242_v12  ;;  %v5585_v24 = vpop.f32.mrb[51].mxu1 }
0x134e   : > { %3283 = vmatmul.mubr.bf16.vlgmr.msra.gmra.mrb[52].mxu1 %v3249_v17  ;;  %5603 = vmatmul.mubr.bf16.vlgmr.msra.gmra.mrb[56].mxu0 %v3249_v17 }
0x134f   : > { %3335 = vmatpush1.bf16.msra.mxu1 %v8803_v43  ;;  %5607 = vmatpush3.bf16.msra.mxu0 %v8807_v50  ;;  %v6405_v43 = vld [vmem:[%s8108_s1 + $0x1a8] sm:$0xff]   ;;  %v6406_v50 = vld [vmem:[%s8108_s1 + $0x1b0] sm:$0xff]  }
0x1350   : > { %3336 = vmatprep.subr.bf16.mxu1 %v8811_v44  ;;  %5608 = vmatprep.subr.bf16.mxu0 %v9902_v49  ;;  %v6407_v44 = vld [vmem:[%s8108_s1 + $0x1b8] sm:$0xff]  }
0x1351   : > { %3366 = vmatprep.mubr.bf16.mxu1 %v9901_v36  ;;  %5622 = vmatprep.mubr.msk.bf16.mxu0 %vm7279_vm0, %v9902_v49 }
0x1353   : > { %3337 = vmatpush1.bf16.msra.mxu1 %v8819_v45  ;;  %5609 = vmatpush3.bf16.msra.mxu0 %v8823_v46 }
0x1354   : > { %3338 = vmatprep.subr.bf16.mxu1 %v8827_v53  ;;  %5610 = vmatprep.subr.bf16.mxu0 %v9902_v49 }
0x1357   : > { %3339 = vmatpush1.bf16.msra.mxu1 %v8832_v54  ;;  %5611 = vmatpush3.bf16.msra.mxu0 %v8836_v55 }
0x1358   : > { %3340 = vmatprep.subr.bf16.mxu1 %v8840_v56  ;;  %5612 = vmatprep.subr.bf16.mxu0 %v9902_v49 }
0x135b   : > { %3341 = vmatpush1.bf16.msra.mxu1 %v8845_v57  ;;  %5613 = vmatpush3.bf16.msra.mxu0 %v8849_v58  ;;  %v9966_v57 = vld [vmem:[#allocation80_spill] sm:$0xff] }
0x135c   : > { %3342 = vmatprep.subr.bf16.mxu1 %v9954_v7  ;;  %5614 = vmatprep.subr.bf16.mxu0 %v9902_v49 }
0x135f   : > { %3343 = vmatpush1.bf16.msra.mxu1 %v9955_v14  ;;  %5615 = vmatpush3.bf16.msra.mxu0 %v9956_v10 }
0x1360   : > { %3344 = vmatprep.subr.bf16.mxu1 %v9957_v26  ;;  %5616 = vmatprep.subr.bf16.mxu0 %v9902_v49 }
0x1363   : > { %3345 = vmatpush1.bf16.msra.mxu1 %v9958_v48  ;;  %5617 = vmatpush3.bf16.msra.mxu0 %v9959_v47 }
0x1364   : > { %3346 = vmatprep.subr.bf16.mxu1 %v9960_v8  ;;  %5618 = vmatprep.subr.bf16.mxu0 %v9902_v49 }
0x1367   : > { %3347 = vmatpush1.bf16.msra.mxu1 %v9961_v39  ;;  %5619 = vmatpush3.bf16.msra.mxu0 %v9962_v13 }
0x1368   : > { %3348 = vmatprep.subr.bf16.mxu1 %v9963_v25  ;;  %5620 = vmatprep.subr.bf16.mxu0 %v9902_v49 }
0x136b   : > { %3349 = vmatpush1.bf16.msra.mxu1 %v9964_v38  ;;  %5621 = vmatpush3.bf16.msra.mxu0 %v9965_v9 }
0x136c   : > { %5626 = vmatprep.subr.bf16.mxu1 %v9902_v49  ;;  %5646 = vmatprep.subr.bf16.mxu0 %v9902_v49 }
0x136e   : > { %3367 = vmatmul.mubr.bf16.vlgmr.msra.gmra.mrb[52].mxu1 %v9058_v27  ;;  %5623 = vmatmul.mubr.bf16.vlgmr.msra.gmra.mrb[60].mxu0 %v9058_v27 }
0x136f   : > { %5642 = vmatprep.mubr.msk.bf16.mxu1 %vm7279_vm0, %v9902_v49  ;;  %5648 = vmatprep.mubr.msk.bf16.mxu0 %vm7279_vm0, %v9902_v49 }
0x1370   : > { %5627 = vmatpush3.bf16.msra.mxu1 %v6400_v29 }
0x1371   : > { %5628 = vmatprep.subr.bf16.mxu1 %v9902_v49 }
0x1374   : > { %5629 = vmatpush3.bf16.msra.mxu1 %v6401_v31 }
0x1375   : > { %5630 = vmatprep.subr.bf16.mxu1 %v9902_v49 }
0x1378   : > { %5631 = vmatpush3.bf16.msra.mxu1 %v6402_v35 }
0x1379   : > { %5632 = vmatprep.subr.bf16.mxu1 %v9902_v49 }
0x137c   : > { %5633 = vmatpush3.bf16.msra.mxu1 %v6403_v33  ;;  %v9176_v33 = vld [vmem:[%s8115_s8 + $0x8] ss:$12 sps:$4 sm:$0xff]  }
0x137d   : > { %5634 = vmatprep.subr.bf16.mxu1 %v9902_v49 }
0x1380   : > { %5635 = vmatpush3.bf16.msra.mxu1 %v6404_v37  ;;  %v9193_v37 = vld [vmem:[%s8115_s8 + $0x50] ss:$12 sps:$4 sm:$0xff]  }
0x1381   : > { %5636 = vmatprep.subr.bf16.mxu1 %v9902_v49 }
0x1384   : > { %5637 = vmatpush3.bf16.msra.mxu1 %v6405_v43  ;;  %v9198_v43 = vld [vmem:[%s8115_s8 + $0x68] ss:$12 sps:$4 sm:$0xff]  }
0x1385   : > { %5638 = vmatprep.subr.bf16.mxu1 %v9902_v49 }
0x1388   : > { %5639 = vmatpush3.bf16.msra.mxu1 %v6406_v50  ;;  %v9203_v50 = vld [vmem:[%s8115_s8 + $0x80] ss:$12 sps:$4 sm:$0xff]  }
0x1389   : > { %5640 = vmatprep.subr.bf16.mxu1 %v9902_v49 }
0x138c   : > { %5641 = vmatpush3.bf16.msra.mxu1 %v6407_v44  ;;  %v9208_v44 = vld [vmem:[%s8115_s8 + $0x98] ss:$12 sps:$4 sm:$0xff]  }
0x138d   : > { %5652 = vmatprep.subr.bf16.mxu1 %v9902_v49 }
0x1421   : > { %v3327_v45 = vpop.f32.mrb[56].mxu0 }
0x1422   : > { %v5604_v46 = vpop.f32.mrb[57].mxu0  ;;  %v3328_v42 = vadd.f32 %v3327_v45, %v8441_v30  ;;  %v9213_v45 = vld [vmem:[%s8115_s8 + $0xb0] ss:$12 sps:$4 sm:$0xff]  }
0x1423   : > { %v3330_v53 = vpop.f32.mrb[58].mxu0 }
0x1424   : > { %v5605_v54 = vpop.f32.mrb[59].mxu0  ;;  %v3331_v17 = vadd.f32 %v3330_v53, %v8441_v30 }
0x1441   : > { %v3368_v55 = vpop.f32.mrb[52].mxu1  ;;  %v3411_v56 = vpop.f32.mrb[60].mxu0 }
0x1442   : > { %v5932_v58 = vadd.f32 %v9966_v57, %v3368_v55  ;;  %v3370_v5 = vpop.f32.mrb[53].mxu1  ;;  %v5624_v21 = vpop.f32.mrb[61].mxu0  ;;  %v3412_v52 = vadd.f32 %v3411_v56, %v8439_v32 }
0x1443   : > { %v3372_v2 = vpop.f32.mrb[54].mxu1  ;;  %v3414_v19 = vpop.f32.mrb[62].mxu0  ;;  %v5934_v59 = vadd.f32 %v9967_v0, %v3370_v5  ;;  %v9222_v5 = vld [vmem:[%s8101_s26] sm:$0xff]   ;;  %v9227_v21 = vld [vmem:[%s8115_s8] ss:$12 sps:$4 sm:$0xff]  }
0x1444   : > { %v4816_v40 = vmul.f32 -1.442695, %v5932_v58  ;;  %v5936_v41 = vadd.f32 %v9966_v57, %v3372_v2  ;;  %v3374_v4 = vpop.f32.mrb[55].mxu1  ;;  %v5625_v61 = vpop.f32.mrb[63].mxu0  ;;  %v3415_v15 = vadd.f32 %v3414_v19, %v8439_v32  ;;  %v9218_v58 = vld [vmem:[%s8115_s8 + $0x4] ss:$12 sps:$4 sm:$0xff]  }
0x1445   : > { %v5938_v34 = vadd.f32 %v9967_v0, %v3374_v4  ;;  %v4818_v22 = vmul.f32 -1.442695, %v5934_v59  ;;  %v9232_v2 = vld [vmem:[%s8115_s8 + $0x1c] ss:$12 sps:$4 sm:$0xff]   ;;  %v9236_v19 = vld [vmem:[%s8115_s8 + $0x18] ss:$12 sps:$4 sm:$0xff]  }
0x1446   : > { %6516 = vpow2.f32 %v4816_v40  ;;  %v4817_v60 = vmul.f32 -1.442695, %v5936_v41  ;;  %v9240_v40 = vld [vmem:[%s8115_s8 + $0x34] ss:$12 sps:$4 sm:$0xff]   ;;  %v9244_v41 = vld [vmem:[%s8115_s8 + $0x30] ss:$12 sps:$4 sm:$0xff]  }
0x1447   : > { %v4819_v3 = vmul.f32 -1.442695, %v5938_v34  ;;  %v9248_v4 = vld [vmem:[%s8115_s8 + $0x4c] ss:$12 sps:$4 sm:$0xff]   ;;  %v9252_v61 = vld [vmem:[%s8115_s8 + $0x48] ss:$12 sps:$4 sm:$0xff]  }
0x1448   : > { %6518 = vpow2.f32 %v4817_v60  ;;  %v9256_v59 = vld [vmem:[%s8115_s8 + $0x64] ss:$12 sps:$4 sm:$0xff]   ;;  %v9260_v60 = vld [vmem:[%s8115_s8 + $0x60] ss:$12 sps:$4 sm:$0xff]   ;;  %v9264_v34 = vld [vmem:[%s8115_s8 + $0x7c] ss:$12 sps:$4 sm:$0xff]  }
0x1449   : > { %6520 = vpow2.f32 %v4818_v22  ;;  %v9268_v22 = vld [vmem:[%s8115_s8 + $0x78] ss:$12 sps:$4 sm:$0xff]  }
0x144a   : > { %6522 = vpow2.f32 %v4819_v3  ;;  %v9272_v3 = vld [vmem:[%s8115_s8 + $0x94] ss:$12 sps:$4 sm:$0xff]  }
0x1450   : > { %v6517_v18 = vpop.eup %6516 }
0x1451   : > { %v3426_v20 = vadd.f32 1.0, %v6517_v18  ;;  %v9276_v18 = vld [vmem:[%s8115_s8 + $0x90] ss:$12 sps:$4 sm:$0xff]  }
0x1452   : > { %v6519_v23 = vpop.eup %6518 }
0x1453   : > { %6524 = vrcp.f32 %v3426_v20  ;;  %v3427_v1 = vadd.f32 1.0, %v6519_v23  ;;  %v6521_v62 = vpop.eup %6520  ;;  %v9280_v20 = vld [vmem:[%s8115_s8 + $0xac] ss:$12 sps:$4 sm:$0xff]   ;;  %v9284_v23 = vld [vmem:[%s8115_s8 + $0xa8] ss:$12 sps:$4 sm:$0xff]  }
0x1454   : > { %v6523_v27 = vpop.eup %6522  ;;  %v3440_v6 = vadd.f32 1.0, %v6521_v62 }
0x1455   : > { %6526 = vrcp.f32 %v3427_v1  ;;  %v3441_v51 = vadd.f32 1.0, %v6523_v27  ;;  %v9288_v1 = vld [vmem:[%s8122_s20 + $0x4] ss:$12 sps:$4 sm:$0xff]  }
0x1456   : > { %6528 = vrcp.f32 %v3440_v6 }
0x1457   : > { %6530 = vrcp.f32 %v3441_v51 }
0x145d   : > { %v6525_v11 = vpop.eup %6524 }
0x145e   : > { %v3446_v12 = vmul.f32 %v6525_v11, %v3412_v52  ;;  %v9292_v11 = vld [vmem:[%s8122_s20] ss:$12 sps:$4 sm:$0xff]  }
0x145f   : > { %v6527_v16 = vpop.eup %6526 }
0x1460   : > { %v3448_v24 = vadd.f32 %v3446_v12, %v3328_v42  ;;  %v3447_v7 = vmul.f32 %v6527_v16, %v3415_v15  ;;  %v6529_v10 = vpop.eup %6528  ;;  %v9296_v42 = vld [vmem:[%s8122_s20 + $0x8] ss:$12 sps:$4 sm:$0xff]   ;;  %v9308_v15 = vld [vmem:[%s8122_s20 + $0x18] ss:$12 sps:$4 sm:$0xff]   ;;  %v9312_v16 = vld [vmem:[%s8122_s20 + $0x20] ss:$12 sps:$4 sm:$0xff]  }
0x1461   : > { %v6531_v26 = vpop.eup %6530  ;;  %v3452_v48 = vsub.f32 1.0, %v6529_v10  ;;  %v3456_v13 = vmul.f32 %v6529_v10, %v9052_v28  ;;  %v9183_v28 = vld [vmem:[%s8115_s8 + $0x20] ss:$12 sps:$4 sm:$0xff]   ;;  %v9300_v12 = vld [vmem:[%s8122_s20 + $0x1c] ss:$12 sps:$4 sm:$0xff]  }
0x1462   : > { %6532 = vtanh.f32 %v3448_v24  ;;  %v3449_v14 = vadd.f32 %v3447_v7, %v3331_v17  ;;  %v3453_v8 = vsub.f32 1.0, %v6531_v26  ;;  %v3457_v9 = vmul.f32 %v6531_v26, %v9054_v63  ;;  %v9188_v63 = vld [vmem:[%s8115_s8 + $0x38] ss:$12 sps:$4 sm:$0xff]   ;;  %v9316_v17 = vld [vmem:[%s8122_s20 + $0x34] ss:$12 sps:$4 sm:$0xff]  }
0x1463   : > { %v9321_v24 = vld [vmem:[%s8122_s20 + $0x30] ss:$12 sps:$4 sm:$0xff]   ;;  %v9325_v7 = vld [vmem:[%s8122_s20 + $0x38] ss:$12 sps:$4 sm:$0xff]   ;;  %v9334_v10 = vld [vmem:[%s8122_s20 + $0x48] ss:$12 sps:$4 sm:$0xff]  }
0x1464   : > { %6534 = vtanh.f32 %v3449_v14  ;;  %v9329_v14 = vld [vmem:[%s8122_s20 + $0x4c] ss:$12 sps:$4 sm:$0xff]   ;;  %v9338_v26 = vld [vmem:[%s8122_s20 + $0x50] ss:$12 sps:$4 sm:$0xff]  }
0x146c   : > { %v6533_v47 = vpop.eup %6532 }
0x146d   : > { %v3454_v39 = vmul.f32 %v6533_v47, %v3452_v48  ;;  %v9342_v48 = vld [vmem:[%s8122_s20 + $0x64] ss:$12 sps:$4 sm:$0xff]   ;;  %v9347_v47 = vld [vmem:[%s8122_s20 + $0x60] ss:$12 sps:$4 sm:$0xff]  }
0x146e   : > { %v6535_v25 = vpop.eup %6534  ;;  %9968 = vst [vmem:[#allocation68_spill] sm:$0xff] %v9342_v48  ;;  %9969 = vst [vmem:[#allocation69_spill] sm:$0xff] %v9347_v47 }
0x146f   : > { %v3455_v38 = vmul.f32 %v6535_v25, %v3453_v8  ;;  %v9166_v29 = vadd.f32 %v3456_v13, %v3454_v39  ;;  %v9351_v8 = vld [vmem:[%s8122_s20 + $0x68] ss:$12 sps:$4 sm:$0xff]   ;;  %v9360_v13 = vld [vmem:[%s8122_s20 + $0x78] ss:$12 sps:$4 sm:$0xff]   ;;  %v9364_v25 = vld [vmem:[%s8122_s20 + $0x80] ss:$12 sps:$4 sm:$0xff]  }
0x1470   : > { %9970 = vst [vmem:[#allocation70_spill] sm:$0xff] %v9351_v8  ;;  %v9355_v39 = vld [vmem:[%s8122_s20 + $0x7c] ss:$12 sps:$4 sm:$0xff]   ;;  %9972 = vst [vmem:[#allocation72_spill] sm:$0xff] %v9360_v13 }
0x1471   : > { %v9168_v31 = vadd.f32 %v3457_v9, %v3455_v38  ;;  %9971 = vst [vmem:[#allocation71_spill] sm:$0xff] %v9355_v39  ;;  %9973 = vst [vmem:[#allocation73_spill] sm:$0xff] %v9364_v25  ;;  %v9368_v38 = vld [vmem:[%s8122_s20 + $0x94] ss:$12 sps:$4 sm:$0xff]   ;;  %v9373_v9 = vld [vmem:[%s8122_s20 + $0x90] ss:$12 sps:$4 sm:$0xff]  }
0x1472   : > { %9974 = vst [vmem:[#allocation74_spill] sm:$0xff] %v9368_v38  ;;  %9975 = vst [vmem:[#allocation75_spill] sm:$0xff] %v9373_v9 }
0x1473   : > { %v9172_v35 = vpack.c.bf16 %v9168_v31, %v9166_v29 }
0x1475   : > { %5643 = vmatmul.mubr.bf16.vlgmr.msra.gmra.mrb[56].mxu1 %v9172_v35 }
0x1476   : > { %5653 = vmatpush3.bf16.msra.mxu1 %v9176_v33  ;;  %5668 = vmatprep.mubr.msk.bf16.mxu1 %vm7279_vm0, %v9902_v49 }
0x1477   : > { %5654 = vmatprep.subr.bf16.mxu1 %v9902_v49 }
0x147a   : > { %5655 = vmatpush3.bf16.msra.mxu1 %v9183_v28 }
0x147b   : > { %5656 = vmatprep.subr.bf16.mxu1 %v9902_v49 }
0x147e   : > { %5657 = vmatpush3.bf16.msra.mxu1 %v9188_v63 }
0x147f   : > { %5658 = vmatprep.subr.bf16.mxu1 %v9902_v49 }
0x1482   : > { %5659 = vmatpush3.bf16.msra.mxu1 %v9193_v37 }
0x1483   : > { %5660 = vmatprep.subr.bf16.mxu1 %v9902_v49 }
0x1486   : > { %5661 = vmatpush3.bf16.msra.mxu1 %v9198_v43 }
0x1487   : > { %5662 = vmatprep.subr.bf16.mxu1 %v9902_v49 }
0x148a   : > { %5663 = vmatpush3.bf16.msra.mxu1 %v9203_v50 }
0x148b   : > { %5664 = vmatprep.subr.bf16.mxu1 %v9902_v49 }
0x148e   : > { %5665 = vmatpush3.bf16.msra.mxu1 %v9208_v44 }
0x148f   : > { %5666 = vmatprep.subr.bf16.mxu1 %v9902_v49 }
0x1492   : > { %5667 = vmatpush3.bf16.msra.mxu1 %v9213_v45 }
0x1493   : > { %5672 = vmatprep.subr.bf16.mxu1 %v9902_v49 }
0x1548   : > { %v3560_v46 = vpop.f32.mrb[56].mxu1 }
0x1549   : > { %v5644_v53 = vpop.f32.mrb[57].mxu1 }
0x154a   : > { %v3563_v54 = vpop.f32.mrb[58].mxu1  ;;  %v9381_v53 = vld [vmem:[%s8122_s20 + $0xac] ss:$12 sps:$4 sm:$0xff]  }
0x154b   : > { %v3567_v55 = vpack.c.bf16 %v3563_v54, %v3560_v46  ;;  %v5645_v56 = vpop.f32.mrb[59].mxu1  ;;  %v9377_v46 = vld [vmem:[%s8122_s20 + $0x98] ss:$12 sps:$4 sm:$0xff]   ;;  %9977 = vst [vmem:[#allocation77_spill] sm:$0xff] %v9381_v53  ;;  %v9386_v54 = vld [vmem:[%s8122_s20 + $0xa8] ss:$12 sps:$4 sm:$0xff]  }
0x154c   : > { %9976 = vst [vmem:[#allocation76_spill] sm:$0xff] %v9377_v46  ;;  %9978 = vst [vmem:[#allocation78_spill] sm:$0xff] %v9386_v54  ;;  %v6408_v56 = vld [vmem:[%s8108_s1 + $0x1c0] sm:$0xff]  }
0x154d   : > { %5647 = vmatpush3.bf16.msra.mxu0 %v3567_v55  ;;  %v9390_v55 = vld [vmem:[%s8122_s20 + $0xb0] ss:$12 sps:$4 sm:$0xff]  }
0x154e   : > { %3610 = vmatprep.subr.bf16.mxu0 %v9218_v58  ;;  %9979 = vst [vmem:[#allocation79_spill] sm:$0xff] %v9390_v55 }
0x1550   : > { %5649 = vmatmul.mubr.msk.bf16.vlgmr.msra.gmra.mrb[64].mxu0 %vm1148_vm1, %v9222_v5 }
0x1551   : > { %3611 = vmatpush1.bf16.msra.mxu0 %v9227_v21  ;;  %3642 = vmatprep.mubr.bf16.mxu0 %v9901_v36 }
0x1552   : > { %3612 = vmatprep.subr.bf16.mxu0 %v9232_v2 }
0x1555   : > { %3613 = vmatpush1.bf16.msra.mxu0 %v9236_v19 }
0x1556   : > { %3614 = vmatprep.subr.bf16.mxu0 %v9240_v40 }
0x1559   : > { %3615 = vmatpush1.bf16.msra.mxu0 %v9244_v41 }
0x155a   : > { %3616 = vmatprep.subr.bf16.mxu0 %v9248_v4 }
0x155d   : > { %3617 = vmatpush1.bf16.msra.mxu0 %v9252_v61 }
0x155e   : > { %3618 = vmatprep.subr.bf16.mxu0 %v9256_v59 }
0x1561   : > { %3619 = vmatpush1.bf16.msra.mxu0 %v9260_v60 }
0x1562   : > { %3620 = vmatprep.subr.bf16.mxu0 %v9264_v34 }
0x1565   : > { %3621 = vmatpush1.bf16.msra.mxu0 %v9268_v22 }
0x1566   : > { %3622 = vmatprep.subr.bf16.mxu0 %v9272_v3 }
0x1569   : > { %3623 = vmatpush1.bf16.msra.mxu0 %v9276_v18 }
0x156a   : > { %3624 = vmatprep.subr.bf16.mxu0 %v9280_v20 }
0x156d   : > { %3625 = vmatpush1.bf16.msra.mxu0 %v9284_v23 }
0x156e   : > { %3694 = vmatprep.subr.bf16.mxu0 %v9288_v1 }
0x1623   : > { %v3602_v62 = vpop.f32.mrb[64].mxu0 }
0x1624   : > { %v5650_v27 = vpop.f32.mrb[65].mxu0 }
0x1625   : > { %v3605_v6 = vpop.f32.mrb[66].mxu0  ;;  %v6410_v27 = vld [vmem:[%s8108_s1 + $0x1d0] sm:$0xff]  }
0x1626   : > { %v3609_v52 = vpack.c.bf16 %v3605_v6, %v3602_v62  ;;  %v5651_v51 = vpop.f32.mrb[67].mxu0  ;;  %v6409_v62 = vld [vmem:[%s8108_s1 + $0x1c8] sm:$0xff]   ;;  %v6412_v6 = vld [vmem:[%s8108_s1 + $0x1e0] sm:$0xff]  }
0x1627   : > { %v6414_v51 = vld [vmem:[%s8108_s1 + $0x1f0] sm:$0xff]  }
0x1628   : > { %3643 = vmatmul.mubr.bf16.vlgmr.msra.gmra.mrb[68].mxu0 %v3609_v52  ;;  %5669 = vmatmul.mubr.bf16.vlgmr.msra.gmra.mrb[60].mxu1 %v3609_v52  ;;  %v6413_v52 = vld [vmem:[%s8108_s1 + $0x1e8] sm:$0xff]  }
0x1629   : > { %3695 = vmatpush1.bf16.msra.mxu0 %v9292_v11  ;;  %5673 = vmatpush3.bf16.msra.mxu1 %v9296_v42 }
0x162a   : > { %3696 = vmatprep.subr.bf16.mxu0 %v9300_v12  ;;  %5674 = vmatprep.subr.bf16.mxu1 %v9902_v49 }
0x162b   : > { %3726 = vmatprep.mubr.bf16.mxu0 %v9901_v36  ;;  %5688 = vmatprep.mubr.msk.bf16.mxu1 %vm7279_vm0, %v9902_v49 }
0x162d   : > { %3697 = vmatpush1.bf16.msra.mxu0 %v9308_v15  ;;  %5675 = vmatpush3.bf16.msra.mxu1 %v9312_v16 }
0x162e   : > { %3698 = vmatprep.subr.bf16.mxu0 %v9316_v17  ;;  %5676 = vmatprep.subr.bf16.mxu1 %v9902_v49 }
0x1631   : > { %3699 = vmatpush1.bf16.msra.mxu0 %v9321_v24  ;;  %5677 = vmatpush3.bf16.msra.mxu1 %v9325_v7 }
0x1632   : > { %3700 = vmatprep.subr.bf16.mxu0 %v9329_v14  ;;  %5678 = vmatprep.subr.bf16.mxu1 %v9902_v49 }
0x1635   : > { %3701 = vmatpush1.bf16.msra.mxu0 %v9334_v10  ;;  %5679 = vmatpush3.bf16.msra.mxu1 %v9338_v26 }
0x1636   : > { %3702 = vmatprep.subr.bf16.mxu0 %v9342_v48  ;;  %5680 = vmatprep.subr.bf16.mxu1 %v9902_v49 }
0x1639   : > { %3703 = vmatpush1.bf16.msra.mxu0 %v9347_v47  ;;  %5681 = vmatpush3.bf16.msra.mxu1 %v9351_v8 }
0x163a   : > { %3704 = vmatprep.subr.bf16.mxu0 %v9355_v39  ;;  %5682 = vmatprep.subr.bf16.mxu1 %v9902_v49 }
0x163d   : > { %3705 = vmatpush1.bf16.msra.mxu0 %v9360_v13  ;;  %5683 = vmatpush3.bf16.msra.mxu1 %v9364_v25 }
0x163e   : > { %3706 = vmatprep.subr.bf16.mxu0 %v9368_v38  ;;  %5684 = vmatprep.subr.bf16.mxu1 %v9902_v49 }
0x1641   : > { %3707 = vmatpush1.bf16.msra.mxu0 %v9373_v9  ;;  %5685 = vmatpush3.bf16.msra.mxu1 %v9377_v46 }
0x1642   : > { %3708 = vmatprep.subr.bf16.mxu0 %v9381_v53  ;;  %5686 = vmatprep.subr.bf16.mxu1 %v9902_v49 }
0x1645   : > { %3709 = vmatpush1.bf16.msra.mxu0 %v9386_v54  ;;  %5687 = vmatpush3.bf16.msra.mxu1 %v9390_v55 }
0x1646   : > { %5692 = vmatprep.subr.bf16.mxu0 %v9902_v49  ;;  %5712 = vmatprep.subr.bf16.mxu1 %v9902_v49 }
0x1648   : > { %3727 = vmatmul.mubr.bf16.vlgmr.msra.gmra.mrb[68].mxu0 %v9172_v35  ;;  %5689 = vmatmul.mubr.bf16.vlgmr.msra.gmra.mrb[64].mxu1 %v9172_v35  ;;  %v6411_v35 = vld [vmem:[%s8108_s1 + $0x1d8] sm:$0xff]  }
0x1649   : > { %5708 = vmatprep.mubr.msk.bf16.mxu0 %vm7279_vm0, %v9902_v49  ;;  %5714 = vmatprep.mubr.msk.bf16.mxu1 %vm7279_vm0, %v9902_v49 }
0x164a   : > { %5693 = vmatpush3.bf16.msra.mxu0 %v6408_v56  ;;  %v6415_v56 = vld [vmem:[%s8108_s1 + $0x1f8] sm:$0xff]  }
0x164b   : > { %5694 = vmatprep.subr.bf16.mxu0 %v9902_v49 }
0x164e   : > { %5695 = vmatpush3.bf16.msra.mxu0 %v6409_v62 }
0x164f   : > { %5696 = vmatprep.subr.bf16.mxu0 %v9902_v49 }
0x1652   : > { %5697 = vmatpush3.bf16.msra.mxu0 %v6410_v27 }
0x1653   : > { %5698 = vmatprep.subr.bf16.mxu0 %v9902_v49 }
0x1656   : > { %5699 = vmatpush3.bf16.msra.mxu0 %v6411_v35 }
0x1657   : > { %5700 = vmatprep.subr.bf16.mxu0 %v9902_v49 }
0x165a   : > { %5701 = vmatpush3.bf16.msra.mxu0 %v6412_v6 }
0x165b   : > { %5702 = vmatprep.subr.bf16.mxu0 %v9902_v49 }
0x165e   : > { %5703 = vmatpush3.bf16.msra.mxu0 %v6413_v52 }
0x165f   : > { %5704 = vmatprep.subr.bf16.mxu0 %v9902_v49 }
0x1662   : > { %5705 = vmatpush3.bf16.msra.mxu0 %v6414_v51 }
0x1663   : > { %5706 = vmatprep.subr.bf16.mxu0 %v9902_v49 }
0x1666   : > { %5707 = vmatpush3.bf16.msra.mxu0 %v6415_v56 }
0x1667   : > { %5718 = vmatprep.subr.bf16.mxu0 %v9902_v49 }
0x16fb   : > { %v3687_v62 = vpop.f32.mrb[60].mxu1 }
0x16fc   : > { %v5670_v27 = vpop.f32.mrb[61].mxu1 }
0x16fd   : > { %v3690_v35 = vpop.f32.mrb[62].mxu1 }
0x16fe   : > { %v5671_v55 = vpop.f32.mrb[63].mxu1 }
0x171b   : > { %v3728_v54 = vpop.f32.mrb[68].mxu0  ;;  %v3771_v6 = vpop.f32.mrb[64].mxu1 }
0x171c   : > { %v5940_v53 = vadd.f32 %v9966_v57, %v3728_v54  ;;  %v3730_v46 = vpop.f32.mrb[69].mxu0  ;;  %v5690_v52 = vpop.f32.mrb[65].mxu1 }
0x171d   : > { %v3732_v9 = vpop.f32.mrb[70].mxu0  ;;  %v3774_v38 = vpop.f32.mrb[66].mxu1  ;;  %v5942_v56 = vadd.f32 %v9967_v0, %v3730_v46  ;;  %v3772_v46 = vadd.f32 %v3771_v6, %v8439_v32 }
0x171e   : > { %v4845_v25 = vmul.f32 -1.442695, %v5940_v53  ;;  %v5944_v51 = vadd.f32 %v9966_v57, %v3732_v9  ;;  %v3734_v13 = vpop.f32.mrb[71].mxu0  ;;  %v5691_v39 = vpop.f32.mrb[67].mxu1 }
0x171f   : > { %v5946_v27 = vadd.f32 %v9967_v0, %v3734_v13  ;;  %v4847_v55 = vmul.f32 -1.442695, %v5942_v56  ;;  %v3688_v13 = vadd.f32 %v3687_v62, %v8441_v30  ;;  %v3775_v56 = vadd.f32 %v3774_v38, %v8439_v32 }
0x1720   : > { %6536 = vpow2.f32 %v4845_v25  ;;  %v4846_v8 = vmul.f32 -1.442695, %v5944_v51 }
0x1721   : > { %v4848_v47 = vmul.f32 -1.442695, %v5946_v27  ;;  %v3691_v27 = vadd.f32 %v3690_v35, %v8441_v30 }
0x1722   : > { %6538 = vpow2.f32 %v4846_v8 }
0x1723   : > { %6540 = vpow2.f32 %v4847_v55 }
0x1724   : > { %6542 = vpow2.f32 %v4848_v47 }
0x172a   : > { %v6537_v54 = vpop.eup %6536 }
0x172b   : > { %v3786_v52 = vadd.f32 1.0, %v6537_v54 }
0x172c   : > { %v6539_v48 = vpop.eup %6538 }
0x172d   : > { %6544 = vrcp.f32 %v3786_v52  ;;  %v3787_v53 = vadd.f32 1.0, %v6539_v48  ;;  %v6541_v9 = vpop.eup %6540 }
0x172e   : > { %v6543_v57 = vpop.eup %6542  ;;  %v3800_v39 = vadd.f32 1.0, %v6541_v9 }
0x172f   : > { %6546 = vrcp.f32 %v3787_v53  ;;  %v3801_v25 = vadd.f32 1.0, %v6543_v57 }
0x1730   : > { %6548 = vrcp.f32 %v3800_v39 }
0x1731   : > { %6550 = vrcp.f32 %v3801_v25 }
0x1737   : > { %v6545_v51 = vpop.eup %6544 }
0x1738   : > { %v3806_v8 = vmul.f32 %v6545_v51, %v3772_v46 }
0x1739   : > { %v6547_v47 = vpop.eup %6546 }
0x173a   : > { %v3808_v55 = vadd.f32 %v3806_v8, %v3688_v13  ;;  %v3807_v54 = vmul.f32 %v6547_v47, %v3775_v56  ;;  %v6549_v52 = vpop.eup %6548 }
0x173b   : > { %v6551_v53 = vpop.eup %6550  ;;  %v3812_v6 = vsub.f32 1.0, %v6549_v52  ;;  %v3816_v62 = vmul.f32 %v6549_v52, %v9166_v29 }
0x173c   : > { %6552 = vtanh.f32 %v3808_v55  ;;  %v3809_v48 = vadd.f32 %v3807_v54, %v3691_v27  ;;  %v3813_v9 = vsub.f32 1.0, %v6551_v53  ;;  %v3817_v38 = vmul.f32 %v6551_v53, %v9168_v31 }
0x173e   : > { %6554 = vtanh.f32 %v3809_v48 }
0x1746   : > { %v6553_v57 = vpop.eup %6552 }
0x1747   : > { %v3814_v0 = vmul.f32 %v6553_v57, %v3812_v6 }
0x1748   : > { %v6555_v39 = vpop.eup %6554 }
0x1749   : > { %v3815_v46 = vmul.f32 %v6555_v39, %v3813_v9  ;;  %v9427_v51 = vadd.f32 %v3816_v62, %v3814_v0 }
0x174b   : > { %v9429_v35 = vadd.f32 %v3817_v38, %v3815_v46 }
0x174d   : > { %v9433_v25 = vpack.c.bf16 %v9429_v35, %v9427_v51 }
0x174f   : > { %5709 = vmatmul.mubr.bf16.vlgmr.msra.gmra.mrb[72].mxu0 %v9433_v25 }
0x1750   : > { %5719 = vmatpush3.bf16.msra.mxu0 %v9176_v33  ;;  %5734 = vmatprep.mubr.msk.bf16.mxu0 %vm7279_vm0, %v9902_v49 }
0x1751   : > { %5720 = vmatprep.subr.bf16.mxu0 %v9902_v49 }
0x1754   : > { %5721 = vmatpush3.bf16.msra.mxu0 %v9183_v28 }
0x1755   : > { %5722 = vmatprep.subr.bf16.mxu0 %v9902_v49 }
0x1758   : > { %5723 = vmatpush3.bf16.msra.mxu0 %v9188_v63 }
0x1759   : > { %5724 = vmatprep.subr.bf16.mxu0 %v9902_v49 }
0x175c   : > { %5725 = vmatpush3.bf16.msra.mxu0 %v9193_v37 }
0x175d   : > { %5726 = vmatprep.subr.bf16.mxu0 %v9902_v49 }
0x1760   : > { %5727 = vmatpush3.bf16.msra.mxu0 %v9198_v43 }
0x1761   : > { %5728 = vmatprep.subr.bf16.mxu0 %v9902_v49 }
0x1764   : > { %5729 = vmatpush3.bf16.msra.mxu0 %v9203_v50 }
0x1765   : > { %5730 = vmatprep.subr.bf16.mxu0 %v9902_v49 }
0x1768   : > { %5731 = vmatpush3.bf16.msra.mxu0 %v9208_v44 }
0x1769   : > { %5732 = vmatprep.subr.bf16.mxu0 %v9902_v49 }
0x176c   : > { %5733 = vmatpush3.bf16.msra.mxu0 %v9213_v45  ;;  %v9981_v45 = vld [vmem:[#allocation69_spill] sm:$0xff] }
0x176d   : > { %5738 = vmatprep.subr.bf16.mxu0 %v9902_v49 }
0x1822   : > { %v3920_v0 = vpop.f32.mrb[72].mxu0 }
0x1823   : > { %v5710_v29 = vpop.f32.mrb[73].mxu0 }
0x1824   : > { %v3923_v31 = vpop.f32.mrb[74].mxu0 }
0x1825   : > { %v3927_v33 = vpack.c.bf16 %v3923_v31, %v3920_v0  ;;  %v5711_v28 = vpop.f32.mrb[75].mxu0 }
0x1827   : > { %5713 = vmatpush3.bf16.msra.mxu1 %v3927_v33 }
0x1828   : > { %3970 = vmatprep.subr.bf16.mxu1 %v9218_v58  ;;  %v9982_v58 = vld [vmem:[#allocation70_spill] sm:$0xff] }
0x182a   : > { %5715 = vmatmul.mubr.msk.bf16.vlgmr.msra.gmra.mrb[68].mxu1 %vm1148_vm1, %v9222_v5  ;;  %v9983_v5 = vld [vmem:[#allocation71_spill] sm:$0xff] }
0x182b   : > { %3971 = vmatpush1.bf16.msra.mxu1 %v9227_v21  ;;  %4002 = vmatprep.mubr.bf16.mxu1 %v9901_v36  ;;  %v9984_v21 = vld [vmem:[#allocation72_spill] sm:$0xff] }
0x182c   : > { %3972 = vmatprep.subr.bf16.mxu1 %v9232_v2  ;;  %v9985_v2 = vld [vmem:[#allocation73_spill] sm:$0xff] }
0x182f   : > { %3973 = vmatpush1.bf16.msra.mxu1 %v9236_v19  ;;  %v9986_v19 = vld [vmem:[#allocation74_spill] sm:$0xff] }
0x1830   : > { %3974 = vmatprep.subr.bf16.mxu1 %v9240_v40  ;;  %v9987_v40 = vld [vmem:[#allocation75_spill] sm:$0xff] }
0x1833   : > { %3975 = vmatpush1.bf16.msra.mxu1 %v9244_v41  ;;  %v9988_v41 = vld [vmem:[#allocation76_spill] sm:$0xff] }
0x1834   : > { %3976 = vmatprep.subr.bf16.mxu1 %v9248_v4  ;;  %v9989_v4 = vld [vmem:[#allocation77_spill] sm:$0xff] }
0x1837   : > { %3977 = vmatpush1.bf16.msra.mxu1 %v9252_v61  ;;  %v9990_v61 = vld [vmem:[#allocation78_spill] sm:$0xff] }
0x1838   : > { %3978 = vmatprep.subr.bf16.mxu1 %v9256_v59  ;;  %v9991_v59 = vld [vmem:[#allocation79_spill] sm:$0xff] }
0x183b   : > { %3979 = vmatpush1.bf16.msra.mxu1 %v9260_v60 }
0x183c   : > { %3980 = vmatprep.subr.bf16.mxu1 %v9264_v34 }
0x183f   : > { %3981 = vmatpush1.bf16.msra.mxu1 %v9268_v22 }
0x1840   : > { %3982 = vmatprep.subr.bf16.mxu1 %v9272_v3 }
0x1843   : > { %3983 = vmatpush1.bf16.msra.mxu1 %v9276_v18 }
0x1844   : > { %3984 = vmatprep.subr.bf16.mxu1 %v9280_v20 }
0x1847   : > { %3985 = vmatpush1.bf16.msra.mxu1 %v9284_v23  ;;  %v9992_v23 = vld [vmem:[#allocation80_spill] sm:$0xff] }
0x1848   : > { %4054 = vmatprep.subr.bf16.mxu1 %v9288_v1 }
0x18fd   : > { %v3962_v63 = vpop.f32.mrb[68].mxu1 }
0x18fe   : > { %v5716_v37 = vpop.f32.mrb[69].mxu1 }
0x18ff   : > { %v3965_v43 = vpop.f32.mrb[70].mxu1 }
0x1900   : > { %v3969_v50 = vpack.c.bf16 %v3965_v43, %v3962_v63  ;;  %v5717_v44 = vpop.f32.mrb[71].mxu1 }
0x1902   : > { %4003 = vmatmul.mubr.bf16.vlgmr.msra.gmra.mrb[72].mxu1 %v3969_v50  ;;  %5735 = vmatmul.mubr.bf16.vlgmr.msra.gmra.mrb[76].mxu0 %v3969_v50 }
0x1903   : > { %4055 = vmatpush1.bf16.msra.mxu1 %v9292_v11  ;;  %5739 = vmatpush3.bf16.msra.mxu0 %v9296_v42 }
0x1904   : > { %4056 = vmatprep.subr.bf16.mxu1 %v9300_v12  ;;  %5740 = vmatprep.subr.bf16.mxu0 %v9902_v49 }
0x1905   : > { %4086 = vmatprep.mubr.bf16.mxu1 %v9901_v36  ;;  %5754 = vmatprep.mubr.msk.bf16.mxu0 %vm7279_vm0, %v9902_v49  ;;  %v9980_v36 = vld [vmem:[#allocation68_spill] sm:$0xff] }
0x1907   : > { %4057 = vmatpush1.bf16.msra.mxu1 %v9308_v15  ;;  %5741 = vmatpush3.bf16.msra.mxu0 %v9312_v16 }
0x1908   : > { %4058 = vmatprep.subr.bf16.mxu1 %v9316_v17  ;;  %5742 = vmatprep.subr.bf16.mxu0 %v9902_v49 }
0x190b   : > { %4059 = vmatpush1.bf16.msra.mxu1 %v9321_v24  ;;  %5743 = vmatpush3.bf16.msra.mxu0 %v9325_v7  ;;  %v9993_v7 = vld [vmem:[#allocation81_spill] sm:$0xff] }
0x190c   : > { %4060 = vmatprep.subr.bf16.mxu1 %v9329_v14  ;;  %5744 = vmatprep.subr.bf16.mxu0 %v9902_v49 }
0x190f   : > { %4061 = vmatpush1.bf16.msra.mxu1 %v9334_v10  ;;  %5745 = vmatpush3.bf16.msra.mxu0 %v9338_v26 }
0x1910   : > { %4062 = vmatprep.subr.bf16.mxu1 %v9980_v36  ;;  %5746 = vmatprep.subr.bf16.mxu0 %v9902_v49  ;;  %v4180_v36 = vld [vmem:[#allocation3] sm:$0xff] }
0x1913   : > { %4063 = vmatpush1.bf16.msra.mxu1 %v9981_v45  ;;  %5747 = vmatpush3.bf16.msra.mxu0 %v9982_v58  ;;  %v4181_v58 = vld [vmem:[#allocation3 + $0x8] sm:$0xff] }
0x1914   : > { %4064 = vmatprep.subr.bf16.mxu1 %v9983_v5  ;;  %5748 = vmatprep.subr.bf16.mxu0 %v9902_v49 }
0x1917   : > { %4065 = vmatpush1.bf16.msra.mxu1 %v9984_v21  ;;  %5749 = vmatpush3.bf16.msra.mxu0 %v9985_v2 }
0x1918   : > { %4066 = vmatprep.subr.bf16.mxu1 %v9986_v19  ;;  %5750 = vmatprep.subr.bf16.mxu0 %v9902_v49 }
0x191b   : > { %4067 = vmatpush1.bf16.msra.mxu1 %v9987_v40  ;;  %5751 = vmatpush3.bf16.msra.mxu0 %v9988_v41  ;;  %v7281_v41 = vmov (!%p4878_p9), 0.0|0.0  }
0x191c   : > { %4068 = vmatprep.subr.bf16.mxu1 %v9989_v4  ;;  %5752 = vmatprep.subr.bf16.mxu0 %v9902_v49  ;;  %v7283_v4 = vmov (!%p4878_p9), 0.0  }
0x191f   : > { %4069 = vmatpush1.bf16.msra.mxu1 %v9990_v61  ;;  %5753 = vmatpush3.bf16.msra.mxu0 %v9991_v59  ;;  %v4266_v61 = vld [vmem:[#allocation23] sm:$0xff] (!%p4878_p9)  ;;  %v4267_v59 = vld [vmem:[#allocation23 + $0x8] sm:$0xff] (!%p4878_p9) }
0x1920   : > { %5864 = vmatprep.subr.bf16.mxu0 (!%p4878_p9), %v7281_v41  ;;  %5867 = vmatprep.subr.bf16.mxu1 (!%p4878_p9), %v7281_v41 }
0x1922   : > { %4087 = vmatmul.mubr.bf16.vlgmr.msra.gmra.mrb[72].mxu1 %v9433_v25  ;;  %5755 = vmatmul.mubr.bf16.vlgmr.msra.gmra.mrb[80].mxu0 %v9433_v25 }
0x1923   : > { %5762 = vmatprep.mubr.msk.f32.mxu0 (!%p4878_p9), %vm7282_vm2, %v7283_v4  ;;  %5797 = vmatprep.mubr.msk.f32.mxu1 (!%p4878_p9), %vm7282_vm2, %v7283_v4 }
0x19d5   : > { %v4047_v60 = vpop.f32.mrb[76].mxu0 }
0x19d6   : > { %v5736_v34 = vpop.f32.mrb[77].mxu0  ;;  %v4048_v9 = vadd.f32 %v4047_v60, %v8441_v30  ;;  %v5868_v60 = vpack.c.bf16 (!%p4878_p9), %v4267_v59, %v4266_v61 }
0x19d7   : > { %v4050_v22 = vpop.f32.mrb[78].mxu0  ;;  %v4269_v34 = vld [vmem:[#allocation23 + $0x18] sm:$0xff] (!%p4878_p9) }
0x19d8   : > { %v5737_v3 = vpop.f32.mrb[79].mxu0  ;;  %v4051_v38 = vadd.f32 %v4050_v22, %v8441_v30  ;;  %v4190_v22 = vld [vmem:[#allocation21] sm:$0xff] (!%p4878_p9)  ;;  %5869 = vmatpush3.bf16.msra.mxu1 (!%p4878_p9), %v5868_v60 }
0x19d9   : > { %5870 = vmatprep.subr.bf16.mxu1 (!%p4878_p9), %v7281_v41 }
0x19f5   : > { %v4088_v18 = vpop.f32.mrb[72].mxu1  ;;  %v4131_v20 = vpop.f32.mrb[80].mxu0 }
0x19f6   : > { %v5948_v1 = vadd.f32 %v9992_v23, %v4088_v18  ;;  %v4090_v11 = vpop.f32.mrb[73].mxu1  ;;  %v5756_v42 = vpop.f32.mrb[81].mxu0  ;;  %v4132_v53 = vadd.f32 %v4131_v20, %v8439_v32  ;;  %v4270_v18 = vld [vmem:[#allocation23 + $0x20] sm:$0xff] (!%p4878_p9)  ;;  %v4271_v20 = vld [vmem:[#allocation23 + $0x28] sm:$0xff] (!%p4878_p9) }
0x19f7   : > { %v4092_v12 = vpop.f32.mrb[74].mxu1  ;;  %v4134_v49 = vpop.f32.mrb[82].mxu0  ;;  %v5950_v14 = vadd.f32 %v9993_v7, %v4090_v11  ;;  %v4273_v11 = vld [vmem:[#allocation23 + $0x38] sm:$0xff] (!%p4878_p9) }
0x19f8   : > { %v4874_v15 = vmul.f32 -1.442695, %v5948_v1  ;;  %v5952_v16 = vadd.f32 %v9992_v23, %v4092_v12  ;;  %v4094_v17 = vpop.f32.mrb[75].mxu1  ;;  %v5757_v24 = vpop.f32.mrb[83].mxu0  ;;  %v4135_v39 = vadd.f32 %v4134_v49, %v8439_v32  ;;  %v5874_v23 = vpack.c.bf16 (!%p4878_p9), %v4271_v20, %v4270_v18  ;;  %v4272_v1 = vld [vmem:[#allocation23 + $0x30] sm:$0xff] (!%p4878_p9)  ;;  %v4274_v12 = vld [vmem:[#allocation23 + $0x40] sm:$0xff] (!%p4878_p9) }
0x19f9   : > { %v5954_v26 = vadd.f32 %v9993_v7, %v4094_v17  ;;  %v4876_v13 = vmul.f32 -1.442695, %v5950_v14  ;;  %v5877_v42 = vpack.c.bf16 (!%p4878_p9), %v4273_v11, %v4272_v1  ;;  %v4275_v49 = vld [vmem:[#allocation23 + $0x48] sm:$0xff] (!%p4878_p9)  ;;  %v4277_v17 = vld [vmem:[#allocation23 + $0x58] sm:$0xff] (!%p4878_p9)  ;;  %v4278_v7 = vld [vmem:[#allocation23 + $0x60] sm:$0xff] (!%p4878_p9) }
0x19fa   : > { %6556 = vpow2.f32 %v4874_v15  ;;  %v4875_v10 = vmul.f32 -1.442695, %v5952_v16  ;;  %v5880_v15 = vpack.c.bf16 (!%p4878_p9), %v4275_v49, %v4274_v12  ;;  %v4276_v16 = vld [vmem:[#allocation23 + $0x50] sm:$0xff] (!%p4878_p9)  ;;  %v4279_v14 = vld [vmem:[#allocation23 + $0x68] sm:$0xff] (!%p4878_p9) }
0x19fb   : > { %v4877_v8 = vmul.f32 -1.442695, %v5954_v26  ;;  %v5883_v24 = vpack.c.bf16 (!%p4878_p9), %v4277_v17, %v4276_v16  ;;  %v4280_v26 = vld [vmem:[#allocation23 + $0x70] sm:$0xff] (!%p4878_p9) }
0x19fc   : > { %6558 = vpow2.f32 %v4875_v10  ;;  %v5886_v10 = vpack.c.bf16 (!%p4878_p9), %v4279_v14, %v4278_v7 }
0x19fd   : > { %6560 = vpow2.f32 %v4876_v13  ;;  %v4281_v13 = vld [vmem:[#allocation23 + $0x78] sm:$0xff] (!%p4878_p9) }
0x19fe   : > { %6562 = vpow2.f32 %v4877_v8  ;;  %v5889_v8 = vpack.c.bf16 (!%p4878_p9), %v4281_v13, %v4280_v26 }
0x1a04   : > { %v6557_v56 = vpop.eup %6556 }
0x1a05   : > { %v4146_v47 = vadd.f32 1.0, %v6557_v56 }
0x1a06   : > { %v6559_v27 = vpop.eup %6558 }
0x1a07   : > { %6564 = vrcp.f32 %v4146_v47  ;;  %v4147_v55 = vadd.f32 1.0, %v6559_v27  ;;  %v6561_v54 = vpop.eup %6560  ;;  %v4880_v27 = vld [vmem:[#allocation24] ss:$0 sm:$0xff] (!%p4878_p9) }
0x1a08   : > { %v6563_v48 = vpop.eup %6562  ;;  %v4160_v52 = vadd.f32 1.0, %v6561_v54 }
0x1a09   : > { %6566 = vrcp.f32 %v4147_v55  ;;  %v4161_v6 = vadd.f32 1.0, %v6563_v48 }
0x1a0a   : > { %6568 = vrcp.f32 %v4160_v52 }
0x1a0b   : > { %6570 = vrcp.f32 %v4161_v6 }
0x1a11   : > { %v6565_v57 = vpop.eup %6564 }
0x1a12   : > { %v4166_v62 = vmul.f32 %v6565_v57, %v4132_v53 }
0x1a13   : > { %v6567_v46 = vpop.eup %6566 }
0x1a14   : > { %v4168_v25 = vadd.f32 %v4166_v62, %v4048_v9  ;;  %v4167_v0 = vmul.f32 %v6567_v46, %v4135_v39  ;;  %v6569_v31 = vpop.eup %6568 }
0x1a15   : > { %v6571_v33 = vpop.eup %6570  ;;  %v4172_v28 = vsub.f32 1.0, %v6569_v31  ;;  %v4176_v43 = vmul.f32 %v6569_v31, %v9427_v51 }
0x1a16   : > { %6572 = vtanh.f32 %v4168_v25  ;;  %v4169_v29 = vadd.f32 %v4167_v0, %v4051_v38  ;;  %v4173_v50 = vsub.f32 1.0, %v6571_v33  ;;  %v4177_v30 = vmul.f32 %v6571_v33, %v9429_v35  ;;  %v4268_v35 = vld [vmem:[#allocation23 + $0x10] sm:$0xff] (!%p4878_p9) }
0x1a17   : > { %v5871_v3 = vpack.c.bf16 (!%p4878_p9), %v4269_v34, %v4268_v35 }
0x1a18   : > { %6574 = vtanh.f32 %v4169_v29 }
0x1a19   : > { %5872 = vmatpush3.bf16.msra.mxu1 (!%p4878_p9), %v5871_v3 }
0x1a1a   : > { %5873 = vmatprep.subr.bf16.mxu1 (!%p4878_p9), %v7281_v41 }
0x1a1d   : > { %5875 = vmatpush3.bf16.msra.mxu1 (!%p4878_p9), %v5874_v23 }
0x1a1e   : > { %5876 = vmatprep.subr.bf16.mxu1 (!%p4878_p9), %v7281_v41 }
0x1a20   : > { %v6573_v63 = vpop.eup %6572 }
0x1a21   : > { %v4174_v37 = vmul.f32 %v6573_v63, %v4172_v28  ;;  %5878 = vmatpush3.bf16.msra.mxu1 (!%p4878_p9), %v5877_v42 }
0x1a22   : > { %v6575_v44 = vpop.eup %6574  ;;  %5879 = vmatprep.subr.bf16.mxu1 (!%p4878_p9), %v7281_v41 }
0x1a23   : > { %v4178_v32 = vadd.f32 %v4176_v43, %v4174_v37  ;;  %v4175_v45 = vmul.f32 %v6575_v44, %v4173_v50  ;;  %4189 = sbr.rel (%p4878_p9) target bundleno = 7137 (0x1be1), region = 124 }
0x1a25   : > { %v4182_v5 = vadd.f32 %v4180_v36, %v4178_v32  ;;  %v4179_v21 = vadd.f32 %v4177_v30, %v4175_v45  ;;  %5881 = vmatpush3.bf16.msra.mxu1 (!%p4878_p9), %v5880_v15 }
0x1a26   : > { %5882 = vmatprep.subr.bf16.mxu1 (!%p4878_p9), %v7281_v41 }
0x1a27   : > { %4184 = vst [vmem:[#allocation3] sm:$0xff] %v4182_v5  ;;  %v4183_v2 = vadd.f32 %v4181_v58, %v4179_v21 }
0x1a29   : > { %4185 = vst [vmem:[#allocation3 + $0x8] sm:$0xff] %v4183_v2  ;;  %5884 = vmatpush3.bf16.msra.mxu1 (!%p4878_p9), %v5883_v24 }
0x1a2a   : > { %5885 = vmatprep.subr.bf16.mxu1 %v7281_v41 }
0x1a2d   : > { %5887 = vmatpush3.bf16.msra.mxu1 %v5886_v10 }
0x1a2e   : > { %v4191_v19 = vld [vmem:[#allocation3] sm:$0xff]  ;;  %5888 = vmatprep.subr.bf16.mxu1 %v7281_v41 }
0x1a30   : > { %v4192_v40 = vld [vmem:[#allocation3 + $0x8] sm:$0xff] }
0x1a31   : > { %v5865_v51 = vpack.c.bf16 %v4192_v40, %v4191_v19  ;;  %5890 = vmatpush3.bf16.msra.mxu1 %v5889_v8 }
0x1a33   : > { %5866 = vmatpush3.bf16.msra.mxu0 %v5865_v51 }
0x1a36   : > { %5763 = vmatmul.mubr.msk.f32.vlgmr.msra.gmra.mrb[0].mxu0 %vm1148_vm1, %v4190_v22 }
0x1b09   : > { %v4262_v56 = vpop.f32.mrb[0].mxu0 }
0x1b0a   : > { %v5764_v47 = vpop.f32.mrb[1].mxu0  ;;  %5798 = vmatmul.mubr.f32.vlgmr.msra.gmra.mrb[0].mxu1 %v4262_v56 }
0x1bdd   : > { %v4355_v55 = vpop.f32.mrb[0].mxu1 }
0x1bde   : > { %v4356_v54 = vadd.f32 %v4880_v27, %v4355_v55  ;;  %v5799_v48 = vpop.f32.mrb[1].mxu1 }
0x1be0   : > { %4359 = vst [vmem:[#allocation26] sm:$0xff] %v4356_v54 }
0x1be1 PF: > { %p6110_p13 = scmp.eq.s32.totalorder %s7463_s18, 11  ;;  %s7284_s5 = smov [#allocation26]  }
0x1be2   : > { %s4367_s9 = sshll.u32 %s7284_s5, 4  ;;  %s4368_s9 = int_to_ptr.vmem [resolvable:$true] %s4367_s9 }
0x1be3   : > { %s7032_s26 = scalar_lea.vmem %s4368_s9, 128  ;;  %p7039_p8 = scmp.lt.s32.totalorder %s4368_s9, %s4368_s9 }
0x1be4   : > { %p7033_p4 = scmp.ne.s32.totalorder %s4368_s9, %s7032_s26  ;;  %p7040_p6 = scmp.lt.s32.totalorder %s7032_s26, %s7032_s26 }
0x1be6   : > { %p7034_p11 = pnand %p7033_p4, %p6110_p13  ;;  %p7041_p0 = por %p7040_p6, %p7039_p8 }
0x1be8   : > { %p7035_p5 = pneg %p7034_p11 }
0x1bea   : > { %p7042_p3 = pnand %p7041_p0, %p7035_p5 }
0x1bec   : > { %7045 = shalt.err (!%p7042_p3)
}
0x1bed   : > { %s9994_s2 = sld [smem:[#allocation94_spill]] }
0x1bf3   : > { %s7046_s25 = scalar_lea.hbm %s9994_s2, 128 }
0x1bf4   : > { %p7047_p12 = scmp.ne.s32.totalorder %s9994_s2, %s7046_s25  ;;  %p7052_p2 = scmp.lt.u32.totalorder %s7046_s25, %s9994_s2 }
0x1bf6   : > { %p7048_p7 = pnand %p7047_p12, %p6110_p13 }
0x1bf8   : > { %p7049_p1 = pneg %p7048_p7 }
0x1bfa   : > { %p7054_p10 = pnand %p7052_p2, %p7049_p1 }
0x1bfc   : > { %7057 = shalt.err (!%p7054_p10)
}
0x1bfd   : > { %6046 = dma.vmem_to_hbm [thread:$0]  (%p6110_p13), %s4368_s9, 128, %s9994_s2, [#allocation8]  }
0x1bfe   : > { %7177 = dma.done.wait (%p6110_p13), [#allocation8], 128  }
0x1bff   : > { %7179 = vsyncadd (%p6110_p13), [#allocation8], 4294967168 }
0x1c00 PF: > { %s9995_s13 = sld [smem:[#allocation63_spill]]  ;;  %s9996_s18 = sld [smem:[#allocation50_spill]] }
0x1c01   : > { %s9997_s17 = sld [smem:[#allocation51_spill]]  ;;  %s9998_s0 = sld [smem:[#allocation52_spill]] }
0x1c02   : > { %s9999_s4 = sld [smem:[#allocation53_spill]]  ;;  %s10000_s22 = sld [smem:[#allocation67_spill]] }
0x1c03   : > { %s10001_s23 = sld [smem:[#allocation55_spill]]  ;;  %s10002_s24 = sld [smem:[#allocation56_spill]] }
0x1c04   : > { %s10003_s28 = smov %s10036_s19  ;;  %s10004_s15 = sld [smem:[#allocation57_spill]] }
0x1c05   : > { %s10005_s7 = sld [smem:[#allocation65_spill]]  ;;  %s10006_s29 = sld [smem:[#allocation59_spill]] }
0x1c06   : > { %s10007_s30 = sld [smem:[#allocation60_spill]]  ;;  %p38_p9 = scmp.ge.s32.totalorder %s9995_s13, 14  }
0x1c07   : > { %s10008_s12 = sld [smem:[#allocation61_spill]]  ;;  %s10009_s19 = smov %s9997_s17 }
0x1c08   : > { %s10010_s17 = sld [smem:[#allocation64_spill]]  ;;  %s10011_s20 = smov %s10042_s21 }
0x1c09   : > { %s10013_s21 = smov %s9999_s4  ;;  %s10014_s25 = smov %s10003_s28 }
0x1c0a   : > { %s10015_s26 = smov %s7222_s27  ;;  %s10016_s27 = smov %s10004_s15 }
0x1c0b   : > { %s10017_s28 = smov %s10005_s7  ;;  %s10018_s14 = smov %s10030_s10 }
0x1c0c   : > { %s10019_s15 = smov %s7246_s16  ;;  %40 = sbr.rel (!%p38_p9) target bundleno = 40 (0x28), region = 204 }
0x1c0d   : > { %s10020_s16 = smov %s10008_s12 }
0x1c13   :  { %4380 = vsyncpa [#allocation7], 1 }
0x1c14   :  { %4382 = vsyncpa [#allocation7 + $0x1], 1 }
0x1c15   :  { %4383 = vsyncpa [#allocation10], 1 }
0x1c16   :  { %4384 = vsyncpa [#allocation13], 1 }
0x1c17   :  { %4386 = vsyncpa [#allocation13 + $0x1], 1 }
0x1c18   :  { %4387 = vsyncpa [#allocation16], 1 }
0x1c19   :  { %4389 = vsyncpa [#allocation16 + $0x1], 1 }
0x1c1a   :  { %4390 = vsyncpa [#allocation19], 1 }
0x1c1b   :  { %4392 = vsyncpa [#allocation19 + $0x1], 1 }
0x1c1c   :  { %4393 = vsyncpa [#allocation22], 1 }
0x1c1d   :  { %4394 = vsyncpa [#allocation25], 1 }
0x1c1e   :  { %4395 = vsyncpa [#allocation8], 1 }
0x1c1f   :  { %4397 = vsyncpa [#allocation8 + $0x1], 1 }

</bundles_post_ra>
